<compile_context>
chip_gen: v5e
topology: v5e:2x2
jax: 0.10.0
libtpu: 0.0.40
codegen_flags: <defaults>
</compile_context>

<pallas_src>
import functools

import jax
import jax.numpy as jnp
from jax import lax
from jax.experimental import pallas as pl
from jax.experimental.pallas import tpu as pltpu


# Scoped-VMEM limit: fits v7x's 64 MiB physical per-TC VMEM with headroom; on
# v5e/v6e (128 MiB) it could be raised further, but no kernel here needs it.
_VMEM_LIMIT = 48 * 1024 * 1024


# ----------------------------- math helpers --------------------------------

def _gelu_exact(x):
    # nn.GELU() default = exact erf-based GELU.
    return 0.5 * x * (1.0 + lax.erf(x * jnp.float32(0.7071067811865476)))


def _layernorm_math(x, g, b, eps):
    mu = jnp.mean(x, axis=-1, keepdims=True)
    var = jnp.mean((x - mu) ** 2, axis=-1, keepdims=True)
    return (x - mu) * lax.rsqrt(var + jnp.float32(eps)) * g + b


def _pick_tile(dim, candidates):
    # Largest candidate that evenly divides `dim`; otherwise the full dim
    # (full-extent blocks are always layout-legal).  Real model dims
    # (768 / 1024 / 3072 / B*1024) hit the large candidates -> lane-dense,
    # MXU-filling tiles; only the tiny unit-test shapes fall back to full.
    for c in candidates:
        if dim % c == 0:
            return c
    return dim


# --------------- fused  LN -> Linear -> (+bias) -> (GELU)  -----------------
# Grid over M only, weight fully resident: LayerNorm is evaluated exactly once
# per row tile (no per-output-tile recompute).

def _fused_linear_kernel(*refs, use_ln, use_bias, gelu, eps):
    it = iter(refs)
    x_ref = next(it)
    g_ref = next(it) if use_ln else None
    b_ref = next(it) if use_ln else None
    w_ref = next(it)
    bias_ref = next(it) if use_bias else None
    o_ref = next(it)

    x = x_ref[...].astype(jnp.float32)
    if use_ln:
        x = _layernorm_math(x, g_ref[...], b_ref[...], eps)

    y = jnp.dot(x.astype(jnp.bfloat16), w_ref[...].astype(jnp.bfloat16),
                preferred_element_type=jnp.float32)
    if use_bias:
        y = y + bias_ref[...]
    if gelu:
        y = _gelu_exact(y)
    o_ref[...] = y.astype(o_ref.dtype)


def fused_linear(x, w, bias=None, *, ln_g=None, ln_b=None, eps=1e-5,
                 gelu=False, out_dtype=jnp.bfloat16):
    """y = [GELU]( LN(x) @ w + bias ), tiled over M, weight resident."""
    M, K = x.shape
    Kw, N = w.shape
    assert K == Kw
    use_ln = ln_g is not None
    use_bias = bias is not None
    tm = _pick_tile(M, (512, 256, 128))

    in_specs = [pl.BlockSpec((tm, K), lambda i: (i, 0))]
    args = [x]
    if use_ln:
        in_specs += [pl.BlockSpec((1, K), lambda i: (0, 0)),
                     pl.BlockSpec((1, K), lambda i: (0, 0))]
        args += [ln_g.reshape(1, K), ln_b.reshape(1, K)]
    in_specs.append(pl.BlockSpec((K, N), lambda i: (0, 0)))
    args.append(w)
    if use_bias:
        in_specs.append(pl.BlockSpec((1, N), lambda i: (0, 0)))
        args.append(bias.reshape(1, N))

    kernel = functools.partial(_fused_linear_kernel, use_ln=use_ln,
                               use_bias=use_bias, gelu=gelu, eps=eps)
    return pl.pallas_call(
        kernel,
        out_shape=jax.ShapeDtypeStruct((M, N), out_dtype),
        grid=(M // tm,),
        in_specs=in_specs,
        out_specs=pl.BlockSpec((tm, N), lambda i: (i, 0)),
        compiler_params=pltpu.CompilerParams(
            dimension_semantics=("parallel",),
            vmem_limit_bytes=_VMEM_LIMIT),
    )(*args)


# ---------------------- fused PreNorm -> QKV projection --------------------
# Outputs Q (pre-scaled at init), K, V directly in head-major (B, H, N, hd)
# bf16 layout so the flash kernel can slice heads with lane-dense blocks.

def _qkv_kernel(x_ref, g_ref, b_ref, w_ref, bias_ref, q_ref, k_ref, v_ref,
                *, heads, eps):
    d = x_ref.shape[-1]
    hd = d // heads
    x = x_ref[0].astype(jnp.float32)                       # (tm, D)
    xn = _layernorm_math(x, g_ref[...], b_ref[...], eps)
    qkv = jnp.dot(xn.astype(jnp.bfloat16), w_ref[...],
                  preferred_element_type=jnp.float32) + bias_ref[...]
    qkv = qkv.astype(jnp.bfloat16)                         # (tm, 3D)
    for h in range(heads):                                 # direct per-head stores
        q_ref[0, h] = qkv[:, h * hd:(h + 1) * hd]
        k_ref[0, h] = qkv[:, d + h * hd: d + (h + 1) * hd]
        v_ref[0, h] = qkv[:, 2 * d + h * hd: 2 * d + (h + 1) * hd]


def qkv_proj(x, ln_g, ln_b, wqkv, bqkv, *, heads, eps=1e-5):
    B, N, D = x.shape
    hd = D // heads
    tm = _pick_tile(N, (256, 128))
    kernel = functools.partial(_qkv_kernel, heads=heads, eps=eps)
    out_sds = jax.ShapeDtypeStruct((B, heads, N, hd), jnp.bfloat16)
    out_spec = pl.BlockSpec((1, heads, tm, hd), lambda b, i: (b, 0, i, 0))
    return pl.pallas_call(
        kernel,
        out_shape=(out_sds, out_sds, out_sds),
        grid=(B, N // tm),
        in_specs=[
            pl.BlockSpec((1, tm, D), lambda b, i: (b, i, 0)),
            pl.BlockSpec((1, D), lambda b, i: (0, 0)),
            pl.BlockSpec((1, D), lambda b, i: (0, 0)),
            pl.BlockSpec((D, 3 * D), lambda b, i: (0, 0)),
            pl.BlockSpec((1, 3 * D), lambda b, i: (0, 0)),
        ],
        out_specs=(out_spec, out_spec, out_spec),
        compiler_params=pltpu.CompilerParams(
            dimension_semantics=("parallel", "parallel"),
            vmem_limit_bytes=_VMEM_LIMIT),
    )(x, ln_g.reshape(1, D), ln_b.reshape(1, D), wqkv, bqkv.reshape(1, 3 * D))


# ----------------------- flash attention (online softmax) ------------------

def _flash_kernel(q_ref, k_ref, v_ref, o_ref, m_sc, l_sc, acc_sc):
    ki = pl.program_id(3)

    @pl.when(ki == 0)
    def _():
        m_sc[...] = jnp.full(m_sc.shape, -jnp.inf, jnp.float32)
        l_sc[...] = jnp.zeros(l_sc.shape, jnp.float32)
        acc_sc[...] = jnp.zeros(acc_sc.shape, jnp.float32)

    q = q_ref[0, 0]                                        # (tq, hd) bf16, pre-scaled
    k = k_ref[0, 0]                                        # (tkv, hd) bf16
    s = lax.dot_general(q, k, (((1,), (1,)), ((), ())),
                        preferred_element_type=jnp.float32)  # (tq, tkv)

    m_prev = m_sc[...]
    m_new = jnp.maximum(m_prev, jnp.max(s, axis=-1, keepdims=True))
    alpha = jnp.exp(m_prev - m_new)
    p = jnp.exp(s - m_new)
    l_sc[...] = alpha * l_sc[...] + jnp.sum(p, axis=-1, keepdims=True)
    acc_sc[...] = alpha * acc_sc[...] + jnp.dot(
        p.astype(jnp.bfloat16), v_ref[0, 0], preferred_element_type=jnp.float32)
    m_sc[...] = m_new

    @pl.when(ki == pl.num_programs(3) - 1)
    def _():
        o_ref[0, 0] = (acc_sc[...] *
                       pl.reciprocal(l_sc[...], approx=True)).astype(o_ref.dtype)


def flash_attention(q, k, v):
    B, H, N, hd = q.shape
    tq = _pick_tile(N, (256, 128))
    tkv = _pick_tile(N, (512, 256, 128))
    return pl.pallas_call(
        _flash_kernel,
        out_shape=jax.ShapeDtypeStruct((B, H, N, hd), jnp.bfloat16),
        grid=(B, H, N // tq, N // tkv),
        in_specs=[
            pl.BlockSpec((1, 1, tq, hd), lambda b, h, qi, ki: (b, h, qi, 0)),
            pl.BlockSpec((1, 1, tkv, hd), lambda b, h, qi, ki: (b, h, ki, 0)),
            pl.BlockSpec((1, 1, tkv, hd), lambda b, h, qi, ki: (b, h, ki, 0)),
        ],
        out_specs=pl.BlockSpec((1, 1, tq, hd), lambda b, h, qi, ki: (b, h, qi, 0)),
        scratch_shapes=[pltpu.VMEM((tq, 1), jnp.float32),
                        pltpu.VMEM((tq, 1), jnp.float32),
                        pltpu.VMEM((tq, hd), jnp.float32)],
        compiler_params=pltpu.CompilerParams(
            dimension_semantics=("parallel", "parallel", "parallel", "arbitrary"),
            vmem_limit_bytes=_VMEM_LIMIT),
    )(q, k, v)


# ------------- attention output projection + residual (head-major) ---------

def _attn_out_kernel(ctx_ref, wo_ref, bo_ref, res_ref, o_ref, *, heads):
    hd = ctx_ref.shape[-1]
    acc = res_ref[0].astype(jnp.float32) + bo_ref[...]     # residual + bias
    for h in range(heads):                                 # per-head matmul accumulation
        acc = acc + jnp.dot(ctx_ref[0, h], wo_ref[h * hd:(h + 1) * hd, :],
                            preferred_element_type=jnp.float32)
    o_ref[0] = acc.astype(o_ref.dtype)


def attn_out_proj(ctx, wo, bo, x_res, *, heads):
    B, H, N, hd = ctx.shape
    D = H * hd
    tm = _pick_tile(N, (256, 128))
    kernel = functools.partial(_attn_out_kernel, heads=heads)
    return pl.pallas_call(
        kernel,
        out_shape=jax.ShapeDtypeStruct((B, N, D), jnp.bfloat16),
        grid=(B, N // tm),
        in_specs=[
            pl.BlockSpec((1, H, tm, hd), lambda b, i: (b, 0, i, 0)),
            pl.BlockSpec((D, D), lambda b, i: (0, 0)),
            pl.BlockSpec((1, D), lambda b, i: (0, 0)),
            pl.BlockSpec((1, tm, D), lambda b, i: (b, i, 0)),
        ],
        out_specs=pl.BlockSpec((1, tm, D), lambda b, i: (b, i, 0)),
        compiler_params=pltpu.CompilerParams(
            dimension_semantics=("parallel", "parallel"),
            vmem_limit_bytes=_VMEM_LIMIT),
    )(ctx, wo, bo.reshape(1, D), x_res)


# --------- averaged attention weights (visualization path only) ------------
# nn.MultiheadAttention default: weights averaged over heads -> (B, N, N).
# Accumulates mean over the innermost 'arbitrary' head axis; only runs when
# return_attn=True so the hot path never stores O(N^2) data.

def _attn_weights_kernel(q_ref, k_ref, o_ref, *, heads):
    h = pl.program_id(2)
    s = lax.dot_general(q_ref[0, 0], k_ref[0, 0], (((1,), (1,)), ((), ())),
                        preferred_element_type=jnp.float32)   # (tq, N)
    s = s - jnp.max(s, axis=-1, keepdims=True)
    p = jnp.exp(s)
    p = (p / jnp.sum(p, axis=-1, keepdims=True)) * jnp.float32(1.0 / heads)

    @pl.when(h == 0)
    def _():
        o_ref[0] = p

    @pl.when(h > 0)
    def _():
        o_ref[0] = o_ref[0] + p


def attn_weights_avg(q, k, *, heads):
    B, H, N, hd = q.shape
    tq = _pick_tile(N, (128,))
    kernel = functools.partial(_attn_weights_kernel, heads=heads)
    return pl.pallas_call(
        kernel,
        out_shape=jax.ShapeDtypeStruct((B, N, N), jnp.float32),
        grid=(B, N // tq, H),
        in_specs=[
            pl.BlockSpec((1, 1, tq, hd), lambda b, qi, h: (b, h, qi, 0)),
            pl.BlockSpec((1, 1, N, hd), lambda b, qi, h: (b, h, 0, 0)),
        ],
        out_specs=pl.BlockSpec((1, tq, N), lambda b, qi, h: (b, qi, 0)),
        compiler_params=pltpu.CompilerParams(
            dimension_semantics=("parallel", "parallel", "arbitrary"),
            vmem_limit_bytes=_VMEM_LIMIT),
    )(q, k)


# ------- fused FFN block:  LN -> Linear -> GELU -> Linear -> +residual -----
# Single kernel, grid=(M//tm, mlp//tc): the (tm, mlp) hidden state stays in
# VMEM (never hits HBM), LayerNorm is computed once per row tile and cached in
# a bf16 VMEM scratch, and the result accumulates in an f32 VMEM scratch seeded
# with residual + final bias.

def _ffn_kernel(x_ref, g_ref, b_ref, w1_ref, b1_ref, w2_ref, b2_ref, o_ref,
                xn_sc, acc_sc, *, eps):
    c = pl.program_id(1)

    @pl.when(c == 0)
    def _():
        x = x_ref[...].astype(jnp.float32)
        xn_sc[...] = _layernorm_math(x, g_ref[...], b_ref[...], eps).astype(jnp.bfloat16)
        acc_sc[...] = x + b2_ref[...]                       # residual + down-proj bias

    h = jnp.dot(xn_sc[...], w1_ref[...],
                preferred_element_type=jnp.float32) + b1_ref[...]
    h = _gelu_exact(h)
    acc_sc[...] += jnp.dot(h.astype(jnp.bfloat16), w2_ref[...],
                           preferred_element_type=jnp.float32)

    @pl.when(c == pl.num_programs(1) - 1)
    def _():
        o_ref[...] = acc_sc[...].astype(o_ref.dtype)


def ffn_block(x, ln_g, ln_b, w1, b1, w2, b2, *, eps=1e-5):
    M, D = x.shape
    mlp = w1.shape[1]
    tm = _pick_tile(M, (256, 128))
    tc = _pick_tile(mlp, (512, 256, 128))
    kernel = functools.partial(_ffn_kernel, eps=eps)
    return pl.pallas_call(
        kernel,
        out_shape=jax.ShapeDtypeStruct((M, D), jnp.bfloat16),
        grid=(M // tm, mlp // tc),
        in_specs=[
            pl.BlockSpec((tm, D), lambda i, c: (i, 0)),
            pl.BlockSpec((1, D), lambda i, c: (0, 0)),
            pl.BlockSpec((1, D), lambda i, c: (0, 0)),
            pl.BlockSpec((D, tc), lambda i, c: (0, c)),
            pl.BlockSpec((1, tc), lambda i, c: (0, c)),
            pl.BlockSpec((tc, D), lambda i, c: (c, 0)),
            pl.BlockSpec((1, D), lambda i, c: (0, 0)),
        ],
        out_specs=pl.BlockSpec((tm, D), lambda i, c: (i, 0)),
        scratch_shapes=[pltpu.VMEM((tm, D), jnp.bfloat16),
                        pltpu.VMEM((tm, D), jnp.float32)],
        compiler_params=pltpu.CompilerParams(
            dimension_semantics=("parallel", "arbitrary"),
            vmem_limit_bytes=_VMEM_LIMIT),
    )(x, ln_g.reshape(1, D), ln_b.reshape(1, D), w1, b1.reshape(1, mlp),
      w2, b2.reshape(1, D))


# ------------------------------- parameters --------------------------------

def init_params(key, *, hidden_dim, depth, heads, mlp_dim, codebook_size,
                num_tokens):
    D = hidden_dim
    hd = D // heads
    q_scale = float(hd) ** -0.5
    keys = iter(jax.random.split(key, 5 + 4 * depth))

    def nrm(shape, scale=0.02):
        return jax.random.normal(next(keys), shape, jnp.float32) * scale

    tok_emb = nrm((codebook_size + 1, D))                   # nn.Embedding, f32

    # Precomputed, transposed logits weight (tok_emb.weight.T[:, :-1]),
    # padded to a lane-dense multiple of 128 columns; sliced back in JAX.
    cb_pad = ((codebook_size + 127) // 128) * 128
    logit_w = tok_emb[:codebook_size].T                     # (D, codebook)
    logit_w = jnp.pad(logit_w, ((0, 0), (0, cb_pad - codebook_size)))

    p = {
        "tok_emb": tok_emb,
        "logit_w": logit_w.astype(jnp.bfloat16),
        "pos_emb": nrm((1, num_tokens, D)),
        # first_layer: LN(1e-12), Drop, Linear, GELU, LN(1e-12), Drop, Linear
        "fl_ln1_g": jnp.ones((D,), jnp.float32), "fl_ln1_b": jnp.zeros((D,), jnp.float32),
        "fl_w1": nrm((D, D)).astype(jnp.bfloat16), "fl_b1": jnp.zeros((D,), jnp.float32),
        "fl_ln2_g": jnp.ones((D,), jnp.float32), "fl_ln2_b": jnp.zeros((D,), jnp.float32),
        "fl_w2": nrm((D, D)).astype(jnp.bfloat16), "fl_b2": jnp.zeros((D,), jnp.float32),
        # last_layer: LN(1e-12), Drop, Linear, GELU, LN(1e-12)
        "ll_ln1_g": jnp.ones((D,), jnp.float32), "ll_ln1_b": jnp.zeros((D,), jnp.float32),
        "ll_w1": nrm((D, D)).astype(jnp.bfloat16), "ll_b1": jnp.zeros((D,), jnp.float32),
        "ll_ln2_g": jnp.ones((D,), jnp.float32), "ll_ln2_b": jnp.zeros((D,), jnp.float32),
    }
    layers = []
    for _ in range(depth):
        wqkv = nrm((D, 3 * D))
        # Fold the 1/sqrt(hd) attention scale into the Q projection (weight;
        # the zero bias would be folded the same way if nonzero).
        wqkv = wqkv.at[:, :D].multiply(q_scale)
        layers.append(dict(
            ln1_g=jnp.ones((D,), jnp.float32), ln1_b=jnp.zeros((D,), jnp.float32),
            wqkv=wqkv.astype(jnp.bfloat16), bqkv=jnp.zeros((3 * D,), jnp.float32),
            wo=nrm((D, D)).astype(jnp.bfloat16), bo=jnp.zeros((D,), jnp.float32),
            ln2_g=jnp.ones((D,), jnp.float32), ln2_b=jnp.zeros((D,), jnp.float32),
            ff_w1=nrm((D, mlp_dim)).astype(jnp.bfloat16),
            ff_b1=jnp.zeros((mlp_dim,), jnp.float32),
            ff_w2=nrm((mlp_dim, D)).astype(jnp.bfloat16),
            ff_b2=jnp.zeros((D,), jnp.float32),
        ))
    p["layers"] = layers
    return p


# -------------------------------- forward ----------------------------------

def mask_transformer_img_forward(params, token, heads, return_attn=False):
    """token: int32 (B, N).  Returns (logit (B, N, codebook), None[, attn list])."""
    B, N = token.shape
    D = params["tok_emb"].shape[1]
    codebook = params["tok_emb"].shape[0] - 1

    # Embedding gather + positional embedding kept in plain JAX (data-dependent
    # gather; a scalar-prefetch DMA gather kernel is overkill at this size).
    # TODO(synk): move the gather into a scalar-prefetch Pallas kernel if the
    #             embedding lookup ever shows up in profiles.
    x = jnp.take(params["tok_emb"], token, axis=0) + params["pos_emb"]  # (B,N,D) f32
    x2 = x.reshape(B * N, D)

    # ---- first_layer: (LN 1e-12 -> Linear -> GELU), (LN 1e-12 -> Linear) ----
    h = fused_linear(x2, params["fl_w1"], params["fl_b1"],
                     ln_g=params["fl_ln1_g"], ln_b=params["fl_ln1_b"],
                     eps=1e-12, gelu=True)
    x2 = fused_linear(h, params["fl_w2"], params["fl_b2"],
                      ln_g=params["fl_ln2_g"], ln_b=params["fl_ln2_b"],
                      eps=1e-12, gelu=False)                 # bf16 (B*N, D)

    # ---- transformer encoder ----
    attn_list = []
    for layer in params["layers"]:
        x3 = x2.reshape(B, N, D)
        q, k, v = qkv_proj(x3, layer["ln1_g"], layer["ln1_b"],
                           layer["wqkv"], layer["bqkv"], heads=heads, eps=1e-5)
        ctx = flash_attention(q, k, v)                       # (B, H, N, hd) bf16
        x3 = attn_out_proj(ctx, layer["wo"], layer["bo"], x3, heads=heads)
        if return_attn:
            attn_list.append(attn_weights_avg(q, k, heads=heads))
        x2 = ffn_block(x3.reshape(B * N, D), layer["ln2_g"], layer["ln2_b"],
                       layer["ff_w1"], layer["ff_b1"],
                       layer["ff_w2"], layer["ff_b2"], eps=1e-5)

    # ---- last_layer + logits (final LN fused into the logits matmul) ----
    h = fused_linear(x2, params["ll_w1"], params["ll_b1"],
                     ln_g=params["ll_ln1_g"], ln_b=params["ll_ln1_b"],
                     eps=1e-12, gelu=True)
    logit = fused_linear(h, params["logit_w"], None,
                         ln_g=params["ll_ln2_g"], ln_b=params["ll_ln2_b"],
                         eps=1e-12, gelu=False, out_dtype=jnp.float32)
    logit = logit[:, :codebook].reshape(B, N, codebook)      # drop lane padding

    if return_attn:
        return logit, None, attn_list
    return logit, None


# --------------------------------- main -------------------------------------

if __name__ == "__main__":
    # Small shapes consistent with the module's forward.
    B = 2
    HIDDEN = 32          # hidden_dim
    HEADS = 4
    DEPTH = 2
    MLP_DIM = 64
    CODEBOOK = 24        # codebook_size_img
    NUM_TOKENS = 16      # num_tokens_img

    key = jax.random.PRNGKey(0)
    k_params, k_tok = jax.random.split(key)

    params = init_params(k_params, hidden_dim=HIDDEN, depth=DEPTH, heads=HEADS,
                         mlp_dim=MLP_DIM, codebook_size=CODEBOOK,
                         num_tokens=NUM_TOKENS)
    token = jax.random.randint(k_tok, (B, NUM_TOKENS), 0, CODEBOOK + 1, jnp.int32)

    fwd = jax.jit(mask_transformer_img_forward, static_argnums=(2, 3))

    # hot path: no attention-weight output
    logit_fast, _ = fwd(params, token, HEADS, False)
    jax.block_until_ready(logit_fast)

    # visualization path: averaged attention weights per layer
    logit, _, attns = fwd(params, token, HEADS, True)
    jax.block_until_ready(logit)
    jax.block_until_ready(attns)

    assert logit_fast.shape == (B, NUM_TOKENS, CODEBOOK)
    assert logit.shape == (B, NUM_TOKENS, CODEBOOK)
    assert len(attns) == DEPTH and attns[0].shape == (B, NUM_TOKENS, NUM_TOKENS)
    assert bool(jnp.all(jnp.isfinite(logit_fast)))
    assert bool(jnp.allclose(attns[0].sum(-1), 1.0, atol=1e-2))
    print("KERNEL_OK")
</pallas_src>

<mosaic_0001>
module attributes {stable_mosaic.version = 11 : i64} {
  func.func @_qkv_kernel(%arg0: i32, %arg1: i32, %arg2: memref<1x16x32xbf16, #tpu.memory_space<vmem>>, %arg3: memref<1x32xf32, #tpu.memory_space<vmem>>, %arg4: memref<1x32xf32, #tpu.memory_space<vmem>>, %arg5: memref<32x96xbf16, #tpu.memory_space<vmem>>, %arg6: memref<1x96xf32, #tpu.memory_space<vmem>>, %arg7: memref<1x4x16x8xbf16, #tpu.memory_space<vmem>>, %arg8: memref<1x4x16x8xbf16, #tpu.memory_space<vmem>>, %arg9: memref<1x4x16x8xbf16, #tpu.memory_space<vmem>>) attributes {dimension_semantics = [#tpu.dimension_semantics<parallel>, #tpu.dimension_semantics<parallel>], iteration_bounds = array<i64: 2, 1>, scalar_prefetch = 0 : i64, scratch_operands = 0 : i64, tpu.core_type = #tpu.core_type<tc>, window_params = [{transform_indices = @transform_0, window_bounds = array<i64: 1, 16, 32>}, {pipeline_mode = #tpu.pipeline_mode<synchronous>, transform_indices = @transform_1, window_bounds = array<i64: 1, 32>}, {pipeline_mode = #tpu.pipeline_mode<synchronous>, transform_indices = @transform_2, window_bounds = array<i64: 1, 32>}, {pipeline_mode = #tpu.pipeline_mode<synchronous>, transform_indices = @transform_3, window_bounds = array<i64: 32, 96>}, {pipeline_mode = #tpu.pipeline_mode<synchronous>, transform_indices = @transform_4, window_bounds = array<i64: 1, 96>}, {transform_indices = @transform_5, window_bounds = array<i64: 1, 4, 16, 8>}, {transform_indices = @transform_6, window_bounds = array<i64: 1, 4, 16, 8>}, {transform_indices = @transform_7, window_bounds = array<i64: 1, 4, 16, 8>}]} {
    %c0 = arith.constant 0 : index
    %c0_0 = arith.constant 0 : index
    %c0_1 = arith.constant 0 : index
    %0 = vector.load %arg2[%c0, %c0_0, %c0_1] : memref<1x16x32xbf16, #tpu.memory_space<vmem>>, vector<1x16x32xbf16>
    %1 = vector.shape_cast %0 : vector<1x16x32xbf16> to vector<16x32xbf16>
    %2 = arith.extf %1 : vector<16x32xbf16> to vector<16x32xf32>
    %c0_2 = arith.constant 0 : index
    %c0_3 = arith.constant 0 : index
    %3 = vector.load %arg3[%c0_2, %c0_3] : memref<1x32xf32, #tpu.memory_space<vmem>>, vector<1x32xf32>
    %c0_4 = arith.constant 0 : index
    %c0_5 = arith.constant 0 : index
    %4 = vector.load %arg4[%c0_4, %c0_5] : memref<1x32xf32, #tpu.memory_space<vmem>>, vector<1x32xf32>
    %cst = arith.constant dense<0.000000e+00> : vector<16xf32>
    %5 = vector.multi_reduction <add>, %2, %cst [1] : vector<16x32xf32> to vector<16xf32>
    %6 = vector.shape_cast %5 : vector<16xf32> to vector<16x1xf32>
    %cst_6 = arith.constant 3.200000e+01 : f32
    %7 = vector.broadcast %cst_6 : f32 to vector<16x1xf32>
    %8 = arith.divf %6, %7 : vector<16x1xf32>
    %9 = vector.broadcast %8 : vector<16x1xf32> to vector<16x32xf32>
    %10 = arith.subf %2, %9 : vector<16x32xf32>
    %11 = arith.mulf %10, %10 : vector<16x32xf32>
    %cst_7 = arith.constant dense<0.000000e+00> : vector<16xf32>
    %12 = vector.multi_reduction <add>, %11, %cst_7 [1] : vector<16x32xf32> to vector<16xf32>
    %13 = vector.shape_cast %12 : vector<16xf32> to vector<16x1xf32>
    %cst_8 = arith.constant 3.200000e+01 : f32
    %14 = vector.broadcast %cst_8 : f32 to vector<16x1xf32>
    %15 = arith.divf %13, %14 : vector<16x1xf32>
    %16 = vector.broadcast %8 : vector<16x1xf32> to vector<16x32xf32>
    %17 = arith.subf %2, %16 : vector<16x32xf32>
    %cst_9 = arith.constant 9.99999974E-6 : f32
    %18 = vector.broadcast %cst_9 : f32 to vector<16x1xf32>
    %19 = arith.addf %15, %18 : vector<16x1xf32>
    %20 = math.rsqrt %19 : vector<16x1xf32>
    %21 = vector.broadcast %20 : vector<16x1xf32> to vector<16x32xf32>
    %22 = arith.mulf %17, %21 : vector<16x32xf32>
    %23 = vector.broadcast %3 : vector<1x32xf32> to vector<16x32xf32>
    %24 = arith.mulf %22, %23 : vector<16x32xf32>
    %25 = vector.broadcast %4 : vector<1x32xf32> to vector<16x32xf32>
    %26 = arith.addf %24, %25 : vector<16x32xf32>
    %27 = arith.truncf %26 : vector<16x32xf32> to vector<16x32xbf16>
    %c0_10 = arith.constant 0 : index
    %c0_11 = arith.constant 0 : index
    %28 = vector.load %arg5[%c0_10, %c0_11] : memref<32x96xbf16, #tpu.memory_space<vmem>>, vector<32x96xbf16>
    %cst_12 = arith.constant dense<0.000000e+00> : vector<16x96xf32>
    %29 = tpu.matmul %27, %28, %cst_12 {dimension_numbers = #tpu.dot_dimension_numbers<[1], [0], [0], [1], [0, 0, 1, 1], [], []>} : vector<16x32xbf16>, vector<32x96xbf16>, vector<16x96xf32> -> vector<16x96xf32>
    %c0_13 = arith.constant 0 : index
    %c0_14 = arith.constant 0 : index
    %30 = vector.load %arg6[%c0_13, %c0_14] : memref<1x96xf32, #tpu.memory_space<vmem>>, vector<1x96xf32>
    %31 = vector.broadcast %30 : vector<1x96xf32> to vector<16x96xf32>
    %32 = arith.addf %29, %31 : vector<16x96xf32>
    %33 = arith.truncf %32 : vector<16x96xf32> to vector<16x96xbf16>
    %34 = vector.extract_strided_slice %33 {offsets = [0, 0], sizes = [16, 8], strides = [1, 1]} : vector<16x96xbf16> to vector<16x8xbf16>
    %c0_15 = arith.constant 0 : index
    %c0_16 = arith.constant 0 : index
    %c0_17 = arith.constant 0 : index
    %c0_18 = arith.constant 0 : index
    %35 = vector.load %arg7[%c0_15, %c0_16, %c0_17, %c0_18] : memref<1x4x16x8xbf16, #tpu.memory_space<vmem>>, vector<1x1x16x8xbf16>
    %36 = vector.shape_cast %35 : vector<1x1x16x8xbf16> to vector<16x8xbf16>
    %37 = vector.shape_cast %34 : vector<16x8xbf16> to vector<1x1x16x8xbf16>
    tpu.vector_store %arg7[%c0_15, %c0_16, %c0_17, %c0_18], %37 {strides = array<i32>} : memref<1x4x16x8xbf16, #tpu.memory_space<vmem>>, vector<1x1x16x8xbf16>,
    %38 = vector.extract_strided_slice %33 {offsets = [0, 32], sizes = [16, 8], strides = [1, 1]} : vector<16x96xbf16> to vector<16x8xbf16>
    %c0_19 = arith.constant 0 : index
    %c0_20 = arith.constant 0 : index
    %c0_21 = arith.constant 0 : index
    %c0_22 = arith.constant 0 : index
    %39 = vector.load %arg8[%c0_19, %c0_20, %c0_21, %c0_22] : memref<1x4x16x8xbf16, #tpu.memory_space<vmem>>, vector<1x1x16x8xbf16>
    %40 = vector.shape_cast %39 : vector<1x1x16x8xbf16> to vector<16x8xbf16>
    %41 = vector.shape_cast %38 : vector<16x8xbf16> to vector<1x1x16x8xbf16>
    tpu.vector_store %arg8[%c0_19, %c0_20, %c0_21, %c0_22], %41 {strides = array<i32>} : memref<1x4x16x8xbf16, #tpu.memory_space<vmem>>, vector<1x1x16x8xbf16>,
    %42 = vector.extract_strided_slice %33 {offsets = [0, 64], sizes = [16, 8], strides = [1, 1]} : vector<16x96xbf16> to vector<16x8xbf16>
    %c0_23 = arith.constant 0 : index
    %c0_24 = arith.constant 0 : index
    %c0_25 = arith.constant 0 : index
    %c0_26 = arith.constant 0 : index
    %43 = vector.load %arg9[%c0_23, %c0_24, %c0_25, %c0_26] : memref<1x4x16x8xbf16, #tpu.memory_space<vmem>>, vector<1x1x16x8xbf16>
    %44 = vector.shape_cast %43 : vector<1x1x16x8xbf16> to vector<16x8xbf16>
    %45 = vector.shape_cast %42 : vector<16x8xbf16> to vector<1x1x16x8xbf16>
    tpu.vector_store %arg9[%c0_23, %c0_24, %c0_25, %c0_26], %45 {strides = array<i32>} : memref<1x4x16x8xbf16, #tpu.memory_space<vmem>>, vector<1x1x16x8xbf16>,
    %46 = vector.extract_strided_slice %33 {offsets = [0, 8], sizes = [16, 8], strides = [1, 1]} : vector<16x96xbf16> to vector<16x8xbf16>
    %c0_27 = arith.constant 0 : index
    %c1 = arith.constant 1 : index
    %c0_28 = arith.constant 0 : index
    %c0_29 = arith.constant 0 : index
    %47 = vector.load %arg7[%c0_27, %c1, %c0_28, %c0_29] : memref<1x4x16x8xbf16, #tpu.memory_space<vmem>>, vector<1x1x16x8xbf16>
    %48 = vector.shape_cast %47 : vector<1x1x16x8xbf16> to vector<16x8xbf16>
    %49 = vector.shape_cast %46 : vector<16x8xbf16> to vector<1x1x16x8xbf16>
    tpu.vector_store %arg7[%c0_27, %c1, %c0_28, %c0_29], %49 {strides = array<i32>} : memref<1x4x16x8xbf16, #tpu.memory_space<vmem>>, vector<1x1x16x8xbf16>,
    %50 = vector.extract_strided_slice %33 {offsets = [0, 40], sizes = [16, 8], strides = [1, 1]} : vector<16x96xbf16> to vector<16x8xbf16>
    %c0_30 = arith.constant 0 : index
    %c1_31 = arith.constant 1 : index
    %c0_32 = arith.constant 0 : index
    %c0_33 = arith.constant 0 : index
    %51 = vector.load %arg8[%c0_30, %c1_31, %c0_32, %c0_33] : memref<1x4x16x8xbf16, #tpu.memory_space<vmem>>, vector<1x1x16x8xbf16>
    %52 = vector.shape_cast %51 : vector<1x1x16x8xbf16> to vector<16x8xbf16>
    %53 = vector.shape_cast %50 : vector<16x8xbf16> to vector<1x1x16x8xbf16>
    tpu.vector_store %arg8[%c0_30, %c1_31, %c0_32, %c0_33], %53 {strides = array<i32>} : memref<1x4x16x8xbf16, #tpu.memory_space<vmem>>, vector<1x1x16x8xbf16>,
    %54 = vector.extract_strided_slice %33 {offsets = [0, 72], sizes = [16, 8], strides = [1, 1]} : vector<16x96xbf16> to vector<16x8xbf16>
    %c0_34 = arith.constant 0 : index
    %c1_35 = arith.constant 1 : index
    %c0_36 = arith.constant 0 : index
    %c0_37 = arith.constant 0 : index
    %55 = vector.load %arg9[%c0_34, %c1_35, %c0_36, %c0_37] : memref<1x4x16x8xbf16, #tpu.memory_space<vmem>>, vector<1x1x16x8xbf16>
    %56 = vector.shape_cast %55 : vector<1x1x16x8xbf16> to vector<16x8xbf16>
    %57 = vector.shape_cast %54 : vector<16x8xbf16> to vector<1x1x16x8xbf16>
    tpu.vector_store %arg9[%c0_34, %c1_35, %c0_36, %c0_37], %57 {strides = array<i32>} : memref<1x4x16x8xbf16, #tpu.memory_space<vmem>>, vector<1x1x16x8xbf16>,
    %58 = vector.extract_strided_slice %33 {offsets = [0, 16], sizes = [16, 8], strides = [1, 1]} : vector<16x96xbf16> to vector<16x8xbf16>
    %c0_38 = arith.constant 0 : index
    %c2 = arith.constant 2 : index
    %c0_39 = arith.constant 0 : index
    %c0_40 = arith.constant 0 : index
    %59 = vector.load %arg7[%c0_38, %c2, %c0_39, %c0_40] : memref<1x4x16x8xbf16, #tpu.memory_space<vmem>>, vector<1x1x16x8xbf16>
    %60 = vector.shape_cast %59 : vector<1x1x16x8xbf16> to vector<16x8xbf16>
    %61 = vector.shape_cast %58 : vector<16x8xbf16> to vector<1x1x16x8xbf16>
    tpu.vector_store %arg7[%c0_38, %c2, %c0_39, %c0_40], %61 {strides = array<i32>} : memref<1x4x16x8xbf16, #tpu.memory_space<vmem>>, vector<1x1x16x8xbf16>,
    %62 = vector.extract_strided_slice %33 {offsets = [0, 48], sizes = [16, 8], strides = [1, 1]} : vector<16x96xbf16> to vector<16x8xbf16>
    %c0_41 = arith.constant 0 : index
    %c2_42 = arith.constant 2 : index
    %c0_43 = arith.constant 0 : index
    %c0_44 = arith.constant 0 : index
    %63 = vector.load %arg8[%c0_41, %c2_42, %c0_43, %c0_44] : memref<1x4x16x8xbf16, #tpu.memory_space<vmem>>, vector<1x1x16x8xbf16>
    %64 = vector.shape_cast %63 : vector<1x1x16x8xbf16> to vector<16x8xbf16>
    %65 = vector.shape_cast %62 : vector<16x8xbf16> to vector<1x1x16x8xbf16>
    tpu.vector_store %arg8[%c0_41, %c2_42, %c0_43, %c0_44], %65 {strides = array<i32>} : memref<1x4x16x8xbf16, #tpu.memory_space<vmem>>, vector<1x1x16x8xbf16>,
    %66 = vector.extract_strided_slice %33 {offsets = [0, 80], sizes = [16, 8], strides = [1, 1]} : vector<16x96xbf16> to vector<16x8xbf16>
    %c0_45 = arith.constant 0 : index
    %c2_46 = arith.constant 2 : index
    %c0_47 = arith.constant 0 : index
    %c0_48 = arith.constant 0 : index
    %67 = vector.load %arg9[%c0_45, %c2_46, %c0_47, %c0_48] : memref<1x4x16x8xbf16, #tpu.memory_space<vmem>>, vector<1x1x16x8xbf16>
    %68 = vector.shape_cast %67 : vector<1x1x16x8xbf16> to vector<16x8xbf16>
    %69 = vector.shape_cast %66 : vector<16x8xbf16> to vector<1x1x16x8xbf16>
    tpu.vector_store %arg9[%c0_45, %c2_46, %c0_47, %c0_48], %69 {strides = array<i32>} : memref<1x4x16x8xbf16, #tpu.memory_space<vmem>>, vector<1x1x16x8xbf16>,
    %70 = vector.extract_strided_slice %33 {offsets = [0, 24], sizes = [16, 8], strides = [1, 1]} : vector<16x96xbf16> to vector<16x8xbf16>
    %c0_49 = arith.constant 0 : index
    %c3 = arith.constant 3 : index
    %c0_50 = arith.constant 0 : index
    %c0_51 = arith.constant 0 : index
    %71 = vector.load %arg7[%c0_49, %c3, %c0_50, %c0_51] : memref<1x4x16x8xbf16, #tpu.memory_space<vmem>>, vector<1x1x16x8xbf16>
    %72 = vector.shape_cast %71 : vector<1x1x16x8xbf16> to vector<16x8xbf16>
    %73 = vector.shape_cast %70 : vector<16x8xbf16> to vector<1x1x16x8xbf16>
    tpu.vector_store %arg7[%c0_49, %c3, %c0_50, %c0_51], %73 {strides = array<i32>} : memref<1x4x16x8xbf16, #tpu.memory_space<vmem>>, vector<1x1x16x8xbf16>,
    %74 = vector.extract_strided_slice %33 {offsets = [0, 56], sizes = [16, 8], strides = [1, 1]} : vector<16x96xbf16> to vector<16x8xbf16>
    %c0_52 = arith.constant 0 : index
    %c3_53 = arith.constant 3 : index
    %c0_54 = arith.constant 0 : index
    %c0_55 = arith.constant 0 : index
    %75 = vector.load %arg8[%c0_52, %c3_53, %c0_54, %c0_55] : memref<1x4x16x8xbf16, #tpu.memory_space<vmem>>, vector<1x1x16x8xbf16>
    %76 = vector.shape_cast %75 : vector<1x1x16x8xbf16> to vector<16x8xbf16>
    %77 = vector.shape_cast %74 : vector<16x8xbf16> to vector<1x1x16x8xbf16>
    tpu.vector_store %arg8[%c0_52, %c3_53, %c0_54, %c0_55], %77 {strides = array<i32>} : memref<1x4x16x8xbf16, #tpu.memory_space<vmem>>, vector<1x1x16x8xbf16>,
    %78 = vector.extract_strided_slice %33 {offsets = [0, 88], sizes = [16, 8], strides = [1, 1]} : vector<16x96xbf16> to vector<16x8xbf16>
    %c0_56 = arith.constant 0 : index
    %c3_57 = arith.constant 3 : index
    %c0_58 = arith.constant 0 : index
    %c0_59 = arith.constant 0 : index
    %79 = vector.load %arg9[%c0_56, %c3_57, %c0_58, %c0_59] : memref<1x4x16x8xbf16, #tpu.memory_space<vmem>>, vector<1x1x16x8xbf16>
    %80 = vector.shape_cast %79 : vector<1x1x16x8xbf16> to vector<16x8xbf16>
    %81 = vector.shape_cast %78 : vector<16x8xbf16> to vector<1x1x16x8xbf16>
    tpu.vector_store %arg9[%c0_56, %c3_57, %c0_58, %c0_59], %81 {strides = array<i32>} : memref<1x4x16x8xbf16, #tpu.memory_space<vmem>>, vector<1x1x16x8xbf16>,
    return
  }
  func.func @transform_0(%arg0: i32, %arg1: i32) -> (i32, i32, i32) {
    %c0_i32 = arith.constant 0 : i32
    %c0_i32_0 = arith.constant 0 : i32
    return %arg0, %arg1, %c0_i32 : i32, i32, i32
  }
  func.func @transform_1(%arg0: i32, %arg1: i32) -> (i32, i32) {
    %c0_i32 = arith.constant 0 : i32
    %c0_i32_0 = arith.constant 0 : i32
    %c0_i32_1 = arith.constant 0 : i32
    return %c0_i32, %c0_i32_0 : i32, i32
  }
  func.func @transform_2(%arg0: i32, %arg1: i32) -> (i32, i32) {
    %c0_i32 = arith.constant 0 : i32
    %c0_i32_0 = arith.constant 0 : i32
    %c0_i32_1 = arith.constant 0 : i32
    return %c0_i32, %c0_i32_0 : i32, i32
  }
  func.func @transform_3(%arg0: i32, %arg1: i32) -> (i32, i32) {
    %c0_i32 = arith.constant 0 : i32
    %c0_i32_0 = arith.constant 0 : i32
    %c0_i32_1 = arith.constant 0 : i32
    return %c0_i32, %c0_i32_0 : i32, i32
  }
  func.func @transform_4(%arg0: i32, %arg1: i32) -> (i32, i32) {
    %c0_i32 = arith.constant 0 : i32
    %c0_i32_0 = arith.constant 0 : i32
    %c0_i32_1 = arith.constant 0 : i32
    return %c0_i32, %c0_i32_0 : i32, i32
  }
  func.func @transform_5(%arg0: i32, %arg1: i32) -> (i32, i32, i32, i32) {
    %c0_i32 = arith.constant 0 : i32
    %c0_i32_0 = arith.constant 0 : i32
    %c0_i32_1 = arith.constant 0 : i32
    return %arg0, %c0_i32, %arg1, %c0_i32_0 : i32, i32, i32, i32
  }
  func.func @transform_6(%arg0: i32, %arg1: i32) -> (i32, i32, i32, i32) {
    %c0_i32 = arith.constant 0 : i32
    %c0_i32_0 = arith.constant 0 : i32
    %c0_i32_1 = arith.constant 0 : i32
    return %arg0, %c0_i32, %arg1, %c0_i32_0 : i32, i32, i32, i32
  }
  func.func @transform_7(%arg0: i32, %arg1: i32) -> (i32, i32, i32, i32) {
    %c0_i32 = arith.constant 0 : i32
    %c0_i32_0 = arith.constant 0 : i32
    %c0_i32_1 = arith.constant 0 : i32
    return %arg0, %c0_i32, %arg1, %c0_i32_0 : i32, i32, i32, i32
  }
}

module attributes {stable_mosaic.version = 11 : i64} {
  func.func @_fused_linear_kernel(%arg0: i32, %arg1: memref<32x32xf32, #tpu.memory_space<vmem>>, %arg2: memref<1x32xf32, #tpu.memory_space<vmem>>, %arg3: memref<1x32xf32, #tpu.memory_space<vmem>>, %arg4: memref<32x32xbf16, #tpu.memory_space<vmem>>, %arg5: memref<1x32xf32, #tpu.memory_space<vmem>>, %arg6: memref<32x32xbf16, #tpu.memory_space<vmem>>) attributes {dimension_semantics = [#tpu.dimension_semantics<parallel>], iteration_bounds = array<i64: 1>, scalar_prefetch = 0 : i64, scratch_operands = 0 : i64, tpu.core_type = #tpu.core_type<tc>, window_params = [{transform_indices = @transform_0, window_bounds = array<i64: 32, 32>}, {pipeline_mode = #tpu.pipeline_mode<synchronous>, transform_indices = @transform_1, window_bounds = array<i64: 1, 32>}, {pipeline_mode = #tpu.pipeline_mode<synchronous>, transform_indices = @transform_2, window_bounds = array<i64: 1, 32>}, {pipeline_mode = #tpu.pipeline_mode<synchronous>, transform_indices = @transform_3, window_bounds = array<i64: 32, 32>}, {pipeline_mode = #tpu.pipeline_mode<synchronous>, transform_indices = @transform_4, window_bounds = array<i64: 1, 32>}, {transform_indices = @transform_5, window_bounds = array<i64: 32, 32>}]} {
    %c0 = arith.constant 0 : index
    %c0_0 = arith.constant 0 : index
    %0 = vector.load %arg1[%c0, %c0_0] : memref<32x32xf32, #tpu.memory_space<vmem>>, vector<32x32xf32>
    %c0_1 = arith.constant 0 : index
    %c0_2 = arith.constant 0 : index
    %1 = vector.load %arg2[%c0_1, %c0_2] : memref<1x32xf32, #tpu.memory_space<vmem>>, vector<1x32xf32>
    %c0_3 = arith.constant 0 : index
    %c0_4 = arith.constant 0 : index
    %2 = vector.load %arg3[%c0_3, %c0_4] : memref<1x32xf32, #tpu.memory_space<vmem>>, vector<1x32xf32>
    %cst = arith.constant dense<0.000000e+00> : vector<32xf32>
    %3 = vector.multi_reduction <add>, %0, %cst [1] : vector<32x32xf32> to vector<32xf32>
    %4 = vector.shape_cast %3 : vector<32xf32> to vector<32x1xf32>
    %cst_5 = arith.constant 3.200000e+01 : f32
    %5 = vector.broadcast %cst_5 : f32 to vector<32x1xf32>
    %6 = arith.divf %4, %5 : vector<32x1xf32>
    %7 = vector.broadcast %6 : vector<32x1xf32> to vector<32x32xf32>
    %8 = arith.subf %0, %7 : vector<32x32xf32>
    %9 = arith.mulf %8, %8 : vector<32x32xf32>
    %cst_6 = arith.constant dense<0.000000e+00> : vector<32xf32>
    %10 = vector.multi_reduction <add>, %9, %cst_6 [1] : vector<32x32xf32> to vector<32xf32>
    %11 = vector.shape_cast %10 : vector<32xf32> to vector<32x1xf32>
    %cst_7 = arith.constant 3.200000e+01 : f32
    %12 = vector.broadcast %cst_7 : f32 to vector<32x1xf32>
    %13 = arith.divf %11, %12 : vector<32x1xf32>
    %14 = vector.broadcast %6 : vector<32x1xf32> to vector<32x32xf32>
    %15 = arith.subf %0, %14 : vector<32x32xf32>
    %cst_8 = arith.constant 9.99999996E-13 : f32
    %16 = vector.broadcast %cst_8 : f32 to vector<32x1xf32>
    %17 = arith.addf %13, %16 : vector<32x1xf32>
    %18 = math.rsqrt %17 : vector<32x1xf32>
    %19 = vector.broadcast %18 : vector<32x1xf32> to vector<32x32xf32>
    %20 = arith.mulf %15, %19 : vector<32x32xf32>
    %21 = vector.broadcast %1 : vector<1x32xf32> to vector<32x32xf32>
    %22 = arith.mulf %20, %21 : vector<32x32xf32>
    %23 = vector.broadcast %2 : vector<1x32xf32> to vector<32x32xf32>
    %24 = arith.addf %22, %23 : vector<32x32xf32>
    %25 = arith.truncf %24 : vector<32x32xf32> to vector<32x32xbf16>
    %c0_9 = arith.constant 0 : index
    %c0_10 = arith.constant 0 : index
    %26 = vector.load %arg4[%c0_9, %c0_10] : memref<32x32xbf16, #tpu.memory_space<vmem>>, vector<32x32xbf16>
    %cst_11 = arith.constant dense<0.000000e+00> : vector<32x32xf32>
    %27 = tpu.matmul %25, %26, %cst_11 {dimension_numbers = #tpu.dot_dimension_numbers<[1], [0], [0], [1], [0, 0, 1, 1], [], []>} : vector<32x32xbf16>, vector<32x32xbf16>, vector<32x32xf32> -> vector<32x32xf32>
    %c0_12 = arith.constant 0 : index
    %c0_13 = arith.constant 0 : index
    %28 = vector.load %arg5[%c0_12, %c0_13] : memref<1x32xf32, #tpu.memory_space<vmem>>, vector<1x32xf32>
    %29 = vector.broadcast %28 : vector<1x32xf32> to vector<32x32xf32>
    %30 = arith.addf %27, %29 : vector<32x32xf32>
    %cst_14 = arith.constant 5.000000e-01 : f32
    %31 = vector.broadcast %cst_14 : f32 to vector<32x32xf32>
    %32 = arith.mulf %31, %30 : vector<32x32xf32>
    %cst_15 = arith.constant 0.707106769 : f32
    %33 = vector.broadcast %cst_15 : f32 to vector<32x32xf32>
    %34 = arith.mulf %30, %33 : vector<32x32xf32>
    %35 = math.erf %34 : vector<32x32xf32>
    %cst_16 = arith.constant 1.000000e+00 : f32
    %36 = vector.broadcast %cst_16 : f32 to vector<32x32xf32>
    %37 = arith.addf %36, %35 : vector<32x32xf32>
    %38 = arith.mulf %32, %37 : vector<32x32xf32>
    %39 = arith.truncf %38 : vector<32x32xf32> to vector<32x32xbf16>
    %c0_17 = arith.constant 0 : index
    %c0_18 = arith.constant 0 : index
    %40 = vector.load %arg6[%c0_17, %c0_18] : memref<32x32xbf16, #tpu.memory_space<vmem>>, vector<32x32xbf16>
    tpu.vector_store %arg6[%c0_17, %c0_18], %39 {strides = array<i32>} : memref<32x32xbf16, #tpu.memory_space<vmem>>, vector<32x32xbf16>,
    return
  }
  func.func @transform_0(%arg0: i32) -> (i32, i32) {
    %c0_i32 = arith.constant 0 : i32
    %c0_i32_0 = arith.constant 0 : i32
    return %arg0, %c0_i32 : i32, i32
  }
  func.func @transform_1(%arg0: i32) -> (i32, i32) {
    %c0_i32 = arith.constant 0 : i32
    %c0_i32_0 = arith.constant 0 : i32
    %c0_i32_1 = arith.constant 0 : i32
    return %c0_i32, %c0_i32_0 : i32, i32
  }
  func.func @transform_2(%arg0: i32) -> (i32, i32) {
    %c0_i32 = arith.constant 0 : i32
    %c0_i32_0 = arith.constant 0 : i32
    %c0_i32_1 = arith.constant 0 : i32
    return %c0_i32, %c0_i32_0 : i32, i32
  }
  func.func @transform_3(%arg0: i32) -> (i32, i32) {
    %c0_i32 = arith.constant 0 : i32
    %c0_i32_0 = arith.constant 0 : i32
    %c0_i32_1 = arith.constant 0 : i32
    return %c0_i32, %c0_i32_0 : i32, i32
  }
  func.func @transform_4(%arg0: i32) -> (i32, i32) {
    %c0_i32 = arith.constant 0 : i32
    %c0_i32_0 = arith.constant 0 : i32
    %c0_i32_1 = arith.constant 0 : i32
    return %c0_i32, %c0_i32_0 : i32, i32
  }
  func.func @transform_5(%arg0: i32) -> (i32, i32) {
    %c0_i32 = arith.constant 0 : i32
    %c0_i32_0 = arith.constant 0 : i32
    return %arg0, %c0_i32 : i32, i32
  }
}

module attributes {stable_mosaic.version = 11 : i64} {
  func.func @_fused_linear_kernel(%arg0: i32, %arg1: memref<32x32xbf16, #tpu.memory_space<vmem>>, %arg2: memref<1x32xf32, #tpu.memory_space<vmem>>, %arg3: memref<1x32xf32, #tpu.memory_space<vmem>>, %arg4: memref<32x32xbf16, #tpu.memory_space<vmem>>, %arg5: memref<1x32xf32, #tpu.memory_space<vmem>>, %arg6: memref<32x32xbf16, #tpu.memory_space<vmem>>) attributes {dimension_semantics = [#tpu.dimension_semantics<parallel>], iteration_bounds = array<i64: 1>, scalar_prefetch = 0 : i64, scratch_operands = 0 : i64, tpu.core_type = #tpu.core_type<tc>, window_params = [{transform_indices = @transform_0, window_bounds = array<i64: 32, 32>}, {pipeline_mode = #tpu.pipeline_mode<synchronous>, transform_indices = @transform_1, window_bounds = array<i64: 1, 32>}, {pipeline_mode = #tpu.pipeline_mode<synchronous>, transform_indices = @transform_2, window_bounds = array<i64: 1, 32>}, {pipeline_mode = #tpu.pipeline_mode<synchronous>, transform_indices = @transform_3, window_bounds = array<i64: 32, 32>}, {pipeline_mode = #tpu.pipeline_mode<synchronous>, transform_indices = @transform_4, window_bounds = array<i64: 1, 32>}, {transform_indices = @transform_5, window_bounds = array<i64: 32, 32>}]} {
    %c0 = arith.constant 0 : index
    %c0_0 = arith.constant 0 : index
    %0 = vector.load %arg1[%c0, %c0_0] : memref<32x32xbf16, #tpu.memory_space<vmem>>, vector<32x32xbf16>
    %1 = arith.extf %0 : vector<32x32xbf16> to vector<32x32xf32>
    %c0_1 = arith.constant 0 : index
    %c0_2 = arith.constant 0 : index
    %2 = vector.load %arg2[%c0_1, %c0_2] : memref<1x32xf32, #tpu.memory_space<vmem>>, vector<1x32xf32>
    %c0_3 = arith.constant 0 : index
    %c0_4 = arith.constant 0 : index
    %3 = vector.load %arg3[%c0_3, %c0_4] : memref<1x32xf32, #tpu.memory_space<vmem>>, vector<1x32xf32>
    %cst = arith.constant dense<0.000000e+00> : vector<32xf32>
    %4 = vector.multi_reduction <add>, %1, %cst [1] : vector<32x32xf32> to vector<32xf32>
    %5 = vector.shape_cast %4 : vector<32xf32> to vector<32x1xf32>
    %cst_5 = arith.constant 3.200000e+01 : f32
    %6 = vector.broadcast %cst_5 : f32 to vector<32x1xf32>
    %7 = arith.divf %5, %6 : vector<32x1xf32>
    %8 = vector.broadcast %7 : vector<32x1xf32> to vector<32x32xf32>
    %9 = arith.subf %1, %8 : vector<32x32xf32>
    %10 = arith.mulf %9, %9 : vector<32x32xf32>
    %cst_6 = arith.constant dense<0.000000e+00> : vector<32xf32>
    %11 = vector.multi_reduction <add>, %10, %cst_6 [1] : vector<32x32xf32> to vector<32xf32>
    %12 = vector.shape_cast %11 : vector<32xf32> to vector<32x1xf32>
    %cst_7 = arith.constant 3.200000e+01 : f32
    %13 = vector.broadcast %cst_7 : f32 to vector<32x1xf32>
    %14 = arith.divf %12, %13 : vector<32x1xf32>
    %15 = vector.broadcast %7 : vector<32x1xf32> to vector<32x32xf32>
    %16 = arith.subf %1, %15 : vector<32x32xf32>
    %cst_8 = arith.constant 9.99999996E-13 : f32
    %17 = vector.broadcast %cst_8 : f32 to vector<32x1xf32>
    %18 = arith.addf %14, %17 : vector<32x1xf32>
    %19 = math.rsqrt %18 : vector<32x1xf32>
    %20 = vector.broadcast %19 : vector<32x1xf32> to vector<32x32xf32>
    %21 = arith.mulf %16, %20 : vector<32x32xf32>
    %22 = vector.broadcast %2 : vector<1x32xf32> to vector<32x32xf32>
    %23 = arith.mulf %21, %22 : vector<32x32xf32>
    %24 = vector.broadcast %3 : vector<1x32xf32> to vector<32x32xf32>
    %25 = arith.addf %23, %24 : vector<32x32xf32>
    %26 = arith.truncf %25 : vector<32x32xf32> to vector<32x32xbf16>
    %c0_9 = arith.constant 0 : index
    %c0_10 = arith.constant 0 : index
    %27 = vector.load %arg4[%c0_9, %c0_10] : memref<32x32xbf16, #tpu.memory_space<vmem>>, vector<32x32xbf16>
    %cst_11 = arith.constant dense<0.000000e+00> : vector<32x32xf32>
    %28 = tpu.matmul %26, %27, %cst_11 {dimension_numbers = #tpu.dot_dimension_numbers<[1], [0], [0], [1], [0, 0, 1, 1], [], []>} : vector<32x32xbf16>, vector<32x32xbf16>, vector<32x32xf32> -> vector<32x32xf32>
    %c0_12 = arith.constant 0 : index
    %c0_13 = arith.constant 0 : index
    %29 = vector.load %arg5[%c0_12, %c0_13] : memref<1x32xf32, #tpu.memory_space<vmem>>, vector<1x32xf32>
    %30 = vector.broadcast %29 : vector<1x32xf32> to vector<32x32xf32>
    %31 = arith.addf %28, %30 : vector<32x32xf32>
    %32 = arith.truncf %31 : vector<32x32xf32> to vector<32x32xbf16>
    %c0_14 = arith.constant 0 : index
    %c0_15 = arith.constant 0 : index
    %33 = vector.load %arg6[%c0_14, %c0_15] : memref<32x32xbf16, #tpu.memory_space<vmem>>, vector<32x32xbf16>
    tpu.vector_store %arg6[%c0_14, %c0_15], %32 {strides = array<i32>} : memref<32x32xbf16, #tpu.memory_space<vmem>>, vector<32x32xbf16>,
    return
  }
  func.func @transform_0(%arg0: i32) -> (i32, i32) {
    %c0_i32 = arith.constant 0 : i32
    %c0_i32_0 = arith.constant 0 : i32
    return %arg0, %c0_i32 : i32, i32
  }
  func.func @transform_1(%arg0: i32) -> (i32, i32) {
    %c0_i32 = arith.constant 0 : i32
    %c0_i32_0 = arith.constant 0 : i32
    %c0_i32_1 = arith.constant 0 : i32
    return %c0_i32, %c0_i32_0 : i32, i32
  }
  func.func @transform_2(%arg0: i32) -> (i32, i32) {
    %c0_i32 = arith.constant 0 : i32
    %c0_i32_0 = arith.constant 0 : i32
    %c0_i32_1 = arith.constant 0 : i32
    return %c0_i32, %c0_i32_0 : i32, i32
  }
  func.func @transform_3(%arg0: i32) -> (i32, i32) {
    %c0_i32 = arith.constant 0 : i32
    %c0_i32_0 = arith.constant 0 : i32
    %c0_i32_1 = arith.constant 0 : i32
    return %c0_i32, %c0_i32_0 : i32, i32
  }
  func.func @transform_4(%arg0: i32) -> (i32, i32) {
    %c0_i32 = arith.constant 0 : i32
    %c0_i32_0 = arith.constant 0 : i32
    %c0_i32_1 = arith.constant 0 : i32
    return %c0_i32, %c0_i32_0 : i32, i32
  }
  func.func @transform_5(%arg0: i32) -> (i32, i32) {
    %c0_i32 = arith.constant 0 : i32
    %c0_i32_0 = arith.constant 0 : i32
    return %arg0, %c0_i32 : i32, i32
  }
}

module attributes {stable_mosaic.version = 11 : i64} {
  func.func @_flash_kernel(%arg0: i32, %arg1: i32, %arg2: i32, %arg3: i32, %arg4: memref<1x1x16x8xbf16, #tpu.memory_space<vmem>>, %arg5: memref<1x1x16x8xbf16, #tpu.memory_space<vmem>>, %arg6: memref<1x1x16x8xbf16, #tpu.memory_space<vmem>>, %arg7: memref<1x1x16x8xbf16, #tpu.memory_space<vmem>>, %arg8: memref<16x1xf32, #tpu.memory_space<vmem>>, %arg9: memref<16x1xf32, #tpu.memory_space<vmem>>, %arg10: memref<16x8xf32, #tpu.memory_space<vmem>>) attributes {dimension_semantics = [#tpu.dimension_semantics<parallel>, #tpu.dimension_semantics<parallel>, #tpu.dimension_semantics<parallel>, #tpu.dimension_semantics<arbitrary>], iteration_bounds = array<i64: 2, 4, 1, 1>, scalar_prefetch = 0 : i64, scratch_operands = 3 : i64, tpu.core_type = #tpu.core_type<tc>, window_params = [{transform_indices = @transform_0, window_bounds = array<i64: 1, 1, 16, 8>}, {transform_indices = @transform_1, window_bounds = array<i64: 1, 1, 16, 8>}, {transform_indices = @transform_2, window_bounds = array<i64: 1, 1, 16, 8>}, {transform_indices = @transform_3, window_bounds = array<i64: 1, 1, 16, 8>}]} {
    %c0_i32 = arith.constant 0 : i32
    %0 = arith.cmpi eq, %arg3, %c0_i32 : i32
    %1 = arith.extui %0 : i1 to i32
    %c0_i32_0 = arith.constant 0 : i32
    %2 = arith.cmpi ne, %1, %c0_i32_0 : i32
    scf.if %2 {
      %cst_29 = arith.constant 0xFF800000 : f32
      %36 = vector.broadcast %cst_29 : f32 to vector<16x1xf32>
      %c0_30 = arith.constant 0 : index
      %c0_31 = arith.constant 0 : index
      %37 = vector.load %arg8[%c0_30, %c0_31] : memref<16x1xf32, #tpu.memory_space<vmem>>, vector<16x1xf32>
      tpu.vector_store %arg8[%c0_30, %c0_31], %36 {strides = array<i32>} : memref<16x1xf32, #tpu.memory_space<vmem>>, vector<16x1xf32>,
      %cst_32 = arith.constant 0.000000e+00 : f32
      %38 = vector.broadcast %cst_32 : f32 to vector<16x1xf32>
      %c0_33 = arith.constant 0 : index
      %c0_34 = arith.constant 0 : index
      %39 = vector.load %arg9[%c0_33, %c0_34] : memref<16x1xf32, #tpu.memory_space<vmem>>, vector<16x1xf32>
      tpu.vector_store %arg9[%c0_33, %c0_34], %38 {strides = array<i32>} : memref<16x1xf32, #tpu.memory_space<vmem>>, vector<16x1xf32>,
      %cst_35 = arith.constant 0.000000e+00 : f32
      %40 = vector.broadcast %cst_35 : f32 to vector<16x8xf32>
      %c0_36 = arith.constant 0 : index
      %c0_37 = arith.constant 0 : index
      %41 = vector.load %arg10[%c0_36, %c0_37] : memref<16x8xf32, #tpu.memory_space<vmem>>, vector<16x8xf32>
      tpu.vector_store %arg10[%c0_36, %c0_37], %40 {strides = array<i32>} : memref<16x8xf32, #tpu.memory_space<vmem>>, vector<16x8xf32>,
    } else {
    }
    %c0 = arith.constant 0 : index
    %c0_1 = arith.constant 0 : index
    %c0_2 = arith.constant 0 : index
    %c0_3 = arith.constant 0 : index
    %3 = vector.load %arg4[%c0, %c0_1, %c0_2, %c0_3] : memref<1x1x16x8xbf16, #tpu.memory_space<vmem>>, vector<1x1x16x8xbf16>
    %4 = vector.shape_cast %3 : vector<1x1x16x8xbf16> to vector<16x8xbf16>
    %c0_4 = arith.constant 0 : index
    %c0_5 = arith.constant 0 : index
    %c0_6 = arith.constant 0 : index
    %c0_7 = arith.constant 0 : index
    %5 = vector.load %arg5[%c0_4, %c0_5, %c0_6, %c0_7] : memref<1x1x16x8xbf16, #tpu.memory_space<vmem>>, vector<1x1x16x8xbf16>
    %6 = vector.shape_cast %5 : vector<1x1x16x8xbf16> to vector<16x8xbf16>
    %cst = arith.constant dense<0.000000e+00> : vector<16x16xf32>
    %7 = tpu.matmul %4, %6, %cst {dimension_numbers = #tpu.dot_dimension_numbers<[1], [1], [0], [0], [0, 0, 1, 0], [], []>} : vector<16x8xbf16>, vector<16x8xbf16>, vector<16x16xf32> -> vector<16x16xf32>
    %c0_8 = arith.constant 0 : index
    %c0_9 = arith.constant 0 : index
    %8 = vector.load %arg8[%c0_8, %c0_9] : memref<16x1xf32, #tpu.memory_space<vmem>>, vector<16x1xf32>
    %cst_10 = arith.constant dense<0xFF800000> : vector<16xf32>
    %9 = vector.multi_reduction <maximumf>, %7, %cst_10 [1] : vector<16x16xf32> to vector<16xf32>
    %10 = vector.shape_cast %9 : vector<16xf32> to vector<16x1xf32>
    %11 = arith.maximumf %8, %10 : vector<16x1xf32>
    %12 = arith.subf %8, %11 : vector<16x1xf32>
    %13 = math.exp %12 : vector<16x1xf32>
    %14 = vector.broadcast %11 : vector<16x1xf32> to vector<16x16xf32>
    %15 = arith.subf %7, %14 : vector<16x16xf32>
    %16 = math.exp %15 : vector<16x16xf32>
    %c0_11 = arith.constant 0 : index
    %c0_12 = arith.constant 0 : index
    %17 = vector.load %arg9[%c0_11, %c0_12] : memref<16x1xf32, #tpu.memory_space<vmem>>, vector<16x1xf32>
    %18 = arith.mulf %13, %17 : vector<16x1xf32>
    %cst_13 = arith.constant dense<0.000000e+00> : vector<16xf32>
    %19 = vector.multi_reduction <add>, %16, %cst_13 [1] : vector<16x16xf32> to vector<16xf32>
    %20 = vector.shape_cast %19 : vector<16xf32> to vector<16x1xf32>
    %21 = arith.addf %18, %20 : vector<16x1xf32>
    %c0_14 = arith.constant 0 : index
    %c0_15 = arith.constant 0 : index
    %22 = vector.load %arg9[%c0_14, %c0_15] : memref<16x1xf32, #tpu.memory_space<vmem>>, vector<16x1xf32>
    tpu.vector_store %arg9[%c0_14, %c0_15], %21 {strides = array<i32>} : memref<16x1xf32, #tpu.memory_space<vmem>>, vector<16x1xf32>,
    %c0_16 = arith.constant 0 : index
    %c0_17 = arith.constant 0 : index
    %23 = vector.load %arg10[%c0_16, %c0_17] : memref<16x8xf32, #tpu.memory_space<vmem>>, vector<16x8xf32>
    %24 = vector.broadcast %13 : vector<16x1xf32> to vector<16x8xf32>
    %25 = arith.mulf %24, %23 : vector<16x8xf32>
    %26 = arith.truncf %16 : vector<16x16xf32> to vector<16x16xbf16>
    %c0_18 = arith.constant 0 : index
    %c0_19 = arith.constant 0 : index
    %c0_20 = arith.constant 0 : index
    %c0_21 = arith.constant 0 : index
    %27 = vector.load %arg6[%c0_18, %c0_19, %c0_20, %c0_21] : memref<1x1x16x8xbf16, #tpu.memory_space<vmem>>, vector<1x1x16x8xbf16>
    %28 = vector.shape_cast %27 : vector<1x1x16x8xbf16> to vector<16x8xbf16>
    %cst_22 = arith.constant dense<0.000000e+00> : vector<16x8xf32>
    %29 = tpu.matmul %26, %28, %cst_22 {dimension_numbers = #tpu.dot_dimension_numbers<[1], [0], [0], [1], [0, 0, 1, 1], [], []>} : vector<16x16xbf16>, vector<16x8xbf16>, vector<16x8xf32> -> vector<16x8xf32>
    %30 = arith.addf %25, %29 : vector<16x8xf32>
    %c0_23 = arith.constant 0 : index
    %c0_24 = arith.constant 0 : index
    %31 = vector.load %arg10[%c0_23, %c0_24] : memref<16x8xf32, #tpu.memory_space<vmem>>, vector<16x8xf32>
    tpu.vector_store %arg10[%c0_23, %c0_24], %30 {strides = array<i32>} : memref<16x8xf32, #tpu.memory_space<vmem>>, vector<16x8xf32>,
    %c0_25 = arith.constant 0 : index
    %c0_26 = arith.constant 0 : index
    %32 = vector.load %arg8[%c0_25, %c0_26] : memref<16x1xf32, #tpu.memory_space<vmem>>, vector<16x1xf32>
    tpu.vector_store %arg8[%c0_25, %c0_26], %11 {strides = array<i32>} : memref<16x1xf32, #tpu.memory_space<vmem>>, vector<16x1xf32>,
    %c0_i32_27 = arith.constant 0 : i32
    %33 = arith.cmpi eq, %arg3, %c0_i32_27 : i32
    %34 = arith.extui %33 : i1 to i32
    %c0_i32_28 = arith.constant 0 : i32
    %35 = arith.cmpi ne, %34, %c0_i32_28 : i32
    scf.if %35 {
      %c0_29 = arith.constant 0 : index
      %c0_30 = arith.constant 0 : index
      %36 = vector.load %arg10[%c0_29, %c0_30] : memref<16x8xf32, #tpu.memory_space<vmem>>, vector<16x8xf32>
      %c0_31 = arith.constant 0 : index
      %c0_32 = arith.constant 0 : index
      %37 = vector.load %arg9[%c0_31, %c0_32] : memref<16x1xf32, #tpu.memory_space<vmem>>, vector<16x1xf32>
      %38 = tpu.reciprocal %37 {approx = true} : vector<16x1xf32> -> vector<16x1xf32>
      %39 = vector.broadcast %38 : vector<16x1xf32> to vector<16x8xf32>
      %40 = arith.mulf %36, %39 : vector<16x8xf32>
      %41 = arith.truncf %40 : vector<16x8xf32> to vector<16x8xbf16>
      %c0_33 = arith.constant 0 : index
      %c0_34 = arith.constant 0 : index
      %c0_35 = arith.constant 0 : index
      %c0_36 = arith.constant 0 : index
      %42 = vector.load %arg7[%c0_33, %c0_34, %c0_35, %c0_36] : memref<1x1x16x8xbf16, #tpu.memory_space<vmem>>, vector<1x1x16x8xbf16>
      %43 = vector.shape_cast %42 : vector<1x1x16x8xbf16> to vector<16x8xbf16>
      %44 = vector.shape_cast %41 : vector<16x8xbf16> to vector<1x1x16x8xbf16>
      tpu.vector_store %arg7[%c0_33, %c0_34, %c0_35, %c0_36], %44 {strides = array<i32>} : memref<1x1x16x8xbf16, #tpu.memory_space<vmem>>, vector<1x1x16x8xbf16>,
    } else {
    }
    return
  }
  func.func @transform_0(%arg0: i32, %arg1: i32, %arg2: i32, %arg3: i32) -> (i32, i32, i32, i32) {
    %c0_i32 = arith.constant 0 : i32
    %c0_i32_0 = arith.constant 0 : i32
    return %arg0, %arg1, %arg2, %c0_i32 : i32, i32, i32, i32
  }
  func.func @transform_1(%arg0: i32, %arg1: i32, %arg2: i32, %arg3: i32) -> (i32, i32, i32, i32) {
    %c0_i32 = arith.constant 0 : i32
    %c0_i32_0 = arith.constant 0 : i32
    return %arg0, %arg1, %arg3, %c0_i32 : i32, i32, i32, i32
  }
  func.func @transform_2(%arg0: i32, %arg1: i32, %arg2: i32, %arg3: i32) -> (i32, i32, i32, i32) {
    %c0_i32 = arith.constant 0 : i32
    %c0_i32_0 = arith.constant 0 : i32
    return %arg0, %arg1, %arg3, %c0_i32 : i32, i32, i32, i32
  }
  func.func @transform_3(%arg0: i32, %arg1: i32, %arg2: i32, %arg3: i32) -> (i32, i32, i32, i32) {
    %c0_i32 = arith.constant 0 : i32
    %c0_i32_0 = arith.constant 0 : i32
    return %arg0, %arg1, %arg2, %c0_i32 : i32, i32, i32, i32
  }
}

module attributes {stable_mosaic.version = 11 : i64} {
  func.func @_attn_out_kernel(%arg0: i32, %arg1: i32, %arg2: memref<1x4x16x8xbf16, #tpu.memory_space<vmem>>, %arg3: memref<32x32xbf16, #tpu.memory_space<vmem>>, %arg4: memref<1x32xf32, #tpu.memory_space<vmem>>, %arg5: memref<1x16x32xbf16, #tpu.memory_space<vmem>>, %arg6: memref<1x16x32xbf16, #tpu.memory_space<vmem>>) attributes {dimension_semantics = [#tpu.dimension_semantics<parallel>, #tpu.dimension_semantics<parallel>], iteration_bounds = array<i64: 2, 1>, scalar_prefetch = 0 : i64, scratch_operands = 0 : i64, tpu.core_type = #tpu.core_type<tc>, window_params = [{transform_indices = @transform_0, window_bounds = array<i64: 1, 4, 16, 8>}, {pipeline_mode = #tpu.pipeline_mode<synchronous>, transform_indices = @transform_1, window_bounds = array<i64: 32, 32>}, {pipeline_mode = #tpu.pipeline_mode<synchronous>, transform_indices = @transform_2, window_bounds = array<i64: 1, 32>}, {transform_indices = @transform_3, window_bounds = array<i64: 1, 16, 32>}, {transform_indices = @transform_4, window_bounds = array<i64: 1, 16, 32>}]} {
    %c0 = arith.constant 0 : index
    %c0_0 = arith.constant 0 : index
    %c0_1 = arith.constant 0 : index
    %0 = vector.load %arg5[%c0, %c0_0, %c0_1] : memref<1x16x32xbf16, #tpu.memory_space<vmem>>, vector<1x16x32xbf16>
    %1 = vector.shape_cast %0 : vector<1x16x32xbf16> to vector<16x32xbf16>
    %2 = arith.extf %1 : vector<16x32xbf16> to vector<16x32xf32>
    %c0_2 = arith.constant 0 : index
    %c0_3 = arith.constant 0 : index
    %3 = vector.load %arg4[%c0_2, %c0_3] : memref<1x32xf32, #tpu.memory_space<vmem>>, vector<1x32xf32>
    %4 = vector.broadcast %3 : vector<1x32xf32> to vector<16x32xf32>
    %5 = arith.addf %2, %4 : vector<16x32xf32>
    %c0_4 = arith.constant 0 : index
    %c0_5 = arith.constant 0 : index
    %c0_6 = arith.constant 0 : index
    %c0_7 = arith.constant 0 : index
    %6 = vector.load %arg2[%c0_4, %c0_5, %c0_6, %c0_7] : memref<1x4x16x8xbf16, #tpu.memory_space<vmem>>, vector<1x1x16x8xbf16>
    %7 = vector.shape_cast %6 : vector<1x1x16x8xbf16> to vector<16x8xbf16>
    %c0_8 = arith.constant 0 : index
    %c0_9 = arith.constant 0 : index
    %8 = vector.load %arg3[%c0_8, %c0_9] : memref<32x32xbf16, #tpu.memory_space<vmem>>, vector<8x32xbf16>
    %cst = arith.constant dense<0.000000e+00> : vector<16x32xf32>
    %9 = tpu.matmul %7, %8, %cst {dimension_numbers = #tpu.dot_dimension_numbers<[1], [0], [0], [1], [0, 0, 1, 1], [], []>} : vector<16x8xbf16>, vector<8x32xbf16>, vector<16x32xf32> -> vector<16x32xf32>
    %10 = arith.addf %5, %9 : vector<16x32xf32>
    %c0_10 = arith.constant 0 : index
    %c1 = arith.constant 1 : index
    %c0_11 = arith.constant 0 : index
    %c0_12 = arith.constant 0 : index
    %11 = vector.load %arg2[%c0_10, %c1, %c0_11, %c0_12] : memref<1x4x16x8xbf16, #tpu.memory_space<vmem>>, vector<1x1x16x8xbf16>
    %12 = vector.shape_cast %11 : vector<1x1x16x8xbf16> to vector<16x8xbf16>
    %c8 = arith.constant 8 : index
    %c0_13 = arith.constant 0 : index
    %13 = vector.load %arg3[%c8, %c0_13] : memref<32x32xbf16, #tpu.memory_space<vmem>>, vector<8x32xbf16>
    %cst_14 = arith.constant dense<0.000000e+00> : vector<16x32xf32>
    %14 = tpu.matmul %12, %13, %cst_14 {dimension_numbers = #tpu.dot_dimension_numbers<[1], [0], [0], [1], [0, 0, 1, 1], [], []>} : vector<16x8xbf16>, vector<8x32xbf16>, vector<16x32xf32> -> vector<16x32xf32>
    %15 = arith.addf %10, %14 : vector<16x32xf32>
    %c0_15 = arith.constant 0 : index
    %c2 = arith.constant 2 : index
    %c0_16 = arith.constant 0 : index
    %c0_17 = arith.constant 0 : index
    %16 = vector.load %arg2[%c0_15, %c2, %c0_16, %c0_17] : memref<1x4x16x8xbf16, #tpu.memory_space<vmem>>, vector<1x1x16x8xbf16>
    %17 = vector.shape_cast %16 : vector<1x1x16x8xbf16> to vector<16x8xbf16>
    %c16 = arith.constant 16 : index
    %c0_18 = arith.constant 0 : index
    %18 = vector.load %arg3[%c16, %c0_18] : memref<32x32xbf16, #tpu.memory_space<vmem>>, vector<8x32xbf16>
    %cst_19 = arith.constant dense<0.000000e+00> : vector<16x32xf32>
    %19 = tpu.matmul %17, %18, %cst_19 {dimension_numbers = #tpu.dot_dimension_numbers<[1], [0], [0], [1], [0, 0, 1, 1], [], []>} : vector<16x8xbf16>, vector<8x32xbf16>, vector<16x32xf32> -> vector<16x32xf32>
    %20 = arith.addf %15, %19 : vector<16x32xf32>
    %c0_20 = arith.constant 0 : index
    %c3 = arith.constant 3 : index
    %c0_21 = arith.constant 0 : index
    %c0_22 = arith.constant 0 : index
    %21 = vector.load %arg2[%c0_20, %c3, %c0_21, %c0_22] : memref<1x4x16x8xbf16, #tpu.memory_space<vmem>>, vector<1x1x16x8xbf16>
    %22 = vector.shape_cast %21 : vector<1x1x16x8xbf16> to vector<16x8xbf16>
    %c24 = arith.constant 24 : index
    %c0_23 = arith.constant 0 : index
    %23 = vector.load %arg3[%c24, %c0_23] : memref<32x32xbf16, #tpu.memory_space<vmem>>, vector<8x32xbf16>
    %cst_24 = arith.constant dense<0.000000e+00> : vector<16x32xf32>
    %24 = tpu.matmul %22, %23, %cst_24 {dimension_numbers = #tpu.dot_dimension_numbers<[1], [0], [0], [1], [0, 0, 1, 1], [], []>} : vector<16x8xbf16>, vector<8x32xbf16>, vector<16x32xf32> -> vector<16x32xf32>
    %25 = arith.addf %20, %24 : vector<16x32xf32>
    %26 = arith.truncf %25 : vector<16x32xf32> to vector<16x32xbf16>
    %c0_25 = arith.constant 0 : index
    %c0_26 = arith.constant 0 : index
    %c0_27 = arith.constant 0 : index
    %27 = vector.load %arg6[%c0_25, %c0_26, %c0_27] : memref<1x16x32xbf16, #tpu.memory_space<vmem>>, vector<1x16x32xbf16>
    %28 = vector.shape_cast %27 : vector<1x16x32xbf16> to vector<16x32xbf16>
    %29 = vector.shape_cast %26 : vector<16x32xbf16> to vector<1x16x32xbf16>
    tpu.vector_store %arg6[%c0_25, %c0_26, %c0_27], %29 {strides = array<i32>} : memref<1x16x32xbf16, #tpu.memory_space<vmem>>, vector<1x16x32xbf16>,
    return
  }
  func.func @transform_0(%arg0: i32, %arg1: i32) -> (i32, i32, i32, i32) {
    %c0_i32 = arith.constant 0 : i32
    %c0_i32_0 = arith.constant 0 : i32
    %c0_i32_1 = arith.constant 0 : i32
    return %arg0, %c0_i32, %arg1, %c0_i32_0 : i32, i32, i32, i32
  }
  func.func @transform_1(%arg0: i32, %arg1: i32) -> (i32, i32) {
    %c0_i32 = arith.constant 0 : i32
    %c0_i32_0 = arith.constant 0 : i32
    %c0_i32_1 = arith.constant 0 : i32
    return %c0_i32, %c0_i32_0 : i32, i32
  }
  func.func @transform_2(%arg0: i32, %arg1: i32) -> (i32, i32) {
    %c0_i32 = arith.constant 0 : i32
    %c0_i32_0 = arith.constant 0 : i32
    %c0_i32_1 = arith.constant 0 : i32
    return %c0_i32, %c0_i32_0 : i32, i32
  }
  func.func @transform_3(%arg0: i32, %arg1: i32) -> (i32, i32, i32) {
    %c0_i32 = arith.constant 0 : i32
    %c0_i32_0 = arith.constant 0 : i32
    return %arg0, %arg1, %c0_i32 : i32, i32, i32
  }
  func.func @transform_4(%arg0: i32, %arg1: i32) -> (i32, i32, i32) {
    %c0_i32 = arith.constant 0 : i32
    %c0_i32_0 = arith.constant 0 : i32
    return %arg0, %arg1, %c0_i32 : i32, i32, i32
  }
}

module attributes {stable_mosaic.version = 11 : i64} {
  func.func @_fused_linear_kernel(%arg0: i32, %arg1: memref<32x32xbf16, #tpu.memory_space<vmem>>, %arg2: memref<1x32xf32, #tpu.memory_space<vmem>>, %arg3: memref<1x32xf32, #tpu.memory_space<vmem>>, %arg4: memref<32x32xbf16, #tpu.memory_space<vmem>>, %arg5: memref<1x32xf32, #tpu.memory_space<vmem>>, %arg6: memref<32x32xbf16, #tpu.memory_space<vmem>>) attributes {dimension_semantics = [#tpu.dimension_semantics<parallel>], iteration_bounds = array<i64: 1>, scalar_prefetch = 0 : i64, scratch_operands = 0 : i64, tpu.core_type = #tpu.core_type<tc>, window_params = [{transform_indices = @transform_0, window_bounds = array<i64: 32, 32>}, {pipeline_mode = #tpu.pipeline_mode<synchronous>, transform_indices = @transform_1, window_bounds = array<i64: 1, 32>}, {pipeline_mode = #tpu.pipeline_mode<synchronous>, transform_indices = @transform_2, window_bounds = array<i64: 1, 32>}, {pipeline_mode = #tpu.pipeline_mode<synchronous>, transform_indices = @transform_3, window_bounds = array<i64: 32, 32>}, {pipeline_mode = #tpu.pipeline_mode<synchronous>, transform_indices = @transform_4, window_bounds = array<i64: 1, 32>}, {transform_indices = @transform_5, window_bounds = array<i64: 32, 32>}]} {
    %c0 = arith.constant 0 : index
    %c0_0 = arith.constant 0 : index
    %0 = vector.load %arg1[%c0, %c0_0] : memref<32x32xbf16, #tpu.memory_space<vmem>>, vector<32x32xbf16>
    %1 = arith.extf %0 : vector<32x32xbf16> to vector<32x32xf32>
    %c0_1 = arith.constant 0 : index
    %c0_2 = arith.constant 0 : index
    %2 = vector.load %arg2[%c0_1, %c0_2] : memref<1x32xf32, #tpu.memory_space<vmem>>, vector<1x32xf32>
    %c0_3 = arith.constant 0 : index
    %c0_4 = arith.constant 0 : index
    %3 = vector.load %arg3[%c0_3, %c0_4] : memref<1x32xf32, #tpu.memory_space<vmem>>, vector<1x32xf32>
    %cst = arith.constant dense<0.000000e+00> : vector<32xf32>
    %4 = vector.multi_reduction <add>, %1, %cst [1] : vector<32x32xf32> to vector<32xf32>
    %5 = vector.shape_cast %4 : vector<32xf32> to vector<32x1xf32>
    %cst_5 = arith.constant 3.200000e+01 : f32
    %6 = vector.broadcast %cst_5 : f32 to vector<32x1xf32>
    %7 = arith.divf %5, %6 : vector<32x1xf32>
    %8 = vector.broadcast %7 : vector<32x1xf32> to vector<32x32xf32>
    %9 = arith.subf %1, %8 : vector<32x32xf32>
    %10 = arith.mulf %9, %9 : vector<32x32xf32>
    %cst_6 = arith.constant dense<0.000000e+00> : vector<32xf32>
    %11 = vector.multi_reduction <add>, %10, %cst_6 [1] : vector<32x32xf32> to vector<32xf32>
    %12 = vector.shape_cast %11 : vector<32xf32> to vector<32x1xf32>
    %cst_7 = arith.constant 3.200000e+01 : f32
    %13 = vector.broadcast %cst_7 : f32 to vector<32x1xf32>
    %14 = arith.divf %12, %13 : vector<32x1xf32>
    %15 = vector.broadcast %7 : vector<32x1xf32> to vector<32x32xf32>
    %16 = arith.subf %1, %15 : vector<32x32xf32>
    %cst_8 = arith.constant 9.99999996E-13 : f32
    %17 = vector.broadcast %cst_8 : f32 to vector<32x1xf32>
    %18 = arith.addf %14, %17 : vector<32x1xf32>
    %19 = math.rsqrt %18 : vector<32x1xf32>
    %20 = vector.broadcast %19 : vector<32x1xf32> to vector<32x32xf32>
    %21 = arith.mulf %16, %20 : vector<32x32xf32>
    %22 = vector.broadcast %2 : vector<1x32xf32> to vector<32x32xf32>
    %23 = arith.mulf %21, %22 : vector<32x32xf32>
    %24 = vector.broadcast %3 : vector<1x32xf32> to vector<32x32xf32>
    %25 = arith.addf %23, %24 : vector<32x32xf32>
    %26 = arith.truncf %25 : vector<32x32xf32> to vector<32x32xbf16>
    %c0_9 = arith.constant 0 : index
    %c0_10 = arith.constant 0 : index
    %27 = vector.load %arg4[%c0_9, %c0_10] : memref<32x32xbf16, #tpu.memory_space<vmem>>, vector<32x32xbf16>
    %cst_11 = arith.constant dense<0.000000e+00> : vector<32x32xf32>
    %28 = tpu.matmul %26, %27, %cst_11 {dimension_numbers = #tpu.dot_dimension_numbers<[1], [0], [0], [1], [0, 0, 1, 1], [], []>} : vector<32x32xbf16>, vector<32x32xbf16>, vector<32x32xf32> -> vector<32x32xf32>
    %c0_12 = arith.constant 0 : index
    %c0_13 = arith.constant 0 : index
    %29 = vector.load %arg5[%c0_12, %c0_13] : memref<1x32xf32, #tpu.memory_space<vmem>>, vector<1x32xf32>
    %30 = vector.broadcast %29 : vector<1x32xf32> to vector<32x32xf32>
    %31 = arith.addf %28, %30 : vector<32x32xf32>
    %cst_14 = arith.constant 5.000000e-01 : f32
    %32 = vector.broadcast %cst_14 : f32 to vector<32x32xf32>
    %33 = arith.mulf %32, %31 : vector<32x32xf32>
    %cst_15 = arith.constant 0.707106769 : f32
    %34 = vector.broadcast %cst_15 : f32 to vector<32x32xf32>
    %35 = arith.mulf %31, %34 : vector<32x32xf32>
    %36 = math.erf %35 : vector<32x32xf32>
    %cst_16 = arith.constant 1.000000e+00 : f32
    %37 = vector.broadcast %cst_16 : f32 to vector<32x32xf32>
    %38 = arith.addf %37, %36 : vector<32x32xf32>
    %39 = arith.mulf %33, %38 : vector<32x32xf32>
    %40 = arith.truncf %39 : vector<32x32xf32> to vector<32x32xbf16>
    %c0_17 = arith.constant 0 : index
    %c0_18 = arith.constant 0 : index
    %41 = vector.load %arg6[%c0_17, %c0_18] : memref<32x32xbf16, #tpu.memory_space<vmem>>, vector<32x32xbf16>
    tpu.vector_store %arg6[%c0_17, %c0_18], %40 {strides = array<i32>} : memref<32x32xbf16, #tpu.memory_space<vmem>>, vector<32x32xbf16>,
    return
  }
  func.func @transform_0(%arg0: i32) -> (i32, i32) {
    %c0_i32 = arith.constant 0 : i32
    %c0_i32_0 = arith.constant 0 : i32
    return %arg0, %c0_i32 : i32, i32
  }
  func.func @transform_1(%arg0: i32) -> (i32, i32) {
    %c0_i32 = arith.constant 0 : i32
    %c0_i32_0 = arith.constant 0 : i32
    %c0_i32_1 = arith.constant 0 : i32
    return %c0_i32, %c0_i32_0 : i32, i32
  }
  func.func @transform_2(%arg0: i32) -> (i32, i32) {
    %c0_i32 = arith.constant 0 : i32
    %c0_i32_0 = arith.constant 0 : i32
    %c0_i32_1 = arith.constant 0 : i32
    return %c0_i32, %c0_i32_0 : i32, i32
  }
  func.func @transform_3(%arg0: i32) -> (i32, i32) {
    %c0_i32 = arith.constant 0 : i32
    %c0_i32_0 = arith.constant 0 : i32
    %c0_i32_1 = arith.constant 0 : i32
    return %c0_i32, %c0_i32_0 : i32, i32
  }
  func.func @transform_4(%arg0: i32) -> (i32, i32) {
    %c0_i32 = arith.constant 0 : i32
    %c0_i32_0 = arith.constant 0 : i32
    %c0_i32_1 = arith.constant 0 : i32
    return %c0_i32, %c0_i32_0 : i32, i32
  }
  func.func @transform_5(%arg0: i32) -> (i32, i32) {
    %c0_i32 = arith.constant 0 : i32
    %c0_i32_0 = arith.constant 0 : i32
    return %arg0, %c0_i32 : i32, i32
  }
}

module attributes {stable_mosaic.version = 11 : i64} {
  func.func @_ffn_kernel(%arg0: i32, %arg1: i32, %arg2: memref<32x32xbf16, #tpu.memory_space<vmem>>, %arg3: memref<1x32xf32, #tpu.memory_space<vmem>>, %arg4: memref<1x32xf32, #tpu.memory_space<vmem>>, %arg5: memref<32x64xbf16, #tpu.memory_space<vmem>>, %arg6: memref<1x64xf32, #tpu.memory_space<vmem>>, %arg7: memref<64x32xbf16, #tpu.memory_space<vmem>>, %arg8: memref<1x32xf32, #tpu.memory_space<vmem>>, %arg9: memref<32x32xbf16, #tpu.memory_space<vmem>>, %arg10: memref<32x32xbf16, #tpu.memory_space<vmem>>, %arg11: memref<32x32xf32, #tpu.memory_space<vmem>>) attributes {dimension_semantics = [#tpu.dimension_semantics<parallel>, #tpu.dimension_semantics<arbitrary>], iteration_bounds = array<i64: 1, 1>, scalar_prefetch = 0 : i64, scratch_operands = 2 : i64, tpu.core_type = #tpu.core_type<tc>, window_params = [{transform_indices = @transform_0, window_bounds = array<i64: 32, 32>}, {pipeline_mode = #tpu.pipeline_mode<synchronous>, transform_indices = @transform_1, window_bounds = array<i64: 1, 32>}, {pipeline_mode = #tpu.pipeline_mode<synchronous>, transform_indices = @transform_2, window_bounds = array<i64: 1, 32>}, {transform_indices = @transform_3, window_bounds = array<i64: 32, 64>}, {transform_indices = @transform_4, window_bounds = array<i64: 1, 64>}, {transform_indices = @transform_5, window_bounds = array<i64: 64, 32>}, {pipeline_mode = #tpu.pipeline_mode<synchronous>, transform_indices = @transform_6, window_bounds = array<i64: 1, 32>}, {transform_indices = @transform_7, window_bounds = array<i64: 32, 32>}]} {
    %c0_i32 = arith.constant 0 : i32
    %0 = arith.cmpi eq, %arg1, %c0_i32 : i32
    %1 = arith.extui %0 : i1 to i32
    %c0_i32_0 = arith.constant 0 : i32
    %2 = arith.cmpi ne, %1, %c0_i32_0 : i32
    scf.if %2 {
      %c0_18 = arith.constant 0 : index
      %c0_19 = arith.constant 0 : index
      %26 = vector.load %arg2[%c0_18, %c0_19] : memref<32x32xbf16, #tpu.memory_space<vmem>>, vector<32x32xbf16>
      %27 = arith.extf %26 : vector<32x32xbf16> to vector<32x32xf32>
      %c0_20 = arith.constant 0 : index
      %c0_21 = arith.constant 0 : index
      %28 = vector.load %arg3[%c0_20, %c0_21] : memref<1x32xf32, #tpu.memory_space<vmem>>, vector<1x32xf32>
      %c0_22 = arith.constant 0 : index
      %c0_23 = arith.constant 0 : index
      %29 = vector.load %arg4[%c0_22, %c0_23] : memref<1x32xf32, #tpu.memory_space<vmem>>, vector<1x32xf32>
      %cst_24 = arith.constant dense<0.000000e+00> : vector<32xf32>
      %30 = vector.multi_reduction <add>, %27, %cst_24 [1] : vector<32x32xf32> to vector<32xf32>
      %31 = vector.shape_cast %30 : vector<32xf32> to vector<32x1xf32>
      %cst_25 = arith.constant 3.200000e+01 : f32
      %32 = vector.broadcast %cst_25 : f32 to vector<32x1xf32>
      %33 = arith.divf %31, %32 : vector<32x1xf32>
      %34 = vector.broadcast %33 : vector<32x1xf32> to vector<32x32xf32>
      %35 = arith.subf %27, %34 : vector<32x32xf32>
      %36 = arith.mulf %35, %35 : vector<32x32xf32>
      %cst_26 = arith.constant dense<0.000000e+00> : vector<32xf32>
      %37 = vector.multi_reduction <add>, %36, %cst_26 [1] : vector<32x32xf32> to vector<32xf32>
      %38 = vector.shape_cast %37 : vector<32xf32> to vector<32x1xf32>
      %cst_27 = arith.constant 3.200000e+01 : f32
      %39 = vector.broadcast %cst_27 : f32 to vector<32x1xf32>
      %40 = arith.divf %38, %39 : vector<32x1xf32>
      %41 = vector.broadcast %33 : vector<32x1xf32> to vector<32x32xf32>
      %42 = arith.subf %27, %41 : vector<32x32xf32>
      %cst_28 = arith.constant 9.99999974E-6 : f32
      %43 = vector.broadcast %cst_28 : f32 to vector<32x1xf32>
      %44 = arith.addf %40, %43 : vector<32x1xf32>
      %45 = math.rsqrt %44 : vector<32x1xf32>
      %46 = vector.broadcast %45 : vector<32x1xf32> to vector<32x32xf32>
      %47 = arith.mulf %42, %46 : vector<32x32xf32>
      %48 = vector.broadcast %28 : vector<1x32xf32> to vector<32x32xf32>
      %49 = arith.mulf %47, %48 : vector<32x32xf32>
      %50 = vector.broadcast %29 : vector<1x32xf32> to vector<32x32xf32>
      %51 = arith.addf %49, %50 : vector<32x32xf32>
      %52 = arith.truncf %51 : vector<32x32xf32> to vector<32x32xbf16>
      %c0_29 = arith.constant 0 : index
      %c0_30 = arith.constant 0 : index
      %53 = vector.load %arg10[%c0_29, %c0_30] : memref<32x32xbf16, #tpu.memory_space<vmem>>, vector<32x32xbf16>
      tpu.vector_store %arg10[%c0_29, %c0_30], %52 {strides = array<i32>} : memref<32x32xbf16, #tpu.memory_space<vmem>>, vector<32x32xbf16>,
      %c0_31 = arith.constant 0 : index
      %c0_32 = arith.constant 0 : index
      %54 = vector.load %arg8[%c0_31, %c0_32] : memref<1x32xf32, #tpu.memory_space<vmem>>, vector<1x32xf32>
      %55 = vector.broadcast %54 : vector<1x32xf32> to vector<32x32xf32>
      %56 = arith.addf %27, %55 : vector<32x32xf32>
      %c0_33 = arith.constant 0 : index
      %c0_34 = arith.constant 0 : index
      %57 = vector.load %arg11[%c0_33, %c0_34] : memref<32x32xf32, #tpu.memory_space<vmem>>, vector<32x32xf32>
      tpu.vector_store %arg11[%c0_33, %c0_34], %56 {strides = array<i32>} : memref<32x32xf32, #tpu.memory_space<vmem>>, vector<32x32xf32>,
    } else {
    }
    %c0 = arith.constant 0 : index
    %c0_1 = arith.constant 0 : index
    %3 = vector.load %arg10[%c0, %c0_1] : memref<32x32xbf16, #tpu.memory_space<vmem>>, vector<32x32xbf16>
    %c0_2 = arith.constant 0 : index
    %c0_3 = arith.constant 0 : index
    %4 = vector.load %arg5[%c0_2, %c0_3] : memref<32x64xbf16, #tpu.memory_space<vmem>>, vector<32x64xbf16>
    %cst = arith.constant dense<0.000000e+00> : vector<32x64xf32>
    %5 = tpu.matmul %3, %4, %cst {dimension_numbers = #tpu.dot_dimension_numbers<[1], [0], [0], [1], [0, 0, 1, 1], [], []>} : vector<32x32xbf16>, vector<32x64xbf16>, vector<32x64xf32> -> vector<32x64xf32>
    %c0_4 = arith.constant 0 : index
    %c0_5 = arith.constant 0 : index
    %6 = vector.load %arg6[%c0_4, %c0_5] : memref<1x64xf32, #tpu.memory_space<vmem>>, vector<1x64xf32>
    %7 = vector.broadcast %6 : vector<1x64xf32> to vector<32x64xf32>
    %8 = arith.addf %5, %7 : vector<32x64xf32>
    %cst_6 = arith.constant 5.000000e-01 : f32
    %9 = vector.broadcast %cst_6 : f32 to vector<32x64xf32>
    %10 = arith.mulf %9, %8 : vector<32x64xf32>
    %cst_7 = arith.constant 0.707106769 : f32
    %11 = vector.broadcast %cst_7 : f32 to vector<32x64xf32>
    %12 = arith.mulf %8, %11 : vector<32x64xf32>
    %13 = math.erf %12 : vector<32x64xf32>
    %cst_8 = arith.constant 1.000000e+00 : f32
    %14 = vector.broadcast %cst_8 : f32 to vector<32x64xf32>
    %15 = arith.addf %14, %13 : vector<32x64xf32>
    %16 = arith.mulf %10, %15 : vector<32x64xf32>
    %c0_9 = arith.constant 0 : index
    %c0_10 = arith.constant 0 : index
    %17 = vector.load %arg11[%c0_9, %c0_10] : memref<32x32xf32, #tpu.memory_space<vmem>>, vector<32x32xf32>
    %18 = arith.truncf %16 : vector<32x64xf32> to vector<32x64xbf16>
    %c0_11 = arith.constant 0 : index
    %c0_12 = arith.constant 0 : index
    %19 = vector.load %arg7[%c0_11, %c0_12] : memref<64x32xbf16, #tpu.memory_space<vmem>>, vector<64x32xbf16>
    %cst_13 = arith.constant dense<0.000000e+00> : vector<32x32xf32>
    %20 = tpu.matmul %18, %19, %cst_13 {dimension_numbers = #tpu.dot_dimension_numbers<[1], [0], [0], [1], [0, 0, 1, 1], [], []>} : vector<32x64xbf16>, vector<64x32xbf16>, vector<32x32xf32> -> vector<32x32xf32>
    %21 = arith.addf %17, %20 : vector<32x32xf32>
    %c0_14 = arith.constant 0 : index
    %c0_15 = arith.constant 0 : index
    %22 = vector.load %arg11[%c0_14, %c0_15] : memref<32x32xf32, #tpu.memory_space<vmem>>, vector<32x32xf32>
    tpu.vector_store %arg11[%c0_14, %c0_15], %21 {strides = array<i32>} : memref<32x32xf32, #tpu.memory_space<vmem>>, vector<32x32xf32>,
    %c0_i32_16 = arith.constant 0 : i32
    %23 = arith.cmpi eq, %arg1, %c0_i32_16 : i32
    %24 = arith.extui %23 : i1 to i32
    %c0_i32_17 = arith.constant 0 : i32
    %25 = arith.cmpi ne, %24, %c0_i32_17 : i32
    scf.if %25 {
      %c0_18 = arith.constant 0 : index
      %c0_19 = arith.constant 0 : index
      %26 = vector.load %arg11[%c0_18, %c0_19] : memref<32x32xf32, #tpu.memory_space<vmem>>, vector<32x32xf32>
      %27 = arith.truncf %26 : vector<32x32xf32> to vector<32x32xbf16>
      %c0_20 = arith.constant 0 : index
      %c0_21 = arith.constant 0 : index
      %28 = vector.load %arg9[%c0_20, %c0_21] : memref<32x32xbf16, #tpu.memory_space<vmem>>, vector<32x32xbf16>
      tpu.vector_store %arg9[%c0_20, %c0_21], %27 {strides = array<i32>} : memref<32x32xbf16, #tpu.memory_space<vmem>>, vector<32x32xbf16>,
    } else {
    }
    return
  }
  func.func @transform_0(%arg0: i32, %arg1: i32) -> (i32, i32) {
    %c0_i32 = arith.constant 0 : i32
    %c0_i32_0 = arith.constant 0 : i32
    return %arg0, %c0_i32 : i32, i32
  }
  func.func @transform_1(%arg0: i32, %arg1: i32) -> (i32, i32) {
    %c0_i32 = arith.constant 0 : i32
    %c0_i32_0 = arith.constant 0 : i32
    %c0_i32_1 = arith.constant 0 : i32
    return %c0_i32, %c0_i32_0 : i32, i32
  }
  func.func @transform_2(%arg0: i32, %arg1: i32) -> (i32, i32) {
    %c0_i32 = arith.constant 0 : i32
    %c0_i32_0 = arith.constant 0 : i32
    %c0_i32_1 = arith.constant 0 : i32
    return %c0_i32, %c0_i32_0 : i32, i32
  }
  func.func @transform_3(%arg0: i32, %arg1: i32) -> (i32, i32) {
    %c0_i32 = arith.constant 0 : i32
    %c0_i32_0 = arith.constant 0 : i32
    return %c0_i32, %arg1 : i32, i32
  }
  func.func @transform_4(%arg0: i32, %arg1: i32) -> (i32, i32) {
    %c0_i32 = arith.constant 0 : i32
    %c0_i32_0 = arith.constant 0 : i32
    return %c0_i32, %arg1 : i32, i32
  }
  func.func @transform_5(%arg0: i32, %arg1: i32) -> (i32, i32) {
    %c0_i32 = arith.constant 0 : i32
    %c0_i32_0 = arith.constant 0 : i32
    return %arg1, %c0_i32 : i32, i32
  }
  func.func @transform_6(%arg0: i32, %arg1: i32) -> (i32, i32) {
    %c0_i32 = arith.constant 0 : i32
    %c0_i32_0 = arith.constant 0 : i32
    %c0_i32_1 = arith.constant 0 : i32
    return %c0_i32, %c0_i32_0 : i32, i32
  }
  func.func @transform_7(%arg0: i32, %arg1: i32) -> (i32, i32) {
    %c0_i32 = arith.constant 0 : i32
    %c0_i32_0 = arith.constant 0 : i32
    return %arg0, %c0_i32 : i32, i32
  }
}

module attributes {stable_mosaic.version = 11 : i64} {
  func.func @_fused_linear_kernel(%arg0: i32, %arg1: memref<32x32xbf16, #tpu.memory_space<vmem>>, %arg2: memref<1x32xf32, #tpu.memory_space<vmem>>, %arg3: memref<1x32xf32, #tpu.memory_space<vmem>>, %arg4: memref<32x128xbf16, #tpu.memory_space<vmem>>, %arg5: memref<32x128xf32, #tpu.memory_space<vmem>>) attributes {dimension_semantics = [#tpu.dimension_semantics<parallel>], iteration_bounds = array<i64: 1>, scalar_prefetch = 0 : i64, scratch_operands = 0 : i64, tpu.core_type = #tpu.core_type<tc>, window_params = [{transform_indices = @transform_0, window_bounds = array<i64: 32, 32>}, {pipeline_mode = #tpu.pipeline_mode<synchronous>, transform_indices = @transform_1, window_bounds = array<i64: 1, 32>}, {pipeline_mode = #tpu.pipeline_mode<synchronous>, transform_indices = @transform_2, window_bounds = array<i64: 1, 32>}, {pipeline_mode = #tpu.pipeline_mode<synchronous>, transform_indices = @transform_3, window_bounds = array<i64: 32, 128>}, {transform_indices = @transform_4, window_bounds = array<i64: 32, 128>}]} {
    %c0 = arith.constant 0 : index
    %c0_0 = arith.constant 0 : index
    %0 = vector.load %arg1[%c0, %c0_0] : memref<32x32xbf16, #tpu.memory_space<vmem>>, vector<32x32xbf16>
    %1 = arith.extf %0 : vector<32x32xbf16> to vector<32x32xf32>
    %c0_1 = arith.constant 0 : index
    %c0_2 = arith.constant 0 : index
    %2 = vector.load %arg2[%c0_1, %c0_2] : memref<1x32xf32, #tpu.memory_space<vmem>>, vector<1x32xf32>
    %c0_3 = arith.constant 0 : index
    %c0_4 = arith.constant 0 : index
    %3 = vector.load %arg3[%c0_3, %c0_4] : memref<1x32xf32, #tpu.memory_space<vmem>>, vector<1x32xf32>
    %cst = arith.constant dense<0.000000e+00> : vector<32xf32>
    %4 = vector.multi_reduction <add>, %1, %cst [1] : vector<32x32xf32> to vector<32xf32>
    %5 = vector.shape_cast %4 : vector<32xf32> to vector<32x1xf32>
    %cst_5 = arith.constant 3.200000e+01 : f32
    %6 = vector.broadcast %cst_5 : f32 to vector<32x1xf32>
    %7 = arith.divf %5, %6 : vector<32x1xf32>
    %8 = vector.broadcast %7 : vector<32x1xf32> to vector<32x32xf32>
    %9 = arith.subf %1, %8 : vector<32x32xf32>
    %10 = arith.mulf %9, %9 : vector<32x32xf32>
    %cst_6 = arith.constant dense<0.000000e+00> : vector<32xf32>
    %11 = vector.multi_reduction <add>, %10, %cst_6 [1] : vector<32x32xf32> to vector<32xf32>
    %12 = vector.shape_cast %11 : vector<32xf32> to vector<32x1xf32>
    %cst_7 = arith.constant 3.200000e+01 : f32
    %13 = vector.broadcast %cst_7 : f32 to vector<32x1xf32>
    %14 = arith.divf %12, %13 : vector<32x1xf32>
    %15 = vector.broadcast %7 : vector<32x1xf32> to vector<32x32xf32>
    %16 = arith.subf %1, %15 : vector<32x32xf32>
    %cst_8 = arith.constant 9.99999996E-13 : f32
    %17 = vector.broadcast %cst_8 : f32 to vector<32x1xf32>
    %18 = arith.addf %14, %17 : vector<32x1xf32>
    %19 = math.rsqrt %18 : vector<32x1xf32>
    %20 = vector.broadcast %19 : vector<32x1xf32> to vector<32x32xf32>
    %21 = arith.mulf %16, %20 : vector<32x32xf32>
    %22 = vector.broadcast %2 : vector<1x32xf32> to vector<32x32xf32>
    %23 = arith.mulf %21, %22 : vector<32x32xf32>
    %24 = vector.broadcast %3 : vector<1x32xf32> to vector<32x32xf32>
    %25 = arith.addf %23, %24 : vector<32x32xf32>
    %26 = arith.truncf %25 : vector<32x32xf32> to vector<32x32xbf16>
    %c0_9 = arith.constant 0 : index
    %c0_10 = arith.constant 0 : index
    %27 = vector.load %arg4[%c0_9, %c0_10] : memref<32x128xbf16, #tpu.memory_space<vmem>>, vector<32x128xbf16>
    %cst_11 = arith.constant dense<0.000000e+00> : vector<32x128xf32>
    %28 = tpu.matmul %26, %27, %cst_11 {dimension_numbers = #tpu.dot_dimension_numbers<[1], [0], [0], [1], [0, 0, 1, 1], [], []>} : vector<32x32xbf16>, vector<32x128xbf16>, vector<32x128xf32> -> vector<32x128xf32>
    %c0_12 = arith.constant 0 : index
    %c0_13 = arith.constant 0 : index
    %29 = vector.load %arg5[%c0_12, %c0_13] : memref<32x128xf32, #tpu.memory_space<vmem>>, vector<32x128xf32>
    tpu.vector_store %arg5[%c0_12, %c0_13], %28 {strides = array<i32>} : memref<32x128xf32, #tpu.memory_space<vmem>>, vector<32x128xf32>,
    return
  }
  func.func @transform_0(%arg0: i32) -> (i32, i32) {
    %c0_i32 = arith.constant 0 : i32
    %c0_i32_0 = arith.constant 0 : i32
    return %arg0, %c0_i32 : i32, i32
  }
  func.func @transform_1(%arg0: i32) -> (i32, i32) {
    %c0_i32 = arith.constant 0 : i32
    %c0_i32_0 = arith.constant 0 : i32
    %c0_i32_1 = arith.constant 0 : i32
    return %c0_i32, %c0_i32_0 : i32, i32
  }
  func.func @transform_2(%arg0: i32) -> (i32, i32) {
    %c0_i32 = arith.constant 0 : i32
    %c0_i32_0 = arith.constant 0 : i32
    %c0_i32_1 = arith.constant 0 : i32
    return %c0_i32, %c0_i32_0 : i32, i32
  }
  func.func @transform_3(%arg0: i32) -> (i32, i32) {
    %c0_i32 = arith.constant 0 : i32
    %c0_i32_0 = arith.constant 0 : i32
    %c0_i32_1 = arith.constant 0 : i32
    return %c0_i32, %c0_i32_0 : i32, i32
  }
  func.func @transform_4(%arg0: i32) -> (i32, i32) {
    %c0_i32 = arith.constant 0 : i32
    %c0_i32_0 = arith.constant 0 : i32
    return %arg0, %c0_i32 : i32, i32
  }
}

</mosaic_0001>

<bundles_post_ra>
// kernel: mask_transformer_img_forward.13
= control target key start
LH: loop header
LB: loop body
LE: loop exit
PB: predicated region body
PF: predicated region fallthrough
CT: control target
= control target key end

     0   :  { %vm31_vm0 = vcmask 261120   ;;  %v238_v10 = vmov 32.0   ;;  %vm192_vm14 = vcmask 257024   ;;  %s332_s0 = inlined_call_operand.vmem [shape: bf16[32,32], index: 0, kind: input, shape index: {}]   ;;  %s333_s1 = inlined_call_operand.vmem [shape: f32[1,32], index: 1, kind: input, shape index: {}]   ;;  %s334_s2 = inlined_call_operand.vmem [shape: f32[1,32], index: 2, kind: input, shape index: {}]   ;;  %s335_s4 = inlined_call_operand.vmem [shape: f32[1,32], index: 4, kind: input, shape index: {}]   ;;  %s336_s3 = inlined_call_operand.vmem [shape: bf16[32,32], index: 3, kind: input, shape index: {}]   ;;  %s337_s5 = inlined_call_operand.vmem [shape: bf16[32,32], index: 5, kind: output, shape index: {}]  }
   0x1   :  { %v221_v0 = vld [vmem:[%s332_s0 + $0x8] sm:$0xff]   ;;  %v214_v1 = vld [vmem:[%s332_s0] sm:$0xff]   ;;  %228 = vrcp.f32 %v238_v10 }
   0x2   :  { %v219_v2 = vunpack.c.l.bf16 %v221_v0  ;;  %v215_v3 = vunpack.c.l.bf16 %v214_v1  ;;  %v220_v6 = vunpack.c.h.bf16 %v221_v0  ;;  %v216_v7 = vunpack.c.h.bf16 %v214_v1  ;;  %v212_v37 = vld [vmem:[%s336_s3 + $0x8] sm:$0xff]  ;;  %v211_v42 = vld [vmem:[%s336_s3] sm:$0xff] }
   0x3   :  { %175 = vmatpush.bf16.msra.mxu0 %v212_v37  ;;  %222 = vmatpush.bf16.msra.mxu1 %v212_v37 }
   0x4   :  { %v38_v4 = vsel %vm31_vm0, %v219_v2, 0.0  ;;  %v32_v5 = vsel %vm31_vm0, %v215_v3, 0.0  ;;  %v41_v8 = vsel %vm31_vm0, %v220_v6, 0.0  ;;  %v35_v9 = vsel %vm31_vm0, %v216_v7, 0.0 }
   0x5   :  { %39 = vadd.xlane.f32.xlu1 %v38_v4  ;;  %33 = vadd.xlane.f32.xlu0 %v32_v5 }
   0x7   :  { %v229_v11 = vpop.eup %228  ;;  %176 = vmatpush.bf16.msra.mxu0 %v211_v42  ;;  %223 = vmatpush.bf16.msra.mxu1 %v211_v42 }
   0x8   :  { %v45_v12 = vmul.f32 32.0, %v229_v11  ;;  %vm49_vm1 = vweird.f32 %v229_v11 }
   0xa   :  { %v46_v13 = vsub.f32 1.0, %v45_v12  ;;  %v225_v12 = vld [vmem:[%s333_s1] ss:$0 sm:$0xff] }
   0xc   :  { %v47_v14 = vmul.f32 %v229_v11, %v46_v13 }
   0xd   :  { %42 = vadd.xlane.f32.xlu1 %v41_v8  ;;  %36 = vadd.xlane.f32.xlu0 %v35_v9 }
   0xe   :  { %v48_v15 = vadd.f32 %v229_v11, %v47_v14 }
  0x10   :  { %v50_v16 = vsel %vm49_vm1, %v229_v11, %v48_v15 }
  0x78   :  { %v40_v17 = vpop.xlane.xlu1 %39  ;;  %v34_v18 = vpop.xlane.xlu0 %33 }
  0x79   :  { %v53_v19 = vmul.f32 %v50_v16, %v40_v17  ;;  %v51_v20 = vmul.f32 %v50_v16, %v34_v18 }
  0x7b   :  { %v279_v21 = vsub.f32 %v219_v2, %v53_v19  ;;  %v281_v22 = vsub.f32 %v215_v3, %v51_v20  ;;  %v226_v19 = vld [vmem:[%s334_s2] ss:$0 sm:$0xff] }
  0x7d   :  { %v61_v23 = vmul.f32 %v279_v21, %v279_v21  ;;  %v59_v24 = vmul.f32 %v281_v22, %v281_v22 }
  0x7f   :  { %v69_v25 = vsel %vm31_vm0, %v61_v23, 0.0  ;;  %v63_v26 = vsel %vm31_vm0, %v59_v24, 0.0 }
  0x80   :  { %v43_v27 = vpop.xlane.xlu1 %42  ;;  %70 = vadd.xlane.f32.xlu0 %v69_v25  ;;  %64 = vadd.xlane.f32.xlu2 %v63_v26  ;;  %v37_v28 = vpop.xlane.xlu0 %36 }
  0x81   :  { %v54_v29 = vmul.f32 %v50_v16, %v43_v27  ;;  %v52_v30 = vmul.f32 %v50_v16, %v37_v28 }
  0x83   :  { %v289_v31 = vsub.f32 %v220_v6, %v54_v29  ;;  %v291_v32 = vsub.f32 %v216_v7, %v52_v30 }
  0x85   :  { %v62_v33 = vmul.f32 %v289_v31, %v289_v31  ;;  %v60_v34 = vmul.f32 %v291_v32, %v291_v32 }
  0x87   :  { %v72_v35 = vsel %vm31_vm0, %v62_v33, 0.0  ;;  %v66_v36 = vsel %vm31_vm0, %v60_v34, 0.0 }
  0x88   :  { %73 = vadd.xlane.f32.xlu1 %v72_v35  ;;  %67 = vadd.xlane.f32.xlu2 %v66_v36 }
  0xf3   :  { %v65_v38 = vpop.xlane.xlu2 %64  ;;  %v71_v39 = vpop.xlane.xlu0 %70 }
  0xf4   :  { %v75_v40 = vmul.f32 %v65_v38, %v50_v16  ;;  %v77_v41 = vmul.f32 %v71_v39, %v50_v16 }
  0xf6   :  { %v79_v43 = vadd.f32 1e-12, %v75_v40  ;;  %v81_v44 = vadd.f32 1e-12, %v77_v41 }
  0xf8   :  { %230 = vrsqrt.f32 %v79_v43  ;;  %vm109_vm4 = vweird.f32 %v81_v44  ;;  %vm89_vm5 = vweird.f32 %v79_v43 }
  0xf9   :  { %232 = vrsqrt.f32 %v81_v44 }
  0xfb   :  { %v74_v45 = vpop.xlane.xlu1 %73  ;;  %v68_v46 = vpop.xlane.xlu2 %67 }
  0xfc   :  { %v78_v47 = vmul.f32 %v74_v45, %v50_v16  ;;  %v76_v48 = vmul.f32 %v68_v46, %v50_v16 }
  0xfe   :  { %v231_v49 = vpop.eup %230  ;;  %v82_v50 = vadd.f32 1e-12, %v78_v47  ;;  %v80_v51 = vadd.f32 1e-12, %v76_v48 }
  0xff   :  { %v233_v52 = vpop.eup %232  ;;  %v84_v53 = vmul.f32 %v231_v49, %v79_v43  ;;  %vm90_vm3 = vweird.f32 %v231_v49 }
 0x100   :  { %v104_v54 = vmul.f32 %v233_v52, %v81_v44  ;;  %234 = vrsqrt.f32 %v82_v50  ;;  %vm110_vm2 = vweird.f32 %v233_v52  ;;  %vm91_vm7 = vmor %vm89_vm5, %vm90_vm3  ;;  %vm119_vm10 = vweird.f32 %v82_v50 }
 0x101   :  { %v85_v55 = vmul.f32 %v231_v49, %v84_v53  ;;  %236 = vrsqrt.f32 %v80_v51  ;;  %vm111_vm6 = vmor %vm109_vm4, %vm110_vm2  ;;  %vm99_vm12 = vweird.f32 %v80_v51 }
 0x102   :  { %v105_v56 = vmul.f32 %v233_v52, %v104_v54 }
 0x103   :  { %v86_v57 = vmul.f32 0.5, %v85_v55 }
 0x104   :  { %v106_v58 = vmul.f32 0.5, %v105_v56 }
 0x105   :  { %v87_v59 = vsub.f32 1.5, %v86_v57 }
 0x106   :  { %v235_v60 = vpop.eup %234  ;;  %v107_v61 = vsub.f32 1.5, %v106_v58 }
 0x107   :  { %v237_v62 = vpop.eup %236  ;;  %v114_v63 = vmul.f32 %v235_v60, %v82_v50  ;;  %v88_v0 = vmul.f32 %v231_v49, %v87_v59  ;;  %vm120_vm8 = vweird.f32 %v235_v60 }
 0x108   :  { %v108_v1 = vmul.f32 %v233_v52, %v107_v61  ;;  %v94_v2 = vmul.f32 %v237_v62, %v80_v51  ;;  %vm100_vm9 = vweird.f32 %v237_v62  ;;  %vm121_vm11 = vmor %vm119_vm10, %vm120_vm8 }
 0x109   :  { %v115_v3 = vmul.f32 %v235_v60, %v114_v63  ;;  %v92_v7 = vsel %vm91_vm7, %v231_v49, %v88_v0  ;;  %vm101_vm13 = vmor %vm99_vm12, %vm100_vm9 }
 0x10a   :  { %v95_v4 = vmul.f32 %v237_v62, %v94_v2  ;;  %v112_v5 = vsel %vm111_vm6, %v233_v52, %v108_v1  ;;  %v123_v13 = vmul.f32 %v92_v7, %v281_v22 }
 0x10b   :  { %v116_v6 = vmul.f32 0.5, %v115_v3  ;;  %v125_v10 = vmul.f32 %v112_v5, %v279_v21 }
 0x10c   :  { %v96_v8 = vmul.f32 0.5, %v95_v4  ;;  %v130_v23 = vmul.f32 %v225_v12, %v123_v13 }
 0x10d   :  { %v117_v9 = vsub.f32 1.5, %v116_v6  ;;  %v132_v20 = vmul.f32 %v225_v12, %v125_v10 }
 0x10e   :  { %v97_v11 = vsub.f32 1.5, %v96_v8  ;;  %v137_v27 = vadd.f32 %v226_v19, %v130_v23 }
 0x10f   :  { %v118_v14 = vmul.f32 %v235_v60, %v117_v9  ;;  %v139_v25 = vadd.f32 %v226_v19, %v132_v20 }
 0x110   :  { %v98_v15 = vmul.f32 %v237_v62, %v97_v11 }
 0x111   :  { %v122_v16 = vsel %vm121_vm11, %v235_v60, %v118_v14 }
 0x112   :  { %v126_v17 = vmul.f32 %v122_v16, %v289_v31  ;;  %v102_v18 = vsel %vm101_vm13, %v237_v62, %v98_v15  ;;  %v227_v31 = vld [vmem:[%s335_s4] ss:$0 sm:$0xff] }
 0x113   :  { %v124_v21 = vmul.f32 %v102_v18, %v291_v32 }
 0x114   :  { %v133_v24 = vmul.f32 %v225_v12, %v126_v17 }
 0x115   :  { %v131_v22 = vmul.f32 %v225_v12, %v124_v21 }
 0x116   :  { %v140_v26 = vadd.f32 %v226_v19, %v133_v24 }
 0x117   :  { %v138_v28 = vadd.f32 %v226_v19, %v131_v22 }
 0x118   :  { %v142_v29 = vpack.c.bf16 %v140_v26, %v139_v25 }
 0x119   :  { %v141_v30 = vpack.c.bf16 %v138_v28, %v137_v27 }
 0x11a   :  { %210 = vmatmul.msk.bf16.vlgmr.msra.gmra.mxu1 %vm31_vm0, %v142_v29 }
 0x11b   :  { %209 = vmatmul.msk.bf16.vlgmr.msra.gmra.mxu0 %vm31_vm0, %v141_v30 }
 0x197   :  { %v183_v33 = vpop.f32.mrf.mxu1 }
 0x198   :  { %v178_v34 = vpop.f32.mrf.mxu0  ;;  %v184_v32 = vadd.f32 %v227_v31, %v183_v33 }
 0x199   :  { %v179_v35 = vadd.f32 %v227_v31, %v178_v34 }
 0x19a   :  { %v190_v36 = vpack.c.bf16 %v184_v32, %v184_v32 }
 0x19b   :  { %v188_v37 = vpack.c.bf16 %v179_v35, %v179_v35 }
 0x19c   :  { %195 = vst.msk [vmem:[%s337_s5 + $0x8] sm:$0xf] %vm192_vm14, %v190_v36 }
 0x19d   :  { %193 = vst.msk [vmem:[%s337_s5] sm:$0xf] %vm192_vm14, %v188_v37 }
 0x19f   :  { %v185_v38 = vpop.f32.mrf.mxu1 }
 0x1a0   :  { %v180_v39 = vpop.f32.mrf.mxu0  ;;  %v186_v40 = vadd.f32 %v227_v31, %v185_v38 }
 0x1a1   :  { %v181_v41 = vadd.f32 %v227_v31, %v180_v39 }
 0x1a2   :  { %v191_v42 = vpack.c.bf16 %v186_v40, %v186_v40 }
 0x1a3   :  { %v189_v43 = vpack.c.bf16 %v181_v41, %v181_v41 }
 0x1a4   :  { %196 = vst.msk [vmem:[%s337_s5 + $0xc] sm:$0xf] %vm192_vm14, %v191_v42 }
 0x1a5   :  { %194 = vst.msk [vmem:[%s337_s5 + $0x4] sm:$0xf] %vm192_vm14, %v189_v43 }

// kernel: mask_transformer_img_forward.12
= control target key start
LH: loop header
LB: loop body
LE: loop exit
PB: predicated region body
PF: predicated region fallthrough
CT: control target
= control target key end

     0   :  { %vm27_vm0 = vcmask 261120   ;;  %v413_v8 = vmov 32.0   ;;  %s596_s0 = inlined_call_operand.vmem [shape: f32[32,32], index: 0, kind: input, shape index: {}]   ;;  %s597_s1 = inlined_call_operand.vmem [shape: f32[1,32], index: 1, kind: input, shape index: {}]   ;;  %s598_s2 = inlined_call_operand.vmem [shape: f32[1,32], index: 2, kind: input, shape index: {}]   ;;  %s599_s4 = inlined_call_operand.vmem [shape: f32[1,32], index: 4, kind: input, shape index: {}]   ;;  %s600_s3 = inlined_call_operand.vmem [shape: bf16[32,32], index: 3, kind: input, shape index: {}]   ;;  %s601_s5 = inlined_call_operand.vmem [shape: bf16[32,32], index: 5, kind: output, shape index: {}]  }
   0x1   :  { %v23_v0 = vld [vmem:[%s596_s0 + $0x10] sm:$0xff]  ;;  %v21_v1 = vld [vmem:[%s596_s0] sm:$0xff]  ;;  %v24_v4 = vld [vmem:[%s596_s0 + $0x18] sm:$0xff]  ;;  %395 = vrcp.f32 %v413_v8 }
   0x2   :  { %v34_v2 = vsel %vm27_vm0, %v23_v0, 0.0  ;;  %v28_v3 = vsel %vm27_vm0, %v21_v1, 0.0  ;;  %v22_v5 = vld [vmem:[%s596_s0 + $0x8] sm:$0xff]  ;;  %v37_v6 = vsel %vm27_vm0, %v24_v4, 0.0  ;;  %v387_v40 = vld [vmem:[%s600_s3] sm:$0xff] }
   0x3   :  { %35 = vadd.xlane.f32.xlu1 %v34_v2  ;;  %29 = vadd.xlane.f32.xlu0 %v28_v3  ;;  %v31_v7 = vsel %vm27_vm0, %v22_v5, 0.0  ;;  %v388_v35 = vld [vmem:[%s600_s3 + $0x8] sm:$0xff] }
   0x4   :  { %171 = vmatpush.bf16.msra.mxu0 %v388_v35  ;;  %389 = vmatpush.bf16.msra.mxu1 %v388_v35 }
   0x7   :  { %v396_v9 = vpop.eup %395 }
   0x8   :  { %v41_v10 = vmul.f32 32.0, %v396_v9  ;;  %vm45_vm1 = vweird.f32 %v396_v9  ;;  %172 = vmatpush.bf16.msra.mxu0 %v387_v40  ;;  %390 = vmatpush.bf16.msra.mxu1 %v387_v40 }
   0xa   :  { %v42_v11 = vsub.f32 1.0, %v41_v10  ;;  %v392_v10 = vld [vmem:[%s597_s1] ss:$0 sm:$0xff] }
   0xb   :  { %38 = vadd.xlane.f32.xlu1 %v37_v6  ;;  %32 = vadd.xlane.f32.xlu0 %v31_v7 }
   0xc   :  { %v43_v12 = vmul.f32 %v396_v9, %v42_v11 }
   0xe   :  { %v44_v13 = vadd.f32 %v396_v9, %v43_v12 }
  0x10   :  { %v46_v14 = vsel %vm45_vm1, %v396_v9, %v44_v13 }
  0x76   :  { %v36_v15 = vpop.xlane.xlu1 %35  ;;  %v30_v16 = vpop.xlane.xlu0 %29 }
  0x77   :  { %v49_v17 = vmul.f32 %v46_v14, %v36_v15  ;;  %v47_v18 = vmul.f32 %v46_v14, %v30_v16 }
  0x79   :  { %v460_v19 = vsub.f32 %v23_v0, %v49_v17  ;;  %v462_v20 = vsub.f32 %v21_v1, %v47_v18  ;;  %v393_v17 = vld [vmem:[%s598_s2] ss:$0 sm:$0xff] }
  0x7b   :  { %v57_v21 = vmul.f32 %v460_v19, %v460_v19  ;;  %v55_v22 = vmul.f32 %v462_v20, %v462_v20 }
  0x7d   :  { %v65_v23 = vsel %vm27_vm0, %v57_v21, 0.0  ;;  %v59_v24 = vsel %vm27_vm0, %v55_v22, 0.0 }
  0x7e   :  { %v39_v25 = vpop.xlane.xlu1 %38  ;;  %66 = vadd.xlane.f32.xlu0 %v65_v23  ;;  %60 = vadd.xlane.f32.xlu2 %v59_v24  ;;  %v33_v26 = vpop.xlane.xlu0 %32 }
  0x7f   :  { %v50_v27 = vmul.f32 %v46_v14, %v39_v25  ;;  %v48_v28 = vmul.f32 %v46_v14, %v33_v26 }
  0x81   :  { %v470_v29 = vsub.f32 %v24_v4, %v50_v27  ;;  %v472_v30 = vsub.f32 %v22_v5, %v48_v28 }
  0x83   :  { %v58_v31 = vmul.f32 %v470_v29, %v470_v29  ;;  %v56_v32 = vmul.f32 %v472_v30, %v472_v30 }
  0x85   :  { %v68_v33 = vsel %vm27_vm0, %v58_v31, 0.0  ;;  %v62_v34 = vsel %vm27_vm0, %v56_v32, 0.0 }
  0x86   :  { %69 = vadd.xlane.f32.xlu1 %v68_v33  ;;  %63 = vadd.xlane.f32.xlu2 %v62_v34 }
  0xf1   :  { %v61_v36 = vpop.xlane.xlu2 %60  ;;  %v67_v37 = vpop.xlane.xlu0 %66 }
  0xf2   :  { %v71_v38 = vmul.f32 %v61_v36, %v46_v14  ;;  %v73_v39 = vmul.f32 %v67_v37, %v46_v14 }
  0xf4   :  { %v75_v41 = vadd.f32 1e-12, %v71_v38  ;;  %v77_v42 = vadd.f32 1e-12, %v73_v39 }
  0xf6   :  { %397 = vrsqrt.f32 %v75_v41  ;;  %vm105_vm4 = vweird.f32 %v77_v42  ;;  %vm85_vm5 = vweird.f32 %v75_v41 }
  0xf7   :  { %399 = vrsqrt.f32 %v77_v42 }
  0xf9   :  { %v70_v43 = vpop.xlane.xlu1 %69  ;;  %v64_v44 = vpop.xlane.xlu2 %63 }
  0xfa   :  { %v74_v45 = vmul.f32 %v70_v43, %v46_v14  ;;  %v72_v46 = vmul.f32 %v64_v44, %v46_v14 }
  0xfc   :  { %v398_v47 = vpop.eup %397  ;;  %v78_v48 = vadd.f32 1e-12, %v74_v45  ;;  %v76_v49 = vadd.f32 1e-12, %v72_v46 }
  0xfd   :  { %v400_v50 = vpop.eup %399  ;;  %v80_v51 = vmul.f32 %v398_v47, %v75_v41  ;;  %vm86_vm3 = vweird.f32 %v398_v47 }
  0xfe   :  { %v100_v52 = vmul.f32 %v400_v50, %v77_v42  ;;  %401 = vrsqrt.f32 %v78_v48  ;;  %vm106_vm2 = vweird.f32 %v400_v50  ;;  %vm87_vm7 = vmor %vm85_vm5, %vm86_vm3  ;;  %vm115_vm10 = vweird.f32 %v78_v48 }
  0xff   :  { %v81_v53 = vmul.f32 %v398_v47, %v80_v51  ;;  %403 = vrsqrt.f32 %v76_v49  ;;  %vm107_vm6 = vmor %vm105_vm4, %vm106_vm2  ;;  %vm95_vm12 = vweird.f32 %v76_v49 }
 0x100   :  { %v101_v54 = vmul.f32 %v400_v50, %v100_v52 }
 0x101   :  { %v82_v55 = vmul.f32 0.5, %v81_v53 }
 0x102   :  { %v102_v56 = vmul.f32 0.5, %v101_v54 }
 0x103   :  { %v83_v57 = vsub.f32 1.5, %v82_v55 }
 0x104   :  { %v402_v58 = vpop.eup %401  ;;  %v103_v59 = vsub.f32 1.5, %v102_v56 }
 0x105   :  { %v404_v60 = vpop.eup %403  ;;  %v110_v61 = vmul.f32 %v402_v58, %v78_v48  ;;  %v84_v62 = vmul.f32 %v398_v47, %v83_v57  ;;  %vm116_vm8 = vweird.f32 %v402_v58 }
 0x106   :  { %v104_v63 = vmul.f32 %v400_v50, %v103_v59  ;;  %v90_v0 = vmul.f32 %v404_v60, %v76_v49  ;;  %vm96_vm9 = vweird.f32 %v404_v60  ;;  %vm117_vm11 = vmor %vm115_vm10, %vm116_vm8 }
 0x107   :  { %v111_v1 = vmul.f32 %v402_v58, %v110_v61  ;;  %v88_v5 = vsel %vm87_vm7, %v398_v47, %v84_v62  ;;  %vm97_vm13 = vmor %vm95_vm12, %vm96_vm9 }
 0x108   :  { %v91_v2 = vmul.f32 %v404_v60, %v90_v0  ;;  %v108_v3 = vsel %vm107_vm6, %v400_v50, %v104_v63  ;;  %v119_v11 = vmul.f32 %v88_v5, %v462_v20  ;;  %vm364_vm6 = vcmask 257024  }
 0x109   :  { %v112_v4 = vmul.f32 0.5, %v111_v1  ;;  %v121_v8 = vmul.f32 %v108_v3, %v460_v19 }
 0x10a   :  { %v92_v6 = vmul.f32 0.5, %v91_v2  ;;  %v126_v21 = vmul.f32 %v392_v10, %v119_v11 }
 0x10b   :  { %v113_v7 = vsub.f32 1.5, %v112_v4  ;;  %v128_v18 = vmul.f32 %v392_v10, %v121_v8 }
 0x10c   :  { %v93_v9 = vsub.f32 1.5, %v92_v6  ;;  %v133_v25 = vadd.f32 %v393_v17, %v126_v21 }
 0x10d   :  { %v114_v12 = vmul.f32 %v402_v58, %v113_v7  ;;  %v135_v23 = vadd.f32 %v393_v17, %v128_v18 }
 0x10e   :  { %v94_v13 = vmul.f32 %v404_v60, %v93_v9 }
 0x10f   :  { %v118_v14 = vsel %vm117_vm11, %v402_v58, %v114_v12 }
 0x110   :  { %v122_v15 = vmul.f32 %v118_v14, %v470_v29  ;;  %v98_v16 = vsel %vm97_vm13, %v404_v60, %v94_v13  ;;  %v394_v29 = vld [vmem:[%s599_s4] ss:$0 sm:$0xff] }
 0x111   :  { %v120_v19 = vmul.f32 %v98_v16, %v472_v30 }
 0x112   :  { %v129_v22 = vmul.f32 %v392_v10, %v122_v15 }
 0x113   :  { %v127_v20 = vmul.f32 %v392_v10, %v120_v19 }
 0x114   :  { %v136_v24 = vadd.f32 %v393_v17, %v129_v22 }
 0x115   :  { %v134_v26 = vadd.f32 %v393_v17, %v127_v20 }
 0x116   :  { %v138_v27 = vpack.c.bf16 %v136_v24, %v135_v23 }
 0x117   :  { %v137_v28 = vpack.c.bf16 %v134_v26, %v133_v25 }
 0x118   :  { %382 = vmatmul.msk.bf16.vlgmr.msra.gmra.mxu1 %vm27_vm0, %v138_v27 }
 0x119   :  { %381 = vmatmul.msk.bf16.vlgmr.msra.gmra.mxu0 %vm27_vm0, %v137_v28 }
 0x195   :  { %v179_v31 = vpop.f32.mrf.mxu1 }
 0x196   :  { %v174_v32 = vpop.f32.mrf.mxu0  ;;  %v501_v30 = vadd.f32 %v394_v29, %v179_v31 }
 0x197   :  { %v503_v33 = vadd.f32 %v394_v29, %v174_v32 }
 0x198   :  { %v506_v34 = vmul.f32 0.70710677, %v501_v30 }
 0x199   :  { %v509_v35 = vmul.f32 0.70710677, %v503_v33 }
 0x19a   :  { %v272_v36 = vmul.f32 %v506_v34, %v506_v34 }
 0x19b   :  { %v192_v37 = vmul.f32 %v509_v35, %v509_v35 }
 0x19c   :  { %v273_v38 = vmin.f32 %v272_v36, 16.0 }
 0x19d   :  { %v515_v39 = vmin.f32 %v192_v37, 16.0  ;;  %v181_v40 = vpop.f32.mrf.mxu1 }
 0x19e   :  { %v274_v41 = vmul.f32 2.1237322e-06, %v273_v38  ;;  %v285_v42 = vmul.f32 3.8918573e-05, %v273_v38  ;;  %v176_v43 = vpop.f32.mrf.mxu0  ;;  %v517_v44 = vadd.f32 %v394_v29, %v181_v40 }
 0x19f   :  { %v194_v45 = vmul.f32 2.1237322e-06, %v515_v39  ;;  %v205_v46 = vmul.f32 3.8918573e-05, %v515_v39  ;;  %v521_v47 = vadd.f32 %v394_v29, %v176_v43 }
 0x1a0   :  { %v275_v48 = vadd.f32 0.00028619796, %v274_v41  ;;  %v286_v49 = vadd.f32 0.001143296, %v285_v42  ;;  %v527_v55 = vmul.f32 0.70710677, %v517_v44 }
 0x1a1   :  { %v195_v50 = vadd.f32 0.00028619796, %v194_v45  ;;  %v206_v51 = vadd.f32 0.001143296, %v205_v46  ;;  %v524_v54 = vmul.f32 0.70710677, %v521_v47 }
 0x1a2   :  { %v276_v52 = vmul.f32 %v275_v48, %v273_v38  ;;  %v287_v53 = vmul.f32 %v286_v49, %v273_v38  ;;  %v312_v61 = vmul.f32 %v527_v55, %v527_v55 }
 0x1a3   :  { %v196_v56 = vmul.f32 %v195_v50, %v515_v39  ;;  %v207_v57 = vmul.f32 %v206_v51, %v515_v39  ;;  %v232_v60 = vmul.f32 %v524_v54, %v524_v54 }
 0x1a4   :  { %v277_v58 = vadd.f32 0.0036580483, %v276_v52  ;;  %v288_v59 = vadd.f32 0.014752088, %v287_v53  ;;  %v539_v5 = vmin.f32 %v312_v61, 16.0 }
 0x1a5   :  { %v197_v62 = vadd.f32 0.0036580483, %v196_v56  ;;  %v208_v63 = vadd.f32 0.014752088, %v207_v57  ;;  %v535_v2 = vmin.f32 %v232_v60, 16.0 }
 0x1a6   :  { %v278_v0 = vmul.f32 %v277_v58, %v273_v38  ;;  %v289_v1 = vmul.f32 %v288_v59, %v273_v38  ;;  %v314_v17 = vmul.f32 2.1237322e-06, %v539_v5  ;;  %v325_v18 = vmul.f32 3.8918573e-05, %v539_v5 }
 0x1a7   :  { %v198_v3 = vmul.f32 %v197_v62, %v515_v39  ;;  %v209_v4 = vmul.f32 %v208_v63, %v515_v39  ;;  %v234_v8 = vmul.f32 2.1237322e-06, %v535_v2  ;;  %v245_v10 = vmul.f32 3.8918573e-05, %v535_v2 }
 0x1a8   :  { %v279_v6 = vadd.f32 0.05243302, %v278_v0  ;;  %v290_v7 = vadd.f32 0.112945676, %v289_v1  ;;  %v326_v26 = vadd.f32 0.001143296, %v325_v18 }
 0x1a9   :  { %v210_v9 = vadd.f32 0.112945676, %v209_v4  ;;  %v199_v11 = vadd.f32 0.05243302, %v198_v3  ;;  %v235_v14 = vadd.f32 0.00028619796, %v234_v8 }
 0x1aa   :  { %v280_v12 = vmul.f32 %v279_v6, %v273_v38  ;;  %v291_v13 = vmul.f32 %v290_v7, %v273_v38  ;;  %v246_v16 = vadd.f32 0.001143296, %v245_v10  ;;  %v315_v29 = vadd.f32 0.00028619796, %v314_v17 }
 0x1ab   :  { %v211_v15 = vmul.f32 %v210_v9, %v515_v39  ;;  %v236_v22 = vmul.f32 %v235_v14, %v535_v2  ;;  %v200_v23 = vmul.f32 %v199_v11, %v515_v39  ;;  %v327_v40 = vmul.f32 %v326_v26, %v539_v5 }
 0x1ac   :  { %v292_v19 = vadd.f32 0.4994258, %v291_v13  ;;  %v247_v20 = vmul.f32 %v246_v16, %v535_v2  ;;  %v281_v24 = vadd.f32 0.18741608, %v280_v12  ;;  %v316_v43 = vmul.f32 %v315_v29, %v539_v5 }
 0x1ad   :  { %v212_v21 = vadd.f32 0.4994258, %v211_v15  ;;  %v237_v36 = vadd.f32 0.0036580483, %v236_v22  ;;  %v201_v41 = vadd.f32 0.18741608, %v200_v23 }
 0x1ae   :  { %v293_v25 = vmul.f32 %v292_v19, %v273_v38  ;;  %v248_v28 = vadd.f32 0.014752088, %v247_v20  ;;  %v282_v42 = vmul.f32 %v281_v24, %v273_v38  ;;  %v328_v48 = vadd.f32 0.014752088, %v327_v40 }
 0x1af   :  { %v213_v27 = vmul.f32 %v212_v21, %v515_v39  ;;  %v238_v45 = vmul.f32 %v237_v36, %v535_v2  ;;  %v202_v49 = vmul.f32 %v201_v41, %v515_v39  ;;  %v317_v52 = vadd.f32 0.0036580483, %v316_v43 }
 0x1b0   :  { %v294_v31 = vadd.f32 1.0, %v293_v25  ;;  %v249_v37 = vmul.f32 %v248_v28, %v535_v2  ;;  %v283_v50 = vadd.f32 1.1283791, %v282_v42  ;;  %v329_v53 = vmul.f32 %v328_v48, %v539_v5 }
 0x1b1   :  { %v214_v32 = vadd.f32 1.0, %v213_v27  ;;  %v239_v38 = vadd.f32 0.05243302, %v238_v45  ;;  %v203_v60 = vadd.f32 1.1283791, %v202_v49  ;;  %v318_v3 = vmul.f32 %v317_v52, %v539_v5 }
 0x1b2   :  { %405 = vrcp.f32 %v294_v31  ;;  %v250_v46 = vadd.f32 0.112945676, %v249_v37  ;;  %v284_v62 = vmul.f32 %v283_v50, %v506_v34  ;;  %v330_v63 = vadd.f32 0.112945676, %v329_v53 }
 0x1b3   :  { %407 = vrcp.f32 %v214_v32  ;;  %v304_v1 = vand.u32 2147483647, %v294_v31  ;;  %v226_v6 = vand.u32 2147483648, %v214_v32  ;;  %v306_v7 = vand.u32 2147483648, %v294_v31 }
 0x1b4   :  { %v251_v51 = vmul.f32 %v250_v46, %v535_v2  ;;  %v331_v8 = vmul.f32 %v330_v63, %v539_v5  ;;  %v240_v10 = vmul.f32 %v239_v38, %v535_v2  ;;  %v224_v34 = vand.u32 2147483647, %v214_v32 }
 0x1b5   :  { %vm300_vm0 = vweird.f32 %v294_v31  ;;  %v319_v15 = vadd.f32 0.05243302, %v318_v3  ;;  %vm220_vm1 = vweird.f32 %v214_v32  ;;  %v307_v17 = vor.u32 1.1754944e-38, %v306_v7 }
 0x1b6   :  { %v252_v59 = vadd.f32 0.4994258, %v251_v51  ;;  %v332_v13 = vadd.f32 0.4994258, %v331_v8  ;;  %v227_v19 = vor.u32 1.1754944e-38, %v226_v6  ;;  %vm305_vm4 = vcmp.eq.f32.partialorder %v304_v1, 8.507059e+37 }
 0x1b7   :  { %v241_v22 = vadd.f32 0.18741608, %v240_v10  ;;  %v204_v20 = vmul.f32 %v203_v60, %v509_v35  ;;  %vm225_vm5 = vcmp.eq.f32.partialorder %v224_v34, 8.507059e+37  ;;  %v320_v27 = vmul.f32 %v319_v15, %v539_v5 }
 0x1b8   :  { %v406_v56 = vpop.eup %405  ;;  %v253_v39 = vmul.f32 %v252_v59, %v535_v2  ;;  %v333_v18 = vmul.f32 %v332_v13, %v539_v5  ;;  %v186_v41 = vmul.f32 0.5, %v501_v30  ;;  %v184_v43 = vmul.f32 0.5, %v503_v33 }
 0x1b9   :  { %v408_v57 = vpop.eup %407  ;;  %v296_v58 = vmul.f32 %v406_v56, %v294_v31  ;;  %vm301_vm14 = vweird.f32 %v406_v56  ;;  %v242_v36 = vmul.f32 %v241_v22, %v535_v2  ;;  %v321_v42 = vadd.f32 0.18741608, %v320_v27 }
 0x1ba   :  { %v216_v61 = vmul.f32 %v408_v57, %v214_v32  ;;  %v562_v11 = vadd.f32 1.0, %v253_v39  ;;  %vm221_vm15 = vweird.f32 %v408_v57  ;;  %vm302_vm2 = vmor %vm300_vm0, %vm301_vm14  ;;  %v334_v28 = vadd.f32 1.0, %v333_v18 }
 0x1bb   :  { %v297_v0 = vsub.f32 1.0, %v296_v58  ;;  %vm222_vm3 = vmor %vm220_vm1, %vm221_vm15  ;;  %v243_v49 = vadd.f32 1.1283791, %v242_v36  ;;  %v322_v30 = vmul.f32 %v321_v42, %v539_v5  ;;  %v185_v6 = vmul.f32 0.5, %v521_v47 }
 0x1bc   :  { %v217_v4 = vsub.f32 1.0, %v216_v61  ;;  %409 = vrcp.f32 %v562_v11  ;;  %v266_v50 = vand.u32 2147483648, %v562_v11  ;;  %v264_v2 = vand.u32 2147483647, %v562_v11 }
 0x1bd   :  { %v298_v9 = vmul.f32 %v406_v56, %v297_v0  ;;  %411 = vrcp.f32 %v334_v28  ;;  %vm260_vm8 = vweird.f32 %v562_v11  ;;  %v244_v59 = vmul.f32 %v243_v49, %v524_v54 }
 0x1be   :  { %v218_v12 = vmul.f32 %v408_v57, %v217_v4  ;;  %v267_v38 = vor.u32 1.1754944e-38, %v266_v50  ;;  %vm265_vm10 = vcmp.eq.f32.partialorder %v264_v2, 8.507059e+37  ;;  %v346_v63 = vand.u32 2147483648, %v334_v28 }
 0x1bf   :  { %v299_v14 = vadd.f32 %v406_v56, %v298_v9  ;;  %v344_v39 = vand.u32 2147483647, %v334_v28  ;;  %vm340_vm12 = vweird.f32 %v334_v28 }
 0x1c0   :  { %v219_v16 = vadd.f32 %v408_v57, %v218_v12  ;;  %v347_v7 = vor.u32 1.1754944e-38, %v346_v63 }
 0x1c1   :  { %v303_v21 = vsel %vm302_vm2, %v406_v56, %v299_v14  ;;  %vm345_vm14 = vcmp.eq.f32.partialorder %v344_v39, 8.507059e+37  ;;  %v187_v14 = vmul.f32 0.5, %v517_v44 }
 0x1c2   :  { %v223_v23 = vsel %vm222_vm3, %v408_v57, %v219_v16  ;;  %v308_v24 = vsel %vm305_vm4, %v307_v17, %v303_v21  ;;  %v410_v31 = vpop.eup %409 }
 0x1c3   :  { %v228_v25 = vsel %vm225_vm5, %v227_v19, %v223_v23  ;;  %v309_v26 = vmul.f32 %v308_v24, %v284_v62  ;;  %v256_v40 = vmul.f32 %v410_v31, %v562_v11  ;;  %vm261_vm7 = vweird.f32 %v410_v31  ;;  %v412_v53 = vpop.eup %411 }
 0x1c4   :  { %v229_v29 = vmul.f32 %v228_v25, %v204_v20  ;;  %v336_v33 = vmul.f32 %v412_v53, %v334_v28  ;;  %vm262_vm9 = vmor %vm260_vm8, %vm261_vm7  ;;  %v323_v62 = vadd.f32 1.1283791, %v322_v30  ;;  %vm341_vm11 = vweird.f32 %v412_v53 }
 0x1c5   :  { %v385_v32 = vclamps-f32 %v309_v26, 1.0  ;;  %v257_v46 = vsub.f32 1.0, %v256_v40  ;;  %vm342_vm13 = vmor %vm340_vm12, %vm341_vm11 }
 0x1c6   :  { %v383_v37 = vclamps-f32 %v229_v29, 1.0  ;;  %v337_v60 = vsub.f32 1.0, %v336_v33  ;;  %v324_v54 = vmul.f32 %v323_v62, %v527_v55 }
 0x1c7   :  { %v354_v35 = vadd.f32 1.0, %v385_v32  ;;  %v258_v52 = vmul.f32 %v410_v31, %v257_v46 }
 0x1c8   :  { %v352_v45 = vadd.f32 1.0, %v383_v37  ;;  %v338_v1 = vmul.f32 %v412_v53, %v337_v60 }
 0x1c9   :  { %v358_v48 = vmul.f32 %v354_v35, %v186_v41  ;;  %v259_v58 = vadd.f32 %v410_v31, %v258_v52 }
 0x1ca   :  { %v356_v51 = vmul.f32 %v352_v45, %v184_v43  ;;  %v339_v4 = vadd.f32 %v412_v53, %v338_v1 }
 0x1cb   :  { %v362_v56 = vpack.c.bf16 %v358_v48, %v358_v48  ;;  %v263_v5 = vsel %vm262_vm9, %v410_v31, %v259_v58 }
 0x1cc   :  { %v360_v57 = vpack.c.bf16 %v356_v51, %v356_v51  ;;  %v268_v61 = vsel %vm265_vm10, %v267_v38, %v263_v5  ;;  %v343_v9 = vsel %vm342_vm13, %v412_v53, %v339_v4 }
 0x1cd   :  { %367 = vst.msk [vmem:[%s601_s5 + $0x8] sm:$0xf] %vm364_vm6, %v362_v56  ;;  %v269_v0 = vmul.f32 %v268_v61, %v244_v59  ;;  %v348_v10 = vsel %vm345_vm14, %v347_v7, %v343_v9 }
 0x1ce   :  { %365 = vst.msk [vmem:[%s601_s5] sm:$0xf] %vm364_vm6, %v360_v57  ;;  %v349_v12 = vmul.f32 %v348_v10, %v324_v54 }
 0x1cf   :  { %v384_v3 = vclamps-f32 %v269_v0, 1.0 }
 0x1d0   :  { %v386_v13 = vclamps-f32 %v349_v12, 1.0 }
 0x1d1   :  { %v353_v8 = vadd.f32 1.0, %v384_v3 }
 0x1d2   :  { %v355_v47 = vadd.f32 1.0, %v386_v13 }
 0x1d3   :  { %v357_v11 = vmul.f32 %v353_v8, %v185_v6 }
 0x1d4   :  { %v359_v15 = vmul.f32 %v355_v47, %v187_v14 }
 0x1d5   :  { %v361_v34 = vpack.c.bf16 %v357_v11, %v357_v11 }
 0x1d6   :  { %v363_v16 = vpack.c.bf16 %v359_v15, %v359_v15 }
 0x1d7   :  { %366 = vst.msk [vmem:[%s601_s5 + $0x4] sm:$0xf] %vm364_vm6, %v361_v34 }
 0x1d8   :  { %368 = vst.msk [vmem:[%s601_s5 + $0xc] sm:$0xf] %vm364_vm6, %v363_v16 }

// kernel: mask_transformer_img_forward.14
= control target key start
LH: loop header
LB: loop body
LE: loop exit
PB: predicated region body
PF: predicated region fallthrough
CT: control target
= control target key end

     0   :  { %s936_s24 = smov 0   ;;  %s938_s25 = smov 0   ;;  %s1058_s0 = inlined_call_operand.vmem [shape: bf16[2,16,32], index: 0, kind: input, shape index: {}]   ;;  %s1059_s1 = inlined_call_operand.vmem [shape: f32[1,32], index: 1, kind: input, shape index: {}]   ;;  %s1060_s2 = inlined_call_operand.vmem [shape: f32[1,32], index: 2, kind: input, shape index: {}]   ;;  %s1061_s3 = inlined_call_operand.vmem [shape: bf16[32,96], index: 3, kind: input, shape index: {}]   ;;  %s1062_s4 = inlined_call_operand.vmem [shape: f32[1,96], index: 4, kind: input, shape index: {}]   ;;  %s1063_s5 = inlined_call_operand.vmem [shape: bf16[2,4,16,8], index: 5, kind: output, shape index: {0}]   ;;  %s1064_s6 = inlined_call_operand.vmem [shape: bf16[2,4,16,8], index: 6, kind: output, shape index: {1}]   ;;  %s1065_s7 = inlined_call_operand.vmem [shape: bf16[2,4,16,8], index: 7, kind: output, shape index: {2}]  }
   0x1   :  { %s940_s26 = smov 0  }
   0x2 LB: > { %s30_s27 = sadd.s32 1, %s878_s25  ;;  %p767_p0 = scmp.ge.s32.totalorder %s882_s26, 1  ;;  %s882_s26 = sphi %s940_s26, %s18_s26   ;;  %s878_s25 = sphi %s938_s25, %s1067_s25   ;;  %s874_s24 = sphi %s936_s24, %s1066_s24  }
   0x3   : > { %p32_p1 = scmp.ge.s32.totalorder %s30_s27, 2  ;;  %p267_p2 = scmp.lt.s32.totalorder %s882_s26, 3 }
   0x5   : > { %s1069_s27 = smov (%p32_p1, %s30_s27), 0  ;;  %p268_p3 = pnand %p767_p0, %p267_p2 }
   0x6   : > { %p326_p4 = scmp.lt.s32.totalorder (!%p268_p3), %s874_s24, 1  ;;  %s885_s23 = smov (!%p268_p3), 80  }
   0x7   : > { %271 = sbr.rel (%p268_p3) target bundleno = 591 (0x24f), region = 40  ;;  %s888_s29 = smov (!%p268_p3), 72  }
   0x8   : > { %s889_s30 = smov (!%p268_p3), 112   ;;  %s891_s9 = smov (!%p268_p3), 104  }
   0x9   : > { %s892_s10 = smov (!%p268_p3), 88   ;;  %s893_s11 = smov (!%p268_p3), 56  }
   0xa   : > { %s894_s12 = smov (!%p268_p3), 48   ;;  %s895_s13 = smov (!%p268_p3), 40  }
   0xc   : > { %s1071_s24 = smov (!%p326_p4, %s874_s24), 1  ;;  %vm372_vm0 = vcmask 261120   ;;  %v884_v5 = vmov 32.0   ;;  %v810_v22 = vld [vmem:[%s1061_s3 + $0x8] sm:$0xff]  ;;  %v809_v24 = vld [vmem:[%s1061_s3] sm:$0xff]  ;;  %vm474_vm8 = vcmask 60416  }
   0xd   : > { %s805_s28 = sshll.u32 %s1071_s24, 3  ;;  %854 = vrcp.f32 %v884_v5  ;;  %464 = vmatpush.bf16.msra.mxu0 %v810_v22  ;;  %v851_v43 = vld [vmem:[%s1059_s1] ss:$0 sm:$0xff]  ;;  %s981_s19 = sshll.u32 %s1071_s24, 5 }
   0xe   : > { %s333_s8 = scalar_lea.vmem %s1058_s0, %s805_s28  ;;  %v852_v48 = vld [vmem:[%s1060_s2] ss:$0 sm:$0xff]  ;;  %s987_s22 = scalar_lea.vmem %s1063_s5, %s981_s19 }
   0xf   : > { %v812_v0 = vld [vmem:[%s333_s8] sm:$0xff]   ;;  %s886_s28 = smov 64   ;;  %s887_s24 = smov 96  }
  0x10   : > { %v813_v1 = vunpack.c.l.bf16 %v812_v0  ;;  %v814_v3 = vunpack.c.h.bf16 %v812_v0  ;;  %v853_v53 = vld [vmem:[%s1062_s4] ss:$0 sm:$0xff]  ;;  %s890_s8 = smov 120   ;;  %s997_s16 = scalar_lea.vmem %s1064_s6, %s981_s19 }
  0x11   : > { %465 = vmatpush.bf16.msra.mxu0 %v809_v24  ;;  %s1009_s20 = scalar_lea.vmem %s1065_s7, %s981_s19 }
  0x12   : > { %v373_v2 = vsel %vm372_vm0, %v813_v1, 0.0  ;;  %v376_v4 = vsel %vm372_vm0, %v814_v3, 0.0 }
  0x13   : > { %374 = vadd.xlane.f32.xlu0 %v373_v2  ;;  %v855_v6 = vpop.eup %854 }
  0x14   : > { %v380_v7 = vmul.f32 32.0, %v855_v6  ;;  %vm384_vm1 = vweird.f32 %v855_v6 }
  0x16   : > { %v381_v8 = vsub.f32 1.0, %v380_v7 }
  0x18   : > { %v382_v9 = vmul.f32 %v855_v6, %v381_v8 }
  0x1a   : > { %v383_v10 = vadd.f32 %v855_v6, %v382_v9 }
  0x1b   : > { %377 = vadd.xlane.f32.xlu0 %v376_v4 }
  0x1c   : > { %v385_v11 = vsel %vm384_vm1, %v855_v6, %v383_v10 }
  0x86   : > { %v375_v12 = vpop.xlane.xlu0 %374 }
  0x87   : > { %v386_v13 = vmul.f32 %v385_v11, %v375_v12 }
  0x89   : > { %v388_v14 = vsub.f32 %v813_v1, %v386_v13 }
  0x8b   : > { %v390_v15 = vmul.f32 %v388_v14, %v388_v14 }
  0x8d   : > { %v392_v16 = vsel %vm372_vm0, %v390_v15, 0.0 }
  0x8e   : > { %393 = vadd.xlane.f32.xlu1 %v392_v16  ;;  %v378_v17 = vpop.xlane.xlu0 %377 }
  0x8f   : > { %v387_v18 = vmul.f32 %v385_v11, %v378_v17 }
  0x91   : > { %v389_v19 = vsub.f32 %v814_v3, %v387_v18 }
  0x93   : > { %v391_v20 = vmul.f32 %v389_v19, %v389_v19 }
  0x95   : > { %v395_v21 = vsel %vm372_vm0, %v391_v20, 0.0 }
  0x96   : > { %396 = vadd.xlane.f32.xlu1 %v395_v21 }
 0x101   : > { %v394_v23 = vpop.xlane.xlu1 %393 }
 0x102   : > { %v398_v25 = vmul.f32 %v394_v23, %v385_v11 }
 0x104   : > { %v400_v26 = vadd.f32 1e-05, %v398_v25 }
 0x106   : > { %856 = vrsqrt.f32 %v400_v26  ;;  %vm408_vm3 = vweird.f32 %v400_v26 }
 0x109   : > { %v397_v27 = vpop.xlane.xlu1 %396 }
 0x10a   : > { %v399_v28 = vmul.f32 %v397_v27, %v385_v11 }
 0x10c   : > { %v857_v29 = vpop.eup %856  ;;  %v401_v30 = vadd.f32 1e-05, %v399_v28 }
 0x10d   : > { %v403_v31 = vmul.f32 %v857_v29, %v400_v26  ;;  %vm409_vm2 = vweird.f32 %v857_v29 }
 0x10e   : > { %858 = vrsqrt.f32 %v401_v30  ;;  %vm410_vm4 = vmor %vm408_vm3, %vm409_vm2  ;;  %vm418_vm6 = vweird.f32 %v401_v30 }
 0x10f   : > { %v404_v32 = vmul.f32 %v857_v29, %v403_v31 }
 0x111   : > { %v405_v33 = vmul.f32 0.5, %v404_v32 }
 0x113   : > { %v406_v34 = vsub.f32 1.5, %v405_v33 }
 0x114   : > { %v859_v35 = vpop.eup %858 }
 0x115   : > { %v407_v36 = vmul.f32 %v857_v29, %v406_v34  ;;  %v413_v37 = vmul.f32 %v859_v35, %v401_v30  ;;  %vm419_vm5 = vweird.f32 %v859_v35 }
 0x116   : > { %vm420_vm7 = vmor %vm418_vm6, %vm419_vm5 }
 0x117   : > { %v414_v38 = vmul.f32 %v859_v35, %v413_v37  ;;  %v411_v39 = vsel %vm410_vm4, %v857_v29, %v407_v36 }
 0x118   : > { %v422_v42 = vmul.f32 %v411_v39, %v388_v14 }
 0x119   : > { %v415_v40 = vmul.f32 0.5, %v414_v38 }
 0x11a   : > { %v427_v47 = vmul.f32 %v851_v43, %v422_v42 }
 0x11b   : > { %v416_v41 = vsub.f32 1.5, %v415_v40 }
 0x11c   : > { %v432_v50 = vadd.f32 %v852_v48, %v427_v47 }
 0x11d   : > { %v417_v44 = vmul.f32 %v859_v35, %v416_v41 }
 0x11f   : > { %v421_v45 = vsel %vm420_vm7, %v859_v35, %v417_v44 }
 0x120   : > { %v423_v46 = vmul.f32 %v421_v45, %v389_v19 }
 0x122   : > { %v428_v49 = vmul.f32 %v851_v43, %v423_v46 }
 0x124   : > { %v433_v51 = vadd.f32 %v852_v48, %v428_v49 }
 0x126   : > { %v434_v52 = vpack.c.bf16 %v433_v51, %v432_v50 }
 0x128   : > { %784 = vmatmul.msk.bf16.vlgmr.msra.gmra.mxu0 %vm372_vm0, %v434_v52 }
 0x1a5   : > { %v467_v54 = vpop.f32.mrf.mxu0 }
 0x1a6   : > { %v468_v55 = vadd.f32 %v853_v53, %v467_v54 }
 0x1a8   : > { %v472_v56 = vpack.c.bf16 %v468_v55, %v468_v55 }
 0x1aa   : > { %475 = vst.msk [vmem:[%s987_s22] sm:$0xf] %vm474_vm8, %v472_v56  ;;  %531 = vrot.lane.b32.xlu1 %v472_v56, %s885_s23  ;;  %487 = vrot.lane.b32.xlu0 %v472_v56, %s886_s28 }
 0x1ab   : > { %479 = vrot.lane.b32.xlu2 %v472_v56, %s887_s24 }
 0x1ad   : > { %v469_v57 = vpop.f32.mrf.mxu0 }
 0x1ae   : > { %v470_v58 = vadd.f32 %v853_v53, %v469_v57 }
 0x1b0   : > { %v473_v59 = vpack.c.bf16 %v470_v58, %v470_v58 }
 0x1b2   : > { %476 = vst.msk [vmem:[%s987_s22 + $0x4] sm:$0xf] %vm474_vm8, %v473_v59  ;;  %558 = vrot.lane.b32.xlu1 %v472_v56, %s888_s29  ;;  %522 = vrot.lane.b32.xlu0 %v472_v56, %s889_s30 }
 0x1b3   : > { %495 = vrot.lane.b32.xlu2 %v472_v56, %s890_s8 }
 0x1ba   : > { %489 = vrot.lane.b32.xlu1 %v473_v59, %s886_s28  ;;  %549 = vrot.lane.b32.xlu0 %v472_v56, %s891_s9 }
 0x1bb   : > { %504 = vrot.lane.b32.xlu2 %v472_v56, %s892_s10 }
 0x1c2   : > { %515 = vrot.lane.b32.xlu1 %v473_v59, %s893_s11  ;;  %506 = vrot.lane.b32.xlu0 %v473_v59, %s892_s10 }
 0x1c3   : > { %513 = vrot.lane.b32.xlu2 %v472_v56, %s893_s11 }
 0x1ca   : > { %542 = vrot.lane.b32.xlu1 %v473_v59, %s894_s12  ;;  %533 = vrot.lane.b32.xlu0 %v473_v59, %s885_s23 }
 0x1cb   : > { %540 = vrot.lane.b32.xlu2 %v472_v56, %s894_s12 }
 0x1d2   : > { %569 = vrot.lane.b32.xlu1 %v473_v59, %s895_s13  ;;  %560 = vrot.lane.b32.xlu0 %v473_v59, %s888_s29 }
 0x1d3   : > { %481 = vrot.lane.b32.xlu2 %v473_v59, %s887_s24 }
 0x1db   : > { %497 = vrot.lane.b32.xlu2 %v473_v59, %s890_s8 }
 0x1e3   : > { %524 = vrot.lane.b32.xlu2 %v473_v59, %s889_s30 }
 0x1eb   : > { %551 = vrot.lane.b32.xlu2 %v473_v59, %s891_s9 }
 0x1f3   : > { %567 = vrot.lane.b32.xlu2 %v472_v56, %s895_s13 }
 0x205   : > { %v480_v60 = vpop.permute.xlu2 %479 }
 0x206   : > { %485 = vst.msk [vmem:[%s997_s16] sm:$0xf] %vm474_vm8, %v480_v60 }
 0x20d   : > { %v496_v61 = vpop.permute.xlu2 %495 }
 0x20e   : > { %785 = vst.msk [vmem:[%s987_s22 + $0x8] sm:$0xf] %vm474_vm8, %v496_v61 }
 0x215   : > { %v505_v62 = vpop.permute.xlu2 %504 }
 0x216   : > { %787 = vst.msk [vmem:[%s997_s16 + $0x8] sm:$0xf] %vm474_vm8, %v505_v62 }
 0x21c   : > { %v532_v63 = vpop.permute.xlu1 %531  ;;  %v488_v0 = vpop.permute.xlu0 %487 }
 0x21d   : > { %793 = vst.msk [vmem:[%s997_s16 + $0x10] sm:$0xf] %vm474_vm8, %v532_v63  ;;  %v514_v1 = vpop.permute.xlu2 %513 }
 0x21e   : > { %493 = vst.msk [vmem:[%s1009_s20] sm:$0xf] %vm474_vm8, %v488_v0 }
 0x21f   : > { %789 = vst.msk [vmem:[%s1009_s20 + $0x8] sm:$0xf] %vm474_vm8, %v514_v1 }
 0x224   : > { %v559_v2 = vpop.permute.xlu1 %558  ;;  %v523_v3 = vpop.permute.xlu0 %522 }
 0x225   : > { %799 = vst.msk [vmem:[%s997_s16 + $0x18] sm:$0xf] %vm474_vm8, %v559_v2  ;;  %v541_v4 = vpop.permute.xlu2 %540 }
 0x226   : > { %791 = vst.msk [vmem:[%s987_s22 + $0x10] sm:$0xf] %vm474_vm8, %v523_v3 }
 0x227   : > { %795 = vst.msk [vmem:[%s1009_s20 + $0x10] sm:$0xf] %vm474_vm8, %v541_v4 }
 0x22c   : > { %v490_v5 = vpop.permute.xlu1 %489  ;;  %v550_v6 = vpop.permute.xlu0 %549 }
 0x22d   : > { %494 = vst.msk [vmem:[%s1009_s20 + $0x4] sm:$0xf] %vm474_vm8, %v490_v5  ;;  %v482_v7 = vpop.permute.xlu2 %481 }
 0x22e   : > { %797 = vst.msk [vmem:[%s987_s22 + $0x18] sm:$0xf] %vm474_vm8, %v550_v6 }
 0x22f   : > { %486 = vst.msk [vmem:[%s997_s16 + $0x4] sm:$0xf] %vm474_vm8, %v482_v7 }
 0x234   : > { %v516_v8 = vpop.permute.xlu1 %515  ;;  %v507_v9 = vpop.permute.xlu0 %506 }
 0x235   : > { %790 = vst.msk [vmem:[%s1009_s20 + $0xc] sm:$0xf] %vm474_vm8, %v516_v8  ;;  %v498_v10 = vpop.permute.xlu2 %497 }
 0x236   : > { %788 = vst.msk [vmem:[%s997_s16 + $0xc] sm:$0xf] %vm474_vm8, %v507_v9 }
 0x237   : > { %786 = vst.msk [vmem:[%s987_s22 + $0xc] sm:$0xf] %vm474_vm8, %v498_v10 }
 0x23c   : > { %v543_v11 = vpop.permute.xlu1 %542  ;;  %v534_v12 = vpop.permute.xlu0 %533 }
 0x23d   : > { %796 = vst.msk [vmem:[%s1009_s20 + $0x14] sm:$0xf] %vm474_vm8, %v543_v11  ;;  %v525_v13 = vpop.permute.xlu2 %524 }
 0x23e   : > { %794 = vst.msk [vmem:[%s997_s16 + $0x14] sm:$0xf] %vm474_vm8, %v534_v12 }
 0x23f   : > { %792 = vst.msk [vmem:[%s987_s22 + $0x14] sm:$0xf] %vm474_vm8, %v525_v13 }
 0x244   : > { %v570_v14 = vpop.permute.xlu1 %569  ;;  %v561_v15 = vpop.permute.xlu0 %560 }
 0x245   : > { %802 = vst.msk [vmem:[%s1009_s20 + $0x1c] sm:$0xf] %vm474_vm8, %v570_v14  ;;  %v552_v16 = vpop.permute.xlu2 %551 }
 0x246   : > { %800 = vst.msk [vmem:[%s997_s16 + $0x1c] sm:$0xf] %vm474_vm8, %v561_v15 }
 0x247   : > { %798 = vst.msk [vmem:[%s987_s22 + $0x1c] sm:$0xf] %vm474_vm8, %v552_v16 }
 0x24d   : > { %v568_v17 = vpop.permute.xlu2 %567 }
 0x24e   : > { %801 = vst.msk [vmem:[%s1009_s20 + $0x18] sm:$0xf] %vm474_vm8, %v568_v17 }
 0x24f PF: > { %s18_s26 = sadd.s32 1, %s882_s26   ;;  %s1066_s24 = smov %s878_s25 }
 0x250   : > { %p15_p5 = scmp.ge.s32.totalorder %s18_s26, 4   ;;  %s1067_s25 = smov %s1069_s27 }
 0x252   :  { %17 = sbr.rel (!%p15_p5) target bundleno = 2 (0x2), region = 103 }

// kernel: mask_transformer_img_forward.15
= control target key start
LH: loop header
LB: loop body
LE: loop exit
PB: predicated region body
PF: predicated region fallthrough
CT: control target
= control target key end

     0   :  { %s839_s12 = smov 0   ;;  %s841_s13 = smov 0   ;;  %s921_s0 = inlined_call_operand.vmem [shape: bf16[2,4,16,8], index: 0, kind: input, shape index: {}]   ;;  %s922_s1 = inlined_call_operand.vmem [shape: bf16[2,4,16,8], index: 1, kind: input, shape index: {}]   ;;  %s923_s2 = inlined_call_operand.vmem [shape: bf16[2,4,16,8], index: 2, kind: input, shape index: {}]   ;;  %s924_s3 = inlined_call_operand.vmem [shape: bf16[2,4,16,8], index: 3, kind: output, shape index: {}]  }
   0x1   :  { %s843_s14 = smov 0   ;;  %s845_s15 = smov 0  }
   0x2   :  { %s847_s16 = smov 0  }
   0x3 LB: > { %s35_s17 = sadd.s32 1, %s806_s14  ;;  %s39_s18 = sadd.s32 1, %s810_s15  ;;  %s814_s16 = sphi %s847_s16, %s13_s16   ;;  %s810_s15 = sphi %s845_s15, %s928_s15   ;;  %s806_s14 = sphi %s843_s14, %s927_s14   ;;  %s802_s13 = sphi %s841_s13, %s926_s13   ;;  %s798_s12 = sphi %s839_s12, %s925_s12  }
   0x4   : > { %p37_p0 = scmp.ge.s32.totalorder %s35_s17, 4  ;;  %p686_p1 = scmp.ge.s32.totalorder %s814_s16, 1 }
   0x5   : > { %p226_p2 = scmp.lt.s32.totalorder %s814_s16, 9 }
   0x6   : > { %s930_s17 = smov (%p37_p0, %s35_s17), 0  ;;  %s932_s18 = smov (!%p37_p0, %s39_s18), %s810_s15 }
   0x7   : > { %p227_p3 = pnand %p686_p1, %p226_p2  ;;  %p41_p4 = scmp.ge.s32.totalorder %s932_s18, 2 }
   0x8   : > { %p293_p5 = scmp.lt.s32.totalorder (!%p227_p3), %s802_s13, 1  ;;  %p295_p6 = scmp.lt.s32.totalorder (!%p227_p3), %s798_s12, 3 }
   0x9   : > { %s934_s18 = smov (%p41_p4, %s932_s18), 0  ;;  %230 = sbr.rel (%p227_p3) target bundleno = 661 (0x295), region = 32 }
   0xe   : > { %vm358_vm0 = vcmask 64512   ;;  %v816_v0 = vmov 0.0   ;;  %s936_s13 = smov (!%p293_p5, %s802_s13), 1  ;;  %s938_s12 = smov (!%p295_p6, %s798_s12), 3  ;;  %vm353_vm1 = vcmask 7168   ;;  %v817_v4 = vmov -inf  }
   0xf   : > { %359 = vst.msk [vmem:[#allocation4] sm:$0xff] %vm358_vm0, %v816_v0  ;;  %s688_s19 = sshll.u32 %s936_s13, 3  ;;  %s687_s20 = sshll.u32 %s938_s12, 1  ;;  %vm398_vm2 = vcmask 130048   ;;  %v818_v9 = vmov 0   ;;  %vm513_vm3 = vcmask 60416  }
  0x10   : > { %360 = vst.msk [vmem:[#allocation4 + $0x8] sm:$0xff] %vm358_vm0, %v816_v0  ;;  %s302_s21 = sadd.s32 %s688_s19, %s687_s20  ;;  %761 = vset.pattern.permute.xlu1 %v818_v9  ;;  %762 = vset.pattern.permute.xlu0 %v818_v9 }
  0x11   : > { %s871_s22 = sshll.u32 %s302_s21, 2  ;;  %354 = vst.msk [vmem:[#allocation2] sm:$0xff] %vm353_vm1, %v817_v4  ;;  %763 = vset.pattern.permute.xlu2 %v818_v9 }
  0x12   : > { %s318_s25 = scalar_lea.vmem %s922_s1, %s871_s22  ;;  %s304_s28 = scalar_lea.vmem %s921_s0, %s871_s22  ;;  %355 = vst.msk [vmem:[#allocation2 + $0x8] sm:$0xff] %vm353_vm1, %v817_v4 }
  0x13   : > { %v716_v1 = vld [vmem:[%s318_s25] sm:$0xff]  ;;  %356 = vst.msk [vmem:[#allocation3] sm:$0xff] %vm353_vm1, %v816_v0  ;;  %s332_s4 = scalar_lea.vmem %s923_s2, %s871_s22  ;;  %s346_s7 = scalar_lea.vmem %s924_s3, %s871_s22 }
  0x14   : > { %v380_v2 = vsel %vm358_vm0, %v716_v1, 0  ;;  %v715_v3 = vld [vmem:[%s304_s28] sm:$0xff]  ;;  %357 = vst.msk [vmem:[#allocation3 + $0x8] sm:$0xff] %vm353_vm1, %v816_v0 }
  0x15   : > { %389 = vmatpush.bf16.xpose.msra.mxu0 %v380_v2  ;;  %v717_v22 = vld [vmem:[%s332_s4] sm:$0xff] }
  0x16   : > { %477 = vmatpush.bf16.msra.mxu1 %v717_v22  ;;  %v444_v43 = vld [vmem:[#allocation4] sm:$0xff] }
  0x17   : > { %v445_v50 = vld [vmem:[#allocation4 + $0x8] sm:$0xff] }
  0x18   : > { %v396_v10 = vld [vmem:[#allocation2] sm:$0xff] }
  0x19   : > { %v397_v15 = vld [vmem:[#allocation2 + $0x8] sm:$0xff] }
  0x1a   : > { %v429_v34 = vld [vmem:[#allocation3] sm:$0xff] }
  0x1b   : > { %v430_v38 = vld [vmem:[#allocation3 + $0x8] sm:$0xff] }
  0x1c   : > { %707 = vmatmul.msk.bf16.vlgmr.msra.gmra.mxu0 %vm358_vm0, %v715_v3 }
  0x99   : > { %v391_v5 = vpop.f32.mrf.mxu0 }
  0x9a   : > { %v399_v6 = vsel %vm398_vm2, %v391_v5, -inf }
  0x9b   : > { %400 = vmax.xlane.f32.xlu0 %v399_v6 }
  0xa1   : > { %v393_v7 = vpop.f32.mrf.mxu0 }
  0xa2   : > { %v402_v8 = vsel %vm398_vm2, %v393_v7, -inf }
  0xa3   : > { %403 = vmax.xlane.f32.xlu0 %v402_v8 }
 0x10e   : > { %v401_v11 = vpop.xlane.xlu0 %400 }
 0x10f   : > { %v405_v12 = vmax.f32 %v396_v10, %v401_v11 }
 0x111   : > { %v407_v13 = vsub.f32 %v396_v10, %v405_v12  ;;  %488 = vst.msk [vmem:[#allocation2] sm:$0xff] %vm353_vm1, %v405_v12  ;;  %415 = vperm.xlu1 %761, %v405_v12  }
 0x113   : > { %v409_v14 = vmul.f32 1.442695, %v407_v13 }
 0x115   : > { %764 = vpow2.f32 %v409_v14 }
 0x116   : > { %v404_v16 = vpop.xlane.xlu0 %403 }
 0x117   : > { %v406_v17 = vmax.f32 %v397_v15, %v404_v16 }
 0x119   : > { %v408_v18 = vsub.f32 %v397_v15, %v406_v17  ;;  %489 = vst.msk [vmem:[#allocation2 + $0x8] sm:$0xff] %vm353_vm1, %v406_v17  ;;  %420 = vperm.xlu1 %761, %v406_v17  }
 0x11b   : > { %v765_v19 = vpop.eup %764  ;;  %v411_v20 = vmul.f32 1.442695, %v408_v18 }
 0x11c   : > { %448 = vperm.xlu0 %762, %v765_v19   ;;  %v431_v35 = vmul.f32 %v765_v19, %v429_v34 }
 0x11d   : > { %766 = vpow2.f32 %v411_v20 }
 0x123   : > { %v767_v21 = vpop.eup %766 }
 0x124   : > { %453 = vperm.xlu1 %761, %v767_v21   ;;  %v432_v39 = vmul.f32 %v767_v21, %v430_v38 }
 0x183   : > { %v416_v23 = vpop.permute.xlu1 %415 }
 0x184   : > { %v423_v24 = vsub.f32 %v391_v5, %v416_v23 }
 0x186   : > { %v425_v25 = vmul.f32 1.442695, %v423_v24 }
 0x188   : > { %768 = vpow2.f32 %v425_v25 }
 0x18b   : > { %v421_v26 = vpop.permute.xlu1 %420 }
 0x18c   : > { %v424_v27 = vsub.f32 %v393_v7, %v421_v26 }
 0x18e   : > { %v769_v28 = vpop.eup %768  ;;  %v427_v29 = vmul.f32 1.442695, %v424_v27  ;;  %v449_v44 = vpop.permute.xlu0 %448 }
 0x18f   : > { %v433_v30 = vsel %vm398_vm2, %v769_v28, 0.0  ;;  %v456_v46 = vmul.f32 %v449_v44, %v444_v43 }
 0x190   : > { %770 = vpow2.f32 %v427_v29  ;;  %434 = vadd.xlane.f32.xlu2 %v433_v30 }
 0x196   : > { %v771_v31 = vpop.eup %770  ;;  %v454_v51 = vpop.permute.xlu1 %453 }
 0x197   : > { %v436_v32 = vsel %vm398_vm2, %v771_v31, 0.0  ;;  %v458_v33 = vpack.c.bf16 %v771_v31, %v769_v28  ;;  %v457_v53 = vmul.f32 %v454_v51, %v445_v50 }
 0x198   : > { %437 = vadd.xlane.f32.xlu2 %v436_v32 }
 0x199   : > { %712 = vmatmul.msk.bf16.vlgmr.msra.gmra.mxu1 %vm398_vm2, %v458_v33 }
 0x203   : > { %v435_v36 = vpop.xlane.xlu2 %434 }
 0x204   : > { %v439_v37 = vadd.f32 %v435_v36, %v431_v35 }
 0x206   : > { %442 = vst.msk [vmem:[#allocation3] sm:$0xff] %vm353_vm1, %v439_v37 }
 0x20b   : > { %v438_v40 = vpop.xlane.xlu2 %437 }
 0x20c   : > { %v440_v41 = vadd.f32 %v438_v40, %v432_v39 }
 0x20d   : > { %v495_v42 = vld [vmem:[#allocation3] sm:$0xff] }
 0x20e   : > { %443 = vst.msk [vmem:[#allocation3 + $0x8] sm:$0xff] %vm353_vm1, %v440_v41  ;;  %772 = vrcp.f32 %v495_v42 }
 0x214   : > { %v773_v45 = vpop.eup %772 }
 0x215   : > { %501 = vperm.xlu2 %763, %v773_v45   ;;  %v496_v47 = vld [vmem:[#allocation3 + $0x8] sm:$0xff] }
 0x216   : > { %v479_v48 = vpop.f32.mrf.mxu1  ;;  %774 = vrcp.f32 %v496_v47 }
 0x217   : > { %v484_v49 = vadd.f32 %v479_v48, %v456_v46 }
 0x219   : > { %486 = vst.msk [vmem:[#allocation4] sm:$0xff] %vm358_vm0, %v484_v49 }
 0x21c   : > { %v775_v52 = vpop.eup %774 }
 0x21d   : > { %506 = vperm.xlu1 %761, %v775_v52  }
 0x21e   : > { %v481_v54 = vpop.f32.mrf.mxu1 }
 0x21f   : > { %v485_v55 = vadd.f32 %v481_v54, %v457_v53 }
 0x220   : > { %v493_v57 = vld [vmem:[#allocation4] sm:$0xff] }
 0x221   : > { %487 = vst.msk [vmem:[#allocation4 + $0x8] sm:$0xff] %vm358_vm0, %v485_v55 }
 0x228   : > { %v494_v60 = vld [vmem:[#allocation4 + $0x8] sm:$0xff] }
 0x26f   : > { %v502_v56 = vpop.permute.xlu2 %501 }
 0x270   : > { %v509_v58 = vmul.f32 %v502_v56, %v493_v57 }
 0x272   : > { %v511_v59 = vpack.c.bf16 %v509_v58, %v509_v58 }
 0x274   : > { %514 = vst.msk [vmem:[%s346_s7] sm:$0xf] %vm513_vm3, %v511_v59 }
 0x28f   : > { %v507_v61 = vpop.permute.xlu1 %506 }
 0x290   : > { %v510_v62 = vmul.f32 %v507_v61, %v494_v60 }
 0x292   : > { %v512_v63 = vpack.c.bf16 %v510_v62, %v510_v62 }
 0x294   : > { %515 = vst.msk [vmem:[%s346_s7 + $0x4] sm:$0xf] %vm513_vm3, %v512_v63 }
 0x295 PF: > { %s13_s16 = sadd.s32 1, %s814_s16   ;;  %s925_s12 = smov %s806_s14 }
 0x296   : > { %p10_p7 = scmp.ge.s32.totalorder %s13_s16, 10   ;;  %s926_s13 = smov %s810_s15 }
 0x297   : > { %s927_s14 = smov %s930_s17  ;;  %s928_s15 = smov %s934_s18 }
 0x298   :  { %12 = sbr.rel (!%p10_p7) target bundleno = 3 (0x3), region = 76 }

// kernel: mask_transformer_img_forward.16
= control target key start
LH: loop header
LB: loop body
LE: loop exit
PB: predicated region body
PF: predicated region fallthrough
CT: control target
= control target key end

     0   :  { %s643_s15 = smov 0   ;;  %s645_s16 = smov 0   ;;  %s698_s0 = inlined_call_operand.vmem [shape: bf16[2,4,16,8], index: 0, kind: input, shape index: {}]   ;;  %s699_s1 = inlined_call_operand.vmem [shape: bf16[32,32], index: 1, kind: input, shape index: {}]   ;;  %s700_s2 = inlined_call_operand.vmem [shape: f32[1,32], index: 2, kind: input, shape index: {}]   ;;  %s701_s3 = inlined_call_operand.vmem [shape: bf16[2,16,32], index: 3, kind: input, shape index: {}]   ;;  %s702_s4 = inlined_call_operand.vmem [shape: bf16[2,16,32], index: 4, kind: output, shape index: {}]  }
   0x1   :  { %s647_s17 = smov 0  }
   0x2 LB: > { %s26_s18 = sadd.s32 1, %s612_s16  ;;  %p523_p0 = scmp.ge.s32.totalorder %s616_s17, 1  ;;  %s616_s17 = sphi %s647_s17, %s14_s17   ;;  %s612_s16 = sphi %s645_s16, %s704_s16   ;;  %s608_s15 = sphi %s643_s15, %s703_s15  }
   0x3   : > { %p28_p1 = scmp.ge.s32.totalorder %s26_s18, 2  ;;  %p200_p2 = scmp.lt.s32.totalorder %s616_s17, 3 }
   0x5   : > { %s706_s18 = smov (%p28_p1, %s26_s18), 0  ;;  %p201_p3 = pnand %p523_p0, %p200_p2 }
   0x6   : > { %p244_p4 = scmp.lt.s32.totalorder (!%p201_p3), %s608_s15, 1 }
   0x7   : > { %204 = sbr.rel (%p201_p3) target bundleno = 165 (0xa5), region = 36 }
   0xc   : > { %v286_v0 = vld [vmem:[%s699_s1] sm:$0xf]  ;;  %vm296_vm0 = vcmask 1043456   ;;  %v319_v1 = vld [vmem:[%s699_s1 + $0x4] sm:$0xf]  ;;  %s708_s15 = smov (!%p244_p4, %s608_s15), 1 }
   0xd   : > { %v298_v2 = vsel %vm296_vm0, %v286_v0, 0  ;;  %v329_v3 = vsel %vm296_vm0, %v319_v1, 0  ;;  %v350_v4 = vld [vmem:[%s699_s1 + $0x8] sm:$0xf]  ;;  %v381_v5 = vld [vmem:[%s699_s1 + $0xc] sm:$0xf] }
   0xe   : > { %307 = vmatpush.bf16.msra.mxu0 %v298_v2  ;;  %338 = vmatpush.bf16.msra.mxu1 %v329_v3  ;;  %v360_v6 = vsel %vm296_vm0, %v350_v4, 0  ;;  %v391_v7 = vsel %vm296_vm0, %v381_v5, 0  ;;  %s558_s27 = sshll.u32 %s708_s15, 5  ;;  %vm292_vm1 = vcmask 64512   ;;  %s559_s5 = sshll.u32 %s708_s15, 3  ;;  %vm411_vm2 = vcmask 257024  }
   0xf   : > { %369 = vmatpush.bf16.msra.mxu2 %v360_v6  ;;  %400 = vmatpush.bf16.msra.mxu3 %v391_v7  ;;  %s251_s30 = scalar_lea.vmem %s698_s0, %s558_s27  ;;  %s261_s8 = scalar_lea.vmem %s701_s3, %s559_s5  ;;  %v593_v14 = vld [vmem:[%s700_s2] ss:$0 sm:$0xff] }
  0x10   : > { %v561_v8 = vld [vmem:[%s251_s30] sm:$0xff]  ;;  %v562_v9 = vld [vmem:[%s251_s30 + $0x8] sm:$0xff]  ;;  %v563_v10 = vld [vmem:[%s251_s30 + $0x10] sm:$0xff]  ;;  %s271_s13 = scalar_lea.vmem %s702_s4, %s559_s5 }
  0x11   : > { %v564_v11 = vld [vmem:[%s251_s30 + $0x18] sm:$0xff]  ;;  %534 = vmatmul.msk.bf16.vlgmr.msra.gmra.mxu0 %vm292_vm1, %v561_v8  ;;  %541 = vmatmul.msk.bf16.vlgmr.msra.gmra.mxu1 %vm292_vm1, %v562_v9  ;;  %v566_v12 = vld [vmem:[%s261_s8] sm:$0xff]  }
  0x12   : > { %548 = vmatmul.msk.bf16.vlgmr.msra.gmra.mxu2 %vm292_vm1, %v563_v10  ;;  %555 = vmatmul.msk.bf16.vlgmr.msra.gmra.mxu3 %vm292_vm1, %v564_v11  ;;  %v567_v13 = vunpack.c.l.bf16 %v566_v12  ;;  %v568_v18 = vunpack.c.h.bf16 %v566_v12 }
  0x14   : > { %v282_v15 = vadd.f32 %v593_v14, %v567_v13  ;;  %v283_v21 = vadd.f32 %v593_v14, %v568_v18 }
  0x8e   : > { %v309_v16 = vpop.f32.mrf.mxu0  ;;  %v340_v19 = vpop.f32.mrf.mxu1 }
  0x8f   : > { %v314_v17 = vadd.f32 %v309_v16, %v282_v15 }
  0x91   : > { %v345_v20 = vadd.f32 %v340_v19, %v314_v17 }
  0x95   : > { %v371_v22 = vpop.f32.mrf.mxu2  ;;  %v402_v23 = vpop.f32.mrf.mxu3 }
  0x96   : > { %v376_v24 = vadd.f32 %v371_v22, %v345_v20  ;;  %v311_v25 = vpop.f32.mrf.mxu0  ;;  %v342_v29 = vpop.f32.mrf.mxu1 }
  0x97   : > { %v315_v27 = vadd.f32 %v311_v25, %v283_v21 }
  0x98   : > { %v407_v26 = vadd.f32 %v402_v23, %v376_v24 }
  0x99   : > { %v346_v30 = vadd.f32 %v342_v29, %v315_v27 }
  0x9a   : > { %v409_v28 = vpack.c.bf16 %v407_v26, %v407_v26 }
  0x9c   : > { %412 = vst.msk [vmem:[%s271_s13] sm:$0xf] %vm411_vm2, %v409_v28 }
  0x9d   : > { %v373_v31 = vpop.f32.mrf.mxu2  ;;  %v404_v33 = vpop.f32.mrf.mxu3 }
  0x9e   : > { %v377_v32 = vadd.f32 %v373_v31, %v346_v30 }
  0xa0   : > { %v408_v34 = vadd.f32 %v404_v33, %v377_v32 }
  0xa2   : > { %v410_v35 = vpack.c.bf16 %v408_v34, %v408_v34 }
  0xa4   : > { %413 = vst.msk [vmem:[%s271_s13 + $0x4] sm:$0xf] %vm411_vm2, %v410_v35 }
  0xa5 PF: > { %s14_s17 = sadd.s32 1, %s616_s17   ;;  %s703_s15 = smov %s612_s16 }
  0xa6   : > { %p11_p5 = scmp.ge.s32.totalorder %s14_s17, 4   ;;  %s704_s16 = smov %s706_s18 }
  0xa8   :  { %13 = sbr.rel (!%p11_p5) target bundleno = 2 (0x2), region = 72 }

// kernel: mask_transformer_img_forward.22
= control target key start
LH: loop header
LB: loop body
LE: loop exit
PB: predicated region body
PF: predicated region fallthrough
CT: control target
= control target key end

     0   :  { %vm31_vm0 = vcmask 261120   ;;  %v426_v10 = vmov 32.0   ;;  %s603_s0 = inlined_call_operand.vmem [shape: bf16[32,32], index: 0, kind: input, shape index: {}]   ;;  %s604_s1 = inlined_call_operand.vmem [shape: f32[1,32], index: 1, kind: input, shape index: {}]   ;;  %s605_s2 = inlined_call_operand.vmem [shape: f32[1,32], index: 2, kind: input, shape index: {}]   ;;  %s606_s4 = inlined_call_operand.vmem [shape: f32[1,32], index: 4, kind: input, shape index: {}]   ;;  %s607_s3 = inlined_call_operand.vmem [shape: bf16[32,32], index: 3, kind: input, shape index: {}]   ;;  %s608_s5 = inlined_call_operand.vmem [shape: bf16[32,32], index: 5, kind: output, shape index: {}]  }
   0x1   :  { %v401_v0 = vld [vmem:[%s603_s0 + $0x8] sm:$0xff]   ;;  %v394_v1 = vld [vmem:[%s603_s0] sm:$0xff]   ;;  %408 = vrcp.f32 %v426_v10 }
   0x2   :  { %v399_v2 = vunpack.c.l.bf16 %v401_v0  ;;  %v395_v3 = vunpack.c.l.bf16 %v394_v1  ;;  %v400_v6 = vunpack.c.h.bf16 %v401_v0  ;;  %v396_v7 = vunpack.c.h.bf16 %v394_v1  ;;  %v392_v37 = vld [vmem:[%s607_s3 + $0x8] sm:$0xff]  ;;  %v391_v42 = vld [vmem:[%s607_s3] sm:$0xff] }
   0x3   :  { %175 = vmatpush.bf16.msra.mxu0 %v392_v37  ;;  %402 = vmatpush.bf16.msra.mxu1 %v392_v37 }
   0x4   :  { %v38_v4 = vsel %vm31_vm0, %v399_v2, 0.0  ;;  %v32_v5 = vsel %vm31_vm0, %v395_v3, 0.0  ;;  %v41_v8 = vsel %vm31_vm0, %v400_v6, 0.0  ;;  %v35_v9 = vsel %vm31_vm0, %v396_v7, 0.0 }
   0x5   :  { %39 = vadd.xlane.f32.xlu1 %v38_v4  ;;  %33 = vadd.xlane.f32.xlu0 %v32_v5 }
   0x7   :  { %v409_v11 = vpop.eup %408  ;;  %176 = vmatpush.bf16.msra.mxu0 %v391_v42  ;;  %403 = vmatpush.bf16.msra.mxu1 %v391_v42 }
   0x8   :  { %v45_v12 = vmul.f32 32.0, %v409_v11  ;;  %vm49_vm1 = vweird.f32 %v409_v11 }
   0xa   :  { %v46_v13 = vsub.f32 1.0, %v45_v12  ;;  %v405_v12 = vld [vmem:[%s604_s1] ss:$0 sm:$0xff] }
   0xc   :  { %v47_v14 = vmul.f32 %v409_v11, %v46_v13 }
   0xd   :  { %42 = vadd.xlane.f32.xlu1 %v41_v8  ;;  %36 = vadd.xlane.f32.xlu0 %v35_v9 }
   0xe   :  { %v48_v15 = vadd.f32 %v409_v11, %v47_v14 }
  0x10   :  { %v50_v16 = vsel %vm49_vm1, %v409_v11, %v48_v15 }
  0x78   :  { %v40_v17 = vpop.xlane.xlu1 %39  ;;  %v34_v18 = vpop.xlane.xlu0 %33 }
  0x79   :  { %v53_v19 = vmul.f32 %v50_v16, %v40_v17  ;;  %v51_v20 = vmul.f32 %v50_v16, %v34_v18 }
  0x7b   :  { %v467_v21 = vsub.f32 %v399_v2, %v53_v19  ;;  %v469_v22 = vsub.f32 %v395_v3, %v51_v20  ;;  %v406_v19 = vld [vmem:[%s605_s2] ss:$0 sm:$0xff] }
  0x7d   :  { %v61_v23 = vmul.f32 %v467_v21, %v467_v21  ;;  %v59_v24 = vmul.f32 %v469_v22, %v469_v22 }
  0x7f   :  { %v69_v25 = vsel %vm31_vm0, %v61_v23, 0.0  ;;  %v63_v26 = vsel %vm31_vm0, %v59_v24, 0.0 }
  0x80   :  { %v43_v27 = vpop.xlane.xlu1 %42  ;;  %70 = vadd.xlane.f32.xlu0 %v69_v25  ;;  %64 = vadd.xlane.f32.xlu2 %v63_v26  ;;  %v37_v28 = vpop.xlane.xlu0 %36 }
  0x81   :  { %v54_v29 = vmul.f32 %v50_v16, %v43_v27  ;;  %v52_v30 = vmul.f32 %v50_v16, %v37_v28 }
  0x83   :  { %v477_v31 = vsub.f32 %v400_v6, %v54_v29  ;;  %v479_v32 = vsub.f32 %v396_v7, %v52_v30 }
  0x85   :  { %v62_v33 = vmul.f32 %v477_v31, %v477_v31  ;;  %v60_v34 = vmul.f32 %v479_v32, %v479_v32 }
  0x87   :  { %v72_v35 = vsel %vm31_vm0, %v62_v33, 0.0  ;;  %v66_v36 = vsel %vm31_vm0, %v60_v34, 0.0 }
  0x88   :  { %73 = vadd.xlane.f32.xlu1 %v72_v35  ;;  %67 = vadd.xlane.f32.xlu2 %v66_v36 }
  0xf3   :  { %v65_v38 = vpop.xlane.xlu2 %64  ;;  %v71_v39 = vpop.xlane.xlu0 %70 }
  0xf4   :  { %v75_v40 = vmul.f32 %v65_v38, %v50_v16  ;;  %v77_v41 = vmul.f32 %v71_v39, %v50_v16 }
  0xf6   :  { %v79_v43 = vadd.f32 1e-12, %v75_v40  ;;  %v81_v44 = vadd.f32 1e-12, %v77_v41 }
  0xf8   :  { %410 = vrsqrt.f32 %v79_v43  ;;  %vm109_vm4 = vweird.f32 %v81_v44  ;;  %vm89_vm5 = vweird.f32 %v79_v43 }
  0xf9   :  { %412 = vrsqrt.f32 %v81_v44 }
  0xfb   :  { %v74_v45 = vpop.xlane.xlu1 %73  ;;  %v68_v46 = vpop.xlane.xlu2 %67 }
  0xfc   :  { %v78_v47 = vmul.f32 %v74_v45, %v50_v16  ;;  %v76_v48 = vmul.f32 %v68_v46, %v50_v16 }
  0xfe   :  { %v411_v49 = vpop.eup %410  ;;  %v82_v50 = vadd.f32 1e-12, %v78_v47  ;;  %v80_v51 = vadd.f32 1e-12, %v76_v48 }
  0xff   :  { %v413_v52 = vpop.eup %412  ;;  %v84_v53 = vmul.f32 %v411_v49, %v79_v43  ;;  %vm90_vm3 = vweird.f32 %v411_v49 }
 0x100   :  { %v104_v54 = vmul.f32 %v413_v52, %v81_v44  ;;  %414 = vrsqrt.f32 %v82_v50  ;;  %vm110_vm2 = vweird.f32 %v413_v52  ;;  %vm91_vm7 = vmor %vm89_vm5, %vm90_vm3  ;;  %vm119_vm10 = vweird.f32 %v82_v50 }
 0x101   :  { %v85_v55 = vmul.f32 %v411_v49, %v84_v53  ;;  %416 = vrsqrt.f32 %v80_v51  ;;  %vm111_vm6 = vmor %vm109_vm4, %vm110_vm2  ;;  %vm99_vm12 = vweird.f32 %v80_v51 }
 0x102   :  { %v105_v56 = vmul.f32 %v413_v52, %v104_v54 }
 0x103   :  { %v86_v57 = vmul.f32 0.5, %v85_v55 }
 0x104   :  { %v106_v58 = vmul.f32 0.5, %v105_v56 }
 0x105   :  { %v87_v59 = vsub.f32 1.5, %v86_v57 }
 0x106   :  { %v415_v60 = vpop.eup %414  ;;  %v107_v61 = vsub.f32 1.5, %v106_v58 }
 0x107   :  { %v417_v62 = vpop.eup %416  ;;  %v114_v63 = vmul.f32 %v415_v60, %v82_v50  ;;  %v88_v0 = vmul.f32 %v411_v49, %v87_v59  ;;  %vm120_vm8 = vweird.f32 %v415_v60 }
 0x108   :  { %v108_v1 = vmul.f32 %v413_v52, %v107_v61  ;;  %v94_v2 = vmul.f32 %v417_v62, %v80_v51  ;;  %vm100_vm9 = vweird.f32 %v417_v62  ;;  %vm121_vm11 = vmor %vm119_vm10, %vm120_vm8 }
 0x109   :  { %v115_v3 = vmul.f32 %v415_v60, %v114_v63  ;;  %v92_v7 = vsel %vm91_vm7, %v411_v49, %v88_v0  ;;  %vm101_vm13 = vmor %vm99_vm12, %vm100_vm9 }
 0x10a   :  { %v95_v4 = vmul.f32 %v417_v62, %v94_v2  ;;  %v112_v5 = vsel %vm111_vm6, %v413_v52, %v108_v1  ;;  %v123_v13 = vmul.f32 %v92_v7, %v469_v22  ;;  %vm368_vm6 = vcmask 257024  }
 0x10b   :  { %v116_v6 = vmul.f32 0.5, %v115_v3  ;;  %v125_v10 = vmul.f32 %v112_v5, %v467_v21 }
 0x10c   :  { %v96_v8 = vmul.f32 0.5, %v95_v4  ;;  %v130_v23 = vmul.f32 %v405_v12, %v123_v13 }
 0x10d   :  { %v117_v9 = vsub.f32 1.5, %v116_v6  ;;  %v132_v20 = vmul.f32 %v405_v12, %v125_v10 }
 0x10e   :  { %v97_v11 = vsub.f32 1.5, %v96_v8  ;;  %v137_v27 = vadd.f32 %v406_v19, %v130_v23 }
 0x10f   :  { %v118_v14 = vmul.f32 %v415_v60, %v117_v9  ;;  %v139_v25 = vadd.f32 %v406_v19, %v132_v20 }
 0x110   :  { %v98_v15 = vmul.f32 %v417_v62, %v97_v11 }
 0x111   :  { %v122_v16 = vsel %vm121_vm11, %v415_v60, %v118_v14 }
 0x112   :  { %v126_v17 = vmul.f32 %v122_v16, %v477_v31  ;;  %v102_v18 = vsel %vm101_vm13, %v417_v62, %v98_v15  ;;  %v407_v31 = vld [vmem:[%s606_s4] ss:$0 sm:$0xff] }
 0x113   :  { %v124_v21 = vmul.f32 %v102_v18, %v479_v32 }
 0x114   :  { %v133_v24 = vmul.f32 %v405_v12, %v126_v17 }
 0x115   :  { %v131_v22 = vmul.f32 %v405_v12, %v124_v21 }
 0x116   :  { %v140_v26 = vadd.f32 %v406_v19, %v133_v24 }
 0x117   :  { %v138_v28 = vadd.f32 %v406_v19, %v131_v22 }
 0x118   :  { %v142_v29 = vpack.c.bf16 %v140_v26, %v139_v25 }
 0x119   :  { %v141_v30 = vpack.c.bf16 %v138_v28, %v137_v27 }
 0x11a   :  { %386 = vmatmul.msk.bf16.vlgmr.msra.gmra.mxu1 %vm31_vm0, %v142_v29 }
 0x11b   :  { %385 = vmatmul.msk.bf16.vlgmr.msra.gmra.mxu0 %vm31_vm0, %v141_v30 }
 0x197   :  { %v183_v33 = vpop.f32.mrf.mxu1 }
 0x198   :  { %v178_v34 = vpop.f32.mrf.mxu0  ;;  %v508_v32 = vadd.f32 %v407_v31, %v183_v33 }
 0x199   :  { %v510_v35 = vadd.f32 %v407_v31, %v178_v34 }
 0x19a   :  { %v513_v36 = vmul.f32 0.70710677, %v508_v32 }
 0x19b   :  { %v516_v37 = vmul.f32 0.70710677, %v510_v35 }
 0x19c   :  { %v276_v38 = vmul.f32 %v513_v36, %v513_v36 }
 0x19d   :  { %v196_v39 = vmul.f32 %v516_v37, %v516_v37 }
 0x19e   :  { %v277_v40 = vmin.f32 %v276_v38, 16.0 }
 0x19f   :  { %v522_v41 = vmin.f32 %v196_v39, 16.0  ;;  %v185_v42 = vpop.f32.mrf.mxu1 }
 0x1a0   :  { %v278_v43 = vmul.f32 2.1237322e-06, %v277_v40  ;;  %v289_v44 = vmul.f32 3.8918573e-05, %v277_v40  ;;  %v180_v45 = vpop.f32.mrf.mxu0  ;;  %v524_v46 = vadd.f32 %v407_v31, %v185_v42 }
 0x1a1   :  { %v198_v47 = vmul.f32 2.1237322e-06, %v522_v41  ;;  %v209_v48 = vmul.f32 3.8918573e-05, %v522_v41  ;;  %v528_v49 = vadd.f32 %v407_v31, %v180_v45 }
 0x1a2   :  { %v279_v50 = vadd.f32 0.00028619796, %v278_v43  ;;  %v290_v51 = vadd.f32 0.001143296, %v289_v44  ;;  %v534_v57 = vmul.f32 0.70710677, %v524_v46 }
 0x1a3   :  { %v199_v52 = vadd.f32 0.00028619796, %v198_v47  ;;  %v210_v53 = vadd.f32 0.001143296, %v209_v48  ;;  %v531_v56 = vmul.f32 0.70710677, %v528_v49 }
 0x1a4   :  { %v280_v54 = vmul.f32 %v279_v50, %v277_v40  ;;  %v291_v55 = vmul.f32 %v290_v51, %v277_v40  ;;  %v316_v63 = vmul.f32 %v534_v57, %v534_v57 }
 0x1a5   :  { %v200_v58 = vmul.f32 %v199_v52, %v522_v41  ;;  %v211_v59 = vmul.f32 %v210_v53, %v522_v41  ;;  %v236_v62 = vmul.f32 %v531_v56, %v531_v56 }
 0x1a6   :  { %v281_v60 = vadd.f32 0.0036580483, %v280_v54  ;;  %v292_v61 = vadd.f32 0.014752088, %v291_v55  ;;  %v546_v7 = vmin.f32 %v316_v63, 16.0 }
 0x1a7   :  { %v201_v0 = vadd.f32 0.0036580483, %v200_v58  ;;  %v212_v1 = vadd.f32 0.014752088, %v211_v59  ;;  %v542_v4 = vmin.f32 %v236_v62, 16.0 }
 0x1a8   :  { %v282_v2 = vmul.f32 %v281_v60, %v277_v40  ;;  %v293_v3 = vmul.f32 %v292_v61, %v277_v40  ;;  %v318_v19 = vmul.f32 2.1237322e-06, %v546_v7  ;;  %v329_v20 = vmul.f32 3.8918573e-05, %v546_v7 }
 0x1a9   :  { %v202_v5 = vmul.f32 %v201_v0, %v522_v41  ;;  %v213_v6 = vmul.f32 %v212_v1, %v522_v41  ;;  %v238_v10 = vmul.f32 2.1237322e-06, %v542_v4  ;;  %v249_v12 = vmul.f32 3.8918573e-05, %v542_v4 }
 0x1aa   :  { %v283_v8 = vadd.f32 0.05243302, %v282_v2  ;;  %v294_v9 = vadd.f32 0.112945676, %v293_v3  ;;  %v330_v28 = vadd.f32 0.001143296, %v329_v20 }
 0x1ab   :  { %v214_v11 = vadd.f32 0.112945676, %v213_v6  ;;  %v203_v13 = vadd.f32 0.05243302, %v202_v5  ;;  %v239_v16 = vadd.f32 0.00028619796, %v238_v10 }
 0x1ac   :  { %v284_v14 = vmul.f32 %v283_v8, %v277_v40  ;;  %v295_v15 = vmul.f32 %v294_v9, %v277_v40  ;;  %v250_v18 = vadd.f32 0.001143296, %v249_v12  ;;  %v319_v31 = vadd.f32 0.00028619796, %v318_v19 }
 0x1ad   :  { %v215_v17 = vmul.f32 %v214_v11, %v522_v41  ;;  %v240_v24 = vmul.f32 %v239_v16, %v542_v4  ;;  %v204_v25 = vmul.f32 %v203_v13, %v522_v41  ;;  %v331_v42 = vmul.f32 %v330_v28, %v546_v7 }
 0x1ae   :  { %v296_v21 = vadd.f32 0.4994258, %v295_v15  ;;  %v251_v22 = vmul.f32 %v250_v18, %v542_v4  ;;  %v285_v26 = vadd.f32 0.18741608, %v284_v14  ;;  %v320_v45 = vmul.f32 %v319_v31, %v546_v7 }
 0x1af   :  { %v216_v23 = vadd.f32 0.4994258, %v215_v17  ;;  %v241_v38 = vadd.f32 0.0036580483, %v240_v24  ;;  %v205_v43 = vadd.f32 0.18741608, %v204_v25 }
 0x1b0   :  { %v297_v27 = vmul.f32 %v296_v21, %v277_v40  ;;  %v252_v30 = vadd.f32 0.014752088, %v251_v22  ;;  %v286_v44 = vmul.f32 %v285_v26, %v277_v40  ;;  %v332_v50 = vadd.f32 0.014752088, %v331_v42 }
 0x1b1   :  { %v217_v29 = vmul.f32 %v216_v23, %v522_v41  ;;  %v242_v47 = vmul.f32 %v241_v38, %v542_v4  ;;  %v206_v51 = vmul.f32 %v205_v43, %v522_v41  ;;  %v321_v54 = vadd.f32 0.0036580483, %v320_v45 }
 0x1b2   :  { %v298_v33 = vadd.f32 1.0, %v297_v27  ;;  %v253_v39 = vmul.f32 %v252_v30, %v542_v4  ;;  %v287_v52 = vadd.f32 1.1283791, %v286_v44  ;;  %v333_v55 = vmul.f32 %v332_v50, %v546_v7 }
 0x1b3   :  { %v218_v34 = vadd.f32 1.0, %v217_v29  ;;  %v243_v40 = vadd.f32 0.05243302, %v242_v47  ;;  %v207_v62 = vadd.f32 1.1283791, %v206_v51  ;;  %v322_v5 = vmul.f32 %v321_v54, %v546_v7 }
 0x1b4   :  { %418 = vrcp.f32 %v298_v33  ;;  %v254_v48 = vadd.f32 0.112945676, %v253_v39  ;;  %v288_v0 = vmul.f32 %v287_v52, %v513_v36  ;;  %v334_v1 = vadd.f32 0.112945676, %v333_v55 }
 0x1b5   :  { %420 = vrcp.f32 %v218_v34  ;;  %v308_v3 = vand.u32 2147483647, %v298_v33  ;;  %v230_v8 = vand.u32 2147483648, %v218_v34  ;;  %v310_v9 = vand.u32 2147483648, %v298_v33 }
 0x1b6   :  { %v255_v53 = vmul.f32 %v254_v48, %v542_v4  ;;  %v335_v10 = vmul.f32 %v334_v1, %v546_v7  ;;  %v244_v12 = vmul.f32 %v243_v40, %v542_v4  ;;  %v228_v36 = vand.u32 2147483647, %v218_v34 }
 0x1b7   :  { %vm304_vm0 = vweird.f32 %v298_v33  ;;  %v323_v17 = vadd.f32 0.05243302, %v322_v5  ;;  %vm224_vm1 = vweird.f32 %v218_v34  ;;  %v311_v19 = vor.u32 1.1754944e-38, %v310_v9 }
 0x1b8   :  { %v256_v61 = vadd.f32 0.4994258, %v255_v53  ;;  %v336_v15 = vadd.f32 0.4994258, %v335_v10  ;;  %v231_v21 = vor.u32 1.1754944e-38, %v230_v8  ;;  %vm309_vm4 = vcmp.eq.f32.partialorder %v308_v3, 8.507059e+37 }
 0x1b9   :  { %v245_v24 = vadd.f32 0.18741608, %v244_v12  ;;  %v208_v22 = vmul.f32 %v207_v62, %v516_v37  ;;  %vm229_vm5 = vcmp.eq.f32.partialorder %v228_v36, 8.507059e+37  ;;  %v324_v29 = vmul.f32 %v323_v17, %v546_v7 }
 0x1ba   :  { %v419_v58 = vpop.eup %418  ;;  %v257_v41 = vmul.f32 %v256_v61, %v542_v4  ;;  %v337_v20 = vmul.f32 %v336_v15, %v546_v7  ;;  %v190_v43 = vmul.f32 0.5, %v508_v32  ;;  %v188_v45 = vmul.f32 0.5, %v510_v35 }
 0x1bb   :  { %v421_v59 = vpop.eup %420  ;;  %v300_v60 = vmul.f32 %v419_v58, %v298_v33  ;;  %vm305_vm14 = vweird.f32 %v419_v58  ;;  %v246_v38 = vmul.f32 %v245_v24, %v542_v4  ;;  %v325_v44 = vadd.f32 0.18741608, %v324_v29 }
 0x1bc   :  { %v220_v63 = vmul.f32 %v421_v59, %v218_v34  ;;  %v569_v13 = vadd.f32 1.0, %v257_v41  ;;  %vm225_vm15 = vweird.f32 %v421_v59  ;;  %vm306_vm2 = vmor %vm304_vm0, %vm305_vm14  ;;  %v338_v30 = vadd.f32 1.0, %v337_v20 }
 0x1bd   :  { %v301_v2 = vsub.f32 1.0, %v300_v60  ;;  %vm226_vm3 = vmor %vm224_vm1, %vm225_vm15  ;;  %v247_v51 = vadd.f32 1.1283791, %v246_v38  ;;  %v326_v32 = vmul.f32 %v325_v44, %v546_v7  ;;  %v189_v8 = vmul.f32 0.5, %v528_v49 }
 0x1be   :  { %v221_v6 = vsub.f32 1.0, %v220_v63  ;;  %422 = vrcp.f32 %v569_v13  ;;  %v270_v52 = vand.u32 2147483648, %v569_v13  ;;  %v268_v4 = vand.u32 2147483647, %v569_v13 }
 0x1bf   :  { %v302_v11 = vmul.f32 %v419_v58, %v301_v2  ;;  %424 = vrcp.f32 %v338_v30  ;;  %vm264_vm8 = vweird.f32 %v569_v13  ;;  %v248_v61 = vmul.f32 %v247_v51, %v531_v56 }
 0x1c0   :  { %v222_v14 = vmul.f32 %v421_v59, %v221_v6  ;;  %v271_v40 = vor.u32 1.1754944e-38, %v270_v52  ;;  %vm269_vm10 = vcmp.eq.f32.partialorder %v268_v4, 8.507059e+37  ;;  %v350_v1 = vand.u32 2147483648, %v338_v30 }
 0x1c1   :  { %v303_v16 = vadd.f32 %v419_v58, %v302_v11  ;;  %v348_v41 = vand.u32 2147483647, %v338_v30  ;;  %vm344_vm12 = vweird.f32 %v338_v30 }
 0x1c2   :  { %v223_v18 = vadd.f32 %v421_v59, %v222_v14  ;;  %v351_v9 = vor.u32 1.1754944e-38, %v350_v1 }
 0x1c3   :  { %v307_v23 = vsel %vm306_vm2, %v419_v58, %v303_v16  ;;  %vm349_vm14 = vcmp.eq.f32.partialorder %v348_v41, 8.507059e+37  ;;  %v191_v16 = vmul.f32 0.5, %v524_v46 }
 0x1c4   :  { %v227_v25 = vsel %vm226_vm3, %v421_v59, %v223_v18  ;;  %v312_v26 = vsel %vm309_vm4, %v311_v19, %v307_v23  ;;  %v423_v33 = vpop.eup %422 }
 0x1c5   :  { %v232_v27 = vsel %vm229_vm5, %v231_v21, %v227_v25  ;;  %v313_v28 = vmul.f32 %v312_v26, %v288_v0  ;;  %v260_v42 = vmul.f32 %v423_v33, %v569_v13  ;;  %vm265_vm7 = vweird.f32 %v423_v33  ;;  %v425_v55 = vpop.eup %424 }
 0x1c6   :  { %v233_v31 = vmul.f32 %v232_v27, %v208_v22  ;;  %v340_v35 = vmul.f32 %v425_v55, %v338_v30  ;;  %vm266_vm9 = vmor %vm264_vm8, %vm265_vm7  ;;  %v327_v0 = vadd.f32 1.1283791, %v326_v32  ;;  %vm345_vm11 = vweird.f32 %v425_v55 }
 0x1c7   :  { %v389_v34 = vclamps-f32 %v313_v28, 1.0  ;;  %v261_v48 = vsub.f32 1.0, %v260_v42  ;;  %vm346_vm13 = vmor %vm344_vm12, %vm345_vm11 }
 0x1c8   :  { %v387_v39 = vclamps-f32 %v233_v31, 1.0  ;;  %v341_v62 = vsub.f32 1.0, %v340_v35  ;;  %v328_v56 = vmul.f32 %v327_v0, %v534_v57 }
 0x1c9   :  { %v358_v37 = vadd.f32 1.0, %v389_v34  ;;  %v262_v54 = vmul.f32 %v423_v33, %v261_v48 }
 0x1ca   :  { %v356_v47 = vadd.f32 1.0, %v387_v39  ;;  %v342_v3 = vmul.f32 %v425_v55, %v341_v62 }
 0x1cb   :  { %v362_v50 = vmul.f32 %v358_v37, %v190_v43  ;;  %v263_v60 = vadd.f32 %v423_v33, %v262_v54 }
 0x1cc   :  { %v360_v53 = vmul.f32 %v356_v47, %v188_v45  ;;  %v343_v6 = vadd.f32 %v425_v55, %v342_v3 }
 0x1cd   :  { %v366_v58 = vpack.c.bf16 %v362_v50, %v362_v50  ;;  %v267_v7 = vsel %vm266_vm9, %v423_v33, %v263_v60 }
 0x1ce   :  { %v364_v59 = vpack.c.bf16 %v360_v53, %v360_v53  ;;  %v272_v63 = vsel %vm269_vm10, %v271_v40, %v267_v7  ;;  %v347_v11 = vsel %vm346_vm13, %v425_v55, %v343_v6 }
 0x1cf   :  { %371 = vst.msk [vmem:[%s608_s5 + $0x8] sm:$0xf] %vm368_vm6, %v366_v58  ;;  %v273_v2 = vmul.f32 %v272_v63, %v248_v61  ;;  %v352_v12 = vsel %vm349_vm14, %v351_v9, %v347_v11 }
 0x1d0   :  { %369 = vst.msk [vmem:[%s608_s5] sm:$0xf] %vm368_vm6, %v364_v59  ;;  %v353_v14 = vmul.f32 %v352_v12, %v328_v56 }
 0x1d1   :  { %v388_v5 = vclamps-f32 %v273_v2, 1.0 }
 0x1d2   :  { %v390_v15 = vclamps-f32 %v353_v14, 1.0 }
 0x1d3   :  { %v357_v10 = vadd.f32 1.0, %v388_v5 }
 0x1d4   :  { %v359_v49 = vadd.f32 1.0, %v390_v15 }
 0x1d5   :  { %v361_v13 = vmul.f32 %v357_v10, %v189_v8 }
 0x1d6   :  { %v363_v17 = vmul.f32 %v359_v49, %v191_v16 }
 0x1d7   :  { %v365_v36 = vpack.c.bf16 %v361_v13, %v361_v13 }
 0x1d8   :  { %v367_v18 = vpack.c.bf16 %v363_v17, %v363_v17 }
 0x1d9   :  { %370 = vst.msk [vmem:[%s608_s5 + $0x4] sm:$0xf] %vm368_vm6, %v365_v36 }
 0x1da   :  { %372 = vst.msk [vmem:[%s608_s5 + $0xc] sm:$0xf] %vm368_vm6, %v367_v18 }

// kernel: mask_transformer_img_forward.23
= control target key start
LH: loop header
LB: loop body
LE: loop exit
PB: predicated region body
PF: predicated region fallthrough
CT: control target
= control target key end

     0   :  { %vm29_vm0 = vcmask 261120   ;;  %s349_s0 = inlined_call_operand.vmem [shape: bf16[32,32], index: 0, kind: input, shape index: {}]   ;;  %s350_s1 = inlined_call_operand.vmem [shape: f32[1,32], index: 1, kind: input, shape index: {}]   ;;  %s351_s2 = inlined_call_operand.vmem [shape: f32[1,32], index: 2, kind: input, shape index: {}]   ;;  %s352_s3 = inlined_call_operand.vmem [shape: bf16[32,128], index: 3, kind: input, shape index: {}]   ;;  %s353_s4 = inlined_call_operand.hbm [shape: f32[32,128], index: 4, kind: output, shape index: {}]  }
   0x1   :  { %v224_v0 = vld [vmem:[%s349_s0 + $0x8] sm:$0xff]   ;;  %v217_v1 = vld [vmem:[%s349_s0] sm:$0xff]  }
   0x2   :  { %v222_v2 = vunpack.c.l.bf16 %v224_v0  ;;  %v218_v3 = vunpack.c.l.bf16 %v217_v1 }
   0x3   :  { %9 = vsyncpa [#allocation3], 0  ;;  %v223_v6 = vunpack.c.h.bf16 %v224_v0  ;;  %v219_v7 = vunpack.c.h.bf16 %v217_v1  ;;  %v269_v10 = vmov 32.0   ;;  %v215_v37 = vld [vmem:[%s352_s3 + $0x8] sm:$0xff]  ;;  %v214_v42 = vld [vmem:[%s352_s3] sm:$0xff]  ;;  %s192_s27 = sshll.u32 %s353_s4, 4  ;;  %s193_s27 = int_to_ptr.hbm [resolvable:$true] %s192_s27 }
   0x4   :  { %v36_v4 = vsel %vm29_vm0, %v222_v2, 0.0  ;;  %v30_v5 = vsel %vm29_vm0, %v218_v3, 0.0  ;;  %233 = vrcp.f32 %v269_v10  ;;  %169 = vmatpush.bf16.msra.mxu0 %v215_v37  ;;  %225 = vmatpush.bf16.msra.mxu1 %v215_v37  ;;  %s271_s28 = smov 128   ;;  %s272_s29 = smov 8  }
   0x5   :  { %37 = vadd.xlane.f32.xlu1 %v36_v4  ;;  %31 = vadd.xlane.f32.xlu0 %v30_v5  ;;  %v39_v8 = vsel %vm29_vm0, %v223_v6, 0.0  ;;  %v33_v9 = vsel %vm29_vm0, %v219_v7, 0.0 }
   0x8   :  { %170 = vmatpush.bf16.msra.mxu0 %v214_v42  ;;  %226 = vmatpush.bf16.msra.mxu1 %v214_v42 }
   0xa   :  { %v234_v11 = vpop.eup %233 }
   0xb   :  { %v43_v12 = vmul.f32 32.0, %v234_v11  ;;  %vm47_vm1 = vweird.f32 %v234_v11 }
   0xd   :  { %40 = vadd.xlane.f32.xlu1 %v39_v8  ;;  %34 = vadd.xlane.f32.xlu0 %v33_v9  ;;  %v44_v13 = vsub.f32 1.0, %v43_v12  ;;  %v231_v12 = vld [vmem:[%s350_s1] ss:$0 sm:$0xff]  ;;  %s270_s1 = smov [#allocation2]  }
   0xf   :  { %v45_v14 = vmul.f32 %v234_v11, %v44_v13 }
  0x11   :  { %v46_v15 = vadd.f32 %v234_v11, %v45_v14 }
  0x13   :  { %v48_v16 = vsel %vm47_vm1, %v234_v11, %v46_v15 }
  0x78   :  { %v38_v17 = vpop.xlane.xlu1 %37  ;;  %v32_v18 = vpop.xlane.xlu0 %31 }
  0x79   :  { %v51_v19 = vmul.f32 %v48_v16, %v38_v17  ;;  %v49_v20 = vmul.f32 %v48_v16, %v32_v18 }
  0x7b   :  { %v308_v21 = vsub.f32 %v222_v2, %v51_v19  ;;  %v310_v22 = vsub.f32 %v218_v3, %v49_v20  ;;  %v232_v19 = vld [vmem:[%s351_s2] ss:$0 sm:$0xff]  ;;  %s190_s2 = sshll.u32 %s270_s1, 4  ;;  %s191_s2 = int_to_ptr.vmem [resolvable:$true] %s190_s2 }
  0x7d   :  { %v59_v23 = vmul.f32 %v308_v21, %v308_v21  ;;  %v57_v24 = vmul.f32 %v310_v22, %v310_v22 }
  0x7f   :  { %v67_v25 = vsel %vm29_vm0, %v59_v23, 0.0  ;;  %v61_v26 = vsel %vm29_vm0, %v57_v24, 0.0 }
  0x80   :  { %v41_v27 = vpop.xlane.xlu1 %40  ;;  %68 = vadd.xlane.f32.xlu0 %v67_v25  ;;  %62 = vadd.xlane.f32.xlu2 %v61_v26  ;;  %v35_v28 = vpop.xlane.xlu0 %34 }
  0x81   :  { %v52_v29 = vmul.f32 %v48_v16, %v41_v27  ;;  %v50_v30 = vmul.f32 %v48_v16, %v35_v28 }
  0x83   :  { %v318_v31 = vsub.f32 %v223_v6, %v52_v29  ;;  %v320_v32 = vsub.f32 %v219_v7, %v50_v30 }
  0x85   :  { %v60_v33 = vmul.f32 %v318_v31, %v318_v31  ;;  %v58_v34 = vmul.f32 %v320_v32, %v320_v32 }
  0x87   :  { %v70_v35 = vsel %vm29_vm0, %v60_v33, 0.0  ;;  %v64_v36 = vsel %vm29_vm0, %v58_v34, 0.0 }
  0x88   :  { %71 = vadd.xlane.f32.xlu1 %v70_v35  ;;  %65 = vadd.xlane.f32.xlu2 %v64_v36 }
  0xf3   :  { %v63_v38 = vpop.xlane.xlu2 %62  ;;  %v69_v39 = vpop.xlane.xlu0 %68 }
  0xf4   :  { %v73_v40 = vmul.f32 %v63_v38, %v48_v16  ;;  %v75_v41 = vmul.f32 %v69_v39, %v48_v16 }
  0xf6   :  { %v77_v43 = vadd.f32 1e-12, %v73_v40  ;;  %v79_v44 = vadd.f32 1e-12, %v75_v41 }
  0xf8   :  { %235 = vrsqrt.f32 %v77_v43  ;;  %vm107_vm4 = vweird.f32 %v79_v44  ;;  %vm87_vm5 = vweird.f32 %v77_v43 }
  0xf9   :  { %237 = vrsqrt.f32 %v79_v44 }
  0xfb   :  { %v72_v45 = vpop.xlane.xlu1 %71  ;;  %v66_v46 = vpop.xlane.xlu2 %65 }
  0xfc   :  { %v76_v47 = vmul.f32 %v72_v45, %v48_v16  ;;  %v74_v48 = vmul.f32 %v66_v46, %v48_v16 }
  0xfe   :  { %v236_v49 = vpop.eup %235  ;;  %v80_v50 = vadd.f32 1e-12, %v76_v47  ;;  %v78_v51 = vadd.f32 1e-12, %v74_v48 }
  0xff   :  { %v238_v52 = vpop.eup %237  ;;  %v82_v53 = vmul.f32 %v236_v49, %v77_v43  ;;  %vm88_vm3 = vweird.f32 %v236_v49 }
 0x100   :  { %v102_v54 = vmul.f32 %v238_v52, %v79_v44  ;;  %239 = vrsqrt.f32 %v80_v50  ;;  %vm108_vm2 = vweird.f32 %v238_v52  ;;  %vm89_vm7 = vmor %vm87_vm5, %vm88_vm3  ;;  %vm117_vm10 = vweird.f32 %v80_v50 }
 0x101   :  { %v83_v55 = vmul.f32 %v236_v49, %v82_v53  ;;  %241 = vrsqrt.f32 %v78_v51  ;;  %vm109_vm6 = vmor %vm107_vm4, %vm108_vm2  ;;  %vm97_vm12 = vweird.f32 %v78_v51 }
 0x102   :  { %v103_v56 = vmul.f32 %v238_v52, %v102_v54 }
 0x103   :  { %v84_v57 = vmul.f32 0.5, %v83_v55 }
 0x104   :  { %v104_v58 = vmul.f32 0.5, %v103_v56 }
 0x105   :  { %v85_v59 = vsub.f32 1.5, %v84_v57 }
 0x106   :  { %v240_v60 = vpop.eup %239  ;;  %v105_v61 = vsub.f32 1.5, %v104_v58 }
 0x107   :  { %v242_v62 = vpop.eup %241  ;;  %v112_v63 = vmul.f32 %v240_v60, %v80_v50  ;;  %v86_v0 = vmul.f32 %v236_v49, %v85_v59  ;;  %vm118_vm8 = vweird.f32 %v240_v60 }
 0x108   :  { %v106_v1 = vmul.f32 %v238_v52, %v105_v61  ;;  %v92_v2 = vmul.f32 %v242_v62, %v78_v51  ;;  %vm98_vm9 = vweird.f32 %v242_v62  ;;  %vm119_vm11 = vmor %vm117_vm10, %vm118_vm8 }
 0x109   :  { %v113_v3 = vmul.f32 %v240_v60, %v112_v63  ;;  %v90_v7 = vsel %vm89_vm7, %v236_v49, %v86_v0  ;;  %vm99_vm13 = vmor %vm97_vm12, %vm98_vm9 }
 0x10a   :  { %v93_v4 = vmul.f32 %v242_v62, %v92_v2  ;;  %v110_v5 = vsel %vm109_vm6, %v238_v52, %v106_v1  ;;  %v121_v13 = vmul.f32 %v90_v7, %v310_v22 }
 0x10b   :  { %v114_v6 = vmul.f32 0.5, %v113_v3  ;;  %v123_v10 = vmul.f32 %v110_v5, %v308_v21 }
 0x10c   :  { %v94_v8 = vmul.f32 0.5, %v93_v4  ;;  %v128_v23 = vmul.f32 %v231_v12, %v121_v13 }
 0x10d   :  { %v115_v9 = vsub.f32 1.5, %v114_v6  ;;  %v130_v20 = vmul.f32 %v231_v12, %v123_v10 }
 0x10e   :  { %v95_v11 = vsub.f32 1.5, %v94_v8  ;;  %v135_v27 = vadd.f32 %v232_v19, %v128_v23 }
 0x10f   :  { %v116_v14 = vmul.f32 %v240_v60, %v115_v9  ;;  %v137_v25 = vadd.f32 %v232_v19, %v130_v20 }
 0x110   :  { %v96_v15 = vmul.f32 %v242_v62, %v95_v11 }
 0x111   :  { %v120_v16 = vsel %vm119_vm11, %v240_v60, %v116_v14 }
 0x112   :  { %v124_v17 = vmul.f32 %v120_v16, %v318_v31  ;;  %v100_v18 = vsel %vm99_vm13, %v242_v62, %v96_v15 }
 0x113   :  { %v122_v21 = vmul.f32 %v100_v18, %v320_v32 }
 0x114   :  { %v131_v24 = vmul.f32 %v231_v12, %v124_v17 }
 0x115   :  { %v129_v22 = vmul.f32 %v231_v12, %v122_v21 }
 0x116   :  { %v138_v26 = vadd.f32 %v232_v19, %v131_v24 }
 0x117   :  { %v136_v28 = vadd.f32 %v232_v19, %v129_v22 }
 0x118   :  { %v140_v29 = vpack.c.bf16 %v138_v26, %v137_v25 }
 0x119   :  { %v139_v30 = vpack.c.bf16 %v136_v28, %v135_v27 }
 0x11a   :  { %213 = vmatmul.msk.bf16.vlgmr.msra.gmra.mxu1 %vm29_vm0, %v140_v29 }
 0x11b   :  { %212 = vmatmul.msk.bf16.vlgmr.msra.gmra.mxu0 %vm29_vm0, %v139_v30 }
 0x197   :  { %v177_v31 = vpop.f32.mrf.mxu1 }
 0x198   :  { %v172_v33 = vpop.f32.mrf.mxu0  ;;  %184 = vst [vmem:[#allocation2 + $0x10] sm:$0xff] %v177_v31 }
 0x199   :  { %182 = vst [vmem:[#allocation2] sm:$0xff] %v172_v33 }
 0x19f   :  { %v179_v32 = vpop.f32.mrf.mxu1 }
 0x1a0   :  { %v174_v34 = vpop.f32.mrf.mxu0  ;;  %185 = vst [vmem:[#allocation2 + $0x18] sm:$0xff] %v179_v32 }
 0x1a1   :  { %183 = vst [vmem:[#allocation2 + $0x8] sm:$0xff] %v174_v34 }
 0x1a2   :  { %198 = dma.vmem_to_hbm [thread:$0]  %s191_s2, 512, %s193_s27, [#allocation3], %s271_s28, %s271_s28, %s272_s29  }
 0x1a3   :  { %267 = dma.done.wait [#allocation3], 512  }
 0x1a4   :  { %268 = vsyncadd [#allocation3], 4294966784 }
 0x1a5   :  { %203 = vsyncpa [#allocation3], 1 }

// kernel: mask_transformer_img_forward.17
= control target key start
LH: loop header
LB: loop body
LE: loop exit
PB: predicated region body
PF: predicated region fallthrough
CT: control target
= control target key end

     0   :  { %vm41_vm0 = vcmask 261120   ;;  %v586_v15 = vmov 32.0   ;;  %vm155_vm11 = vcmask 257024   ;;  %s835_s0 = inlined_call_operand.vmem [shape: bf16[32,32], index: 0, kind: input, shape index: {}]   ;;  %s836_s6 = inlined_call_operand.vmem [shape: f32[1,32], index: 6, kind: input, shape index: {}]   ;;  %s837_s1 = inlined_call_operand.vmem [shape: f32[1,32], index: 1, kind: input, shape index: {}]   ;;  %s838_s2 = inlined_call_operand.vmem [shape: f32[1,32], index: 2, kind: input, shape index: {}]   ;;  %s839_s4 = inlined_call_operand.vmem [shape: f32[1,64], index: 4, kind: input, shape index: {}]   ;;  %s840_s3 = inlined_call_operand.vmem [shape: bf16[32,64], index: 3, kind: input, shape index: {}]   ;;  %s841_s5 = inlined_call_operand.vmem [shape: bf16[64,32], index: 5, kind: input, shape index: {}]   ;;  %s842_s7 = inlined_call_operand.vmem [shape: bf16[32,32], index: 7, kind: output, shape index: {}]  }
   0x1   :  { %v556_v0 = vld [vmem:[%s835_s0 + $0x8] sm:$0xff]   ;;  %v564_v1 = vld [vmem:[%s836_s6] ss:$0 sm:$0xff]  ;;  %568 = vrcp.f32 %v586_v15 }
   0x2   :  { %v554_v2 = vunpack.c.l.bf16 %v556_v0  ;;  %v549_v3 = vld [vmem:[%s835_s0] sm:$0xff]   ;;  %v555_v4 = vunpack.c.h.bf16 %v556_v0  ;;  %v543_v49 = vld [vmem:[%s840_s3 + $0x8] sm:$0xff] }
   0x3   :  { %v550_v5 = vunpack.c.l.bf16 %v549_v3  ;;  %v551_v6 = vunpack.c.h.bf16 %v549_v3  ;;  %219 = vmatpush.bf16.msra.mxu0 %v543_v49  ;;  %557 = vmatpush.bf16.msra.mxu3 %v543_v49  ;;  %v542_v53 = vld [vmem:[%s840_s3] sm:$0xff] }
   0x4   :  { %v48_v7 = vsel %vm41_vm0, %v554_v2, 0.0  ;;  %v166_v8 = vadd.f32 %v564_v1, %v554_v2  ;;  %v167_v9 = vadd.f32 %v564_v1, %v555_v4  ;;  %v51_v13 = vsel %vm41_vm0, %v555_v4, 0.0 }
   0x5   :  { %49 = vadd.xlane.f32.xlu0 %v48_v7  ;;  %v42_v10 = vsel %vm41_vm0, %v550_v5, 0.0  ;;  %v164_v11 = vadd.f32 %v564_v1, %v550_v5  ;;  %v165_v12 = vadd.f32 %v564_v1, %v551_v6  ;;  %v45_v14 = vsel %vm41_vm0, %v551_v6, 0.0 }
   0x6   :  { %170 = vst.msk [vmem:[#allocation3 + $0x10] sm:$0xff] %vm41_vm0, %v166_v8  ;;  %43 = vadd.xlane.f32.xlu1 %v42_v10 }
   0x7   :  { %168 = vst.msk [vmem:[#allocation3] sm:$0xff] %vm41_vm0, %v164_v11  ;;  %v569_v16 = vpop.eup %568  ;;  %220 = vmatpush.bf16.msra.mxu0 %v542_v53  ;;  %558 = vmatpush.bf16.msra.mxu3 %v542_v53  ;;  %v566_v11 = vld [vmem:[%s838_s2] ss:$0 sm:$0xff] }
   0x8   :  { %171 = vst.msk [vmem:[#allocation3 + $0x18] sm:$0xff] %vm41_vm0, %v167_v9  ;;  %v55_v17 = vmul.f32 32.0, %v569_v16  ;;  %vm59_vm1 = vweird.f32 %v569_v16 }
   0x9   :  { %169 = vst.msk [vmem:[#allocation3 + $0x8] sm:$0xff] %vm41_vm0, %v165_v12 }
   0xa   :  { %v56_v18 = vsub.f32 1.0, %v55_v17 }
   0xc   :  { %v57_v19 = vmul.f32 %v569_v16, %v56_v18 }
   0xd   :  { %52 = vadd.xlane.f32.xlu0 %v51_v13 }
   0xe   :  { %46 = vadd.xlane.f32.xlu1 %v45_v14  ;;  %v58_v20 = vadd.f32 %v569_v16, %v57_v19 }
  0x10   :  { %v60_v21 = vsel %vm59_vm1, %v569_v16, %v58_v20 }
  0x78   :  { %v50_v22 = vpop.xlane.xlu0 %49 }
  0x79   :  { %v63_v23 = vmul.f32 %v60_v21, %v50_v22  ;;  %v44_v24 = vpop.xlane.xlu1 %43 }
  0x7a   :  { %v61_v25 = vmul.f32 %v60_v21, %v44_v24 }
  0x7b   :  { %v644_v26 = vsub.f32 %v554_v2, %v63_v23 }
  0x7c   :  { %v646_v27 = vsub.f32 %v550_v5, %v61_v25 }
  0x7d   :  { %v71_v28 = vmul.f32 %v644_v26, %v644_v26 }
  0x7e   :  { %v69_v29 = vmul.f32 %v646_v27, %v646_v27 }
  0x7f   :  { %v79_v30 = vsel %vm41_vm0, %v71_v28, 0.0 }
  0x80   :  { %80 = vadd.xlane.f32.xlu2 %v79_v30  ;;  %v53_v31 = vpop.xlane.xlu0 %52  ;;  %v73_v32 = vsel %vm41_vm0, %v69_v29, 0.0 }
  0x81   :  { %v64_v33 = vmul.f32 %v60_v21, %v53_v31  ;;  %74 = vadd.xlane.f32.xlu0 %v73_v32  ;;  %v47_v34 = vpop.xlane.xlu1 %46 }
  0x82   :  { %v62_v35 = vmul.f32 %v60_v21, %v47_v34 }
  0x83   :  { %v654_v36 = vsub.f32 %v555_v4, %v64_v33 }
  0x84   :  { %v656_v37 = vsub.f32 %v551_v6, %v62_v35  ;;  %v565_v6 = vld [vmem:[%s837_s1] ss:$0 sm:$0xff] }
  0x85   :  { %v72_v38 = vmul.f32 %v654_v36, %v654_v36 }
  0x86   :  { %v70_v39 = vmul.f32 %v656_v37, %v656_v37 }
  0x87   :  { %v82_v40 = vsel %vm41_vm0, %v72_v38, 0.0 }
  0x88   :  { %83 = vadd.xlane.f32.xlu2 %v82_v40  ;;  %v76_v41 = vsel %vm41_vm0, %v70_v39, 0.0 }
  0x89   :  { %77 = vadd.xlane.f32.xlu1 %v76_v41 }
  0xf3   :  { %v81_v42 = vpop.xlane.xlu2 %80 }
  0xf4   :  { %v87_v43 = vmul.f32 %v81_v42, %v60_v21  ;;  %v75_v44 = vpop.xlane.xlu0 %74 }
  0xf5   :  { %v85_v45 = vmul.f32 %v75_v44, %v60_v21 }
  0xf6   :  { %v91_v46 = vadd.f32 1e-05, %v87_v43 }
  0xf7   :  { %v89_v47 = vadd.f32 1e-05, %v85_v45 }
  0xf8   :  { %570 = vrsqrt.f32 %v91_v46  ;;  %vm119_vm5 = vweird.f32 %v91_v46 }
  0xf9   :  { %572 = vrsqrt.f32 %v89_v47  ;;  %vm99_vm3 = vweird.f32 %v89_v47 }
  0xfb   :  { %v84_v48 = vpop.xlane.xlu2 %83 }
  0xfc   :  { %v88_v50 = vmul.f32 %v84_v48, %v60_v21  ;;  %v78_v51 = vpop.xlane.xlu1 %77 }
  0xfd   :  { %v86_v52 = vmul.f32 %v78_v51, %v60_v21 }
  0xfe   :  { %v571_v54 = vpop.eup %570  ;;  %v92_v55 = vadd.f32 1e-05, %v88_v50 }
  0xff   :  { %v573_v56 = vpop.eup %572  ;;  %v114_v57 = vmul.f32 %v571_v54, %v91_v46  ;;  %v90_v58 = vadd.f32 1e-05, %v86_v52  ;;  %vm120_vm2 = vweird.f32 %v571_v54 }
 0x100   :  { %v94_v59 = vmul.f32 %v573_v56, %v89_v47  ;;  %574 = vrsqrt.f32 %v92_v55  ;;  %vm100_vm4 = vweird.f32 %v573_v56  ;;  %vm121_vm6 = vmor %vm119_vm5, %vm120_vm2  ;;  %vm129_vm12 = vweird.f32 %v92_v55 }
 0x101   :  { %v115_v60 = vmul.f32 %v571_v54, %v114_v57  ;;  %576 = vrsqrt.f32 %v90_v58  ;;  %vm101_vm7 = vmor %vm99_vm3, %vm100_vm4  ;;  %vm109_vm9 = vweird.f32 %v90_v58 }
 0x102   :  { %v95_v61 = vmul.f32 %v573_v56, %v94_v59 }
 0x103   :  { %v116_v62 = vmul.f32 0.5, %v115_v60 }
 0x104   :  { %v96_v63 = vmul.f32 0.5, %v95_v61 }
 0x105   :  { %v117_v0 = vsub.f32 1.5, %v116_v62 }
 0x106   :  { %v575_v1 = vpop.eup %574  ;;  %v97_v2 = vsub.f32 1.5, %v96_v63 }
 0x107   :  { %v577_v3 = vpop.eup %576  ;;  %v118_v4 = vmul.f32 %v571_v54, %v117_v0  ;;  %v124_v5 = vmul.f32 %v575_v1, %v92_v55  ;;  %vm130_vm8 = vweird.f32 %v575_v1 }
 0x108   :  { %v98_v7 = vmul.f32 %v573_v56, %v97_v2  ;;  %v104_v8 = vmul.f32 %v577_v3, %v90_v58  ;;  %vm110_vm10 = vweird.f32 %v577_v3  ;;  %vm131_vm13 = vmor %vm129_vm12, %vm130_vm8 }
 0x109   :  { %v122_v9 = vsel %vm121_vm6, %v571_v54, %v118_v4  ;;  %v125_v10 = vmul.f32 %v575_v1, %v124_v5  ;;  %vm111_vm14 = vmor %vm109_vm9, %vm110_vm10 }
 0x10a   :  { %v135_v12 = vmul.f32 %v122_v9, %v644_v26  ;;  %v102_v13 = vsel %vm101_vm7, %v573_v56, %v98_v7  ;;  %v105_v14 = vmul.f32 %v577_v3, %v104_v8 }
 0x10b   :  { %v133_v15 = vmul.f32 %v102_v13, %v646_v27  ;;  %v126_v16 = vmul.f32 0.5, %v125_v10 }
 0x10c   :  { %v142_v17 = vmul.f32 %v565_v6, %v135_v12  ;;  %v106_v18 = vmul.f32 0.5, %v105_v14 }
 0x10d   :  { %v140_v19 = vmul.f32 %v565_v6, %v133_v15  ;;  %v127_v20 = vsub.f32 1.5, %v126_v16 }
 0x10e   :  { %v149_v21 = vadd.f32 %v566_v11, %v142_v17  ;;  %v107_v22 = vsub.f32 1.5, %v106_v18 }
 0x10f   :  { %v147_v23 = vadd.f32 %v566_v11, %v140_v19  ;;  %v128_v24 = vmul.f32 %v575_v1, %v127_v20 }
 0x110   :  { %v153_v25 = vpack.c.bf16 %v149_v21, %v149_v21  ;;  %v108_v26 = vmul.f32 %v577_v3, %v107_v22 }
 0x111   :  { %v151_v28 = vpack.c.bf16 %v147_v23, %v147_v23  ;;  %v132_v29 = vsel %vm131_vm13, %v575_v1, %v128_v24 }
 0x112   :  { %158 = vst.msk [vmem:[#allocation2 + $0x8] sm:$0xf] %vm155_vm11, %v153_v25  ;;  %v136_v27 = vmul.f32 %v132_v29, %v654_v36  ;;  %v112_v30 = vsel %vm111_vm14, %v577_v3, %v108_v26  ;;  %v567_v36 = vld [vmem:[%s839_s4] ss:$0 sm:$0xff]  ;;  %vm446_vm14 = vcmask 523264  }
 0x113   :  { %156 = vst.msk [vmem:[#allocation2] sm:$0xf] %vm155_vm11, %v151_v28  ;;  %v134_v31 = vmul.f32 %v112_v30, %v656_v37  ;;  %v547_v28 = vld [vmem:[%s841_s5 + $0x18] sm:$0xff] }
 0x114   :  { %v143_v32 = vmul.f32 %v565_v6, %v136_v27  ;;  %457 = vmatpush.bf16.msra.mxu1 %v547_v28  ;;  %559 = vmatpush.bf16.msra.mxu2 %v547_v28 }
 0x115   :  { %v141_v33 = vmul.f32 %v565_v6, %v134_v31 }
 0x116   :  { %v150_v34 = vadd.f32 %v566_v11, %v143_v32 }
 0x117   :  { %v148_v35 = vadd.f32 %v566_v11, %v141_v33 }
 0x118   :  { %v154_v38 = vpack.c.bf16 %v150_v34, %v150_v34 }
 0x119   :  { %v152_v39 = vpack.c.bf16 %v148_v35, %v148_v35 }
 0x11a   :  { %159 = vst.msk [vmem:[#allocation2 + $0xc] sm:$0xf] %vm155_vm11, %v154_v38 }
 0x11b   :  { %157 = vst.msk [vmem:[#allocation2 + $0x4] sm:$0xf] %vm155_vm11, %v152_v39  ;;  %v546_v39 = vld [vmem:[%s841_s5 + $0x10] sm:$0xff] }
 0x11c   :  { %458 = vmatpush.bf16.msra.mxu1 %v546_v39  ;;  %560 = vmatpush.bf16.msra.mxu2 %v546_v39 }
 0x121   :  { %v541_v40 = vld [vmem:[#allocation2 + $0x8] sm:$0xff] }
 0x122   :  { %v540_v41 = vld [vmem:[#allocation2] sm:$0xff]  ;;  %517 = vmatmul.msk.bf16.vlgmr.msra.gmra.mxu3 %vm41_vm0, %v541_v40 }
 0x123   :  { %516 = vmatmul.msk.bf16.vlgmr.msra.gmra.mxu0 %vm41_vm0, %v540_v41 }
 0x1a0   :  { %v222_v37 = vpop.f32.mrf.mxu0 }
 0x1a1   :  { %v689_v42 = vadd.f32 %v567_v36, %v222_v37 }
 0x1a3   :  { %v692_v43 = vmul.f32 0.70710677, %v689_v42 }
 0x1a5   :  { %v240_v44 = vmul.f32 %v692_v43, %v692_v43  ;;  %v227_v45 = vpop.f32.mrf.mxu3 }
 0x1a6   :  { %v696_v46 = vadd.f32 %v567_v36, %v227_v45 }
 0x1a7   :  { %v698_v47 = vmin.f32 %v240_v44, 16.0 }
 0x1a8   :  { %v701_v48 = vmul.f32 0.70710677, %v696_v46  ;;  %v224_v49 = vpop.f32.mrf.mxu0 }
 0x1a9   :  { %v242_v50 = vmul.f32 2.1237322e-06, %v698_v47  ;;  %v253_v51 = vmul.f32 3.8918573e-05, %v698_v47  ;;  %v705_v52 = vadd.f32 %v567_v36, %v224_v49 }
 0x1aa   :  { %v320_v53 = vmul.f32 %v701_v48, %v701_v48 }
 0x1ab   :  { %v254_v54 = vadd.f32 0.001143296, %v253_v51  ;;  %v712_v56 = vmul.f32 0.70710677, %v705_v52  ;;  %v243_v57 = vadd.f32 0.00028619796, %v242_v50 }
 0x1ac   :  { %v709_v55 = vmin.f32 %v320_v53, 16.0  ;;  %v545_v51 = vld [vmem:[%s841_s5 + $0x8] sm:$0xff] }
 0x1ad   :  { %v255_v58 = vmul.f32 %v254_v54, %v698_v47  ;;  %v229_v59 = vpop.f32.mrf.mxu3  ;;  %v280_v61 = vmul.f32 %v712_v56, %v712_v56  ;;  %v244_v2 = vmul.f32 %v243_v57, %v698_v47  ;;  %459 = vmatpush.bf16.msra.mxu1 %v545_v51  ;;  %561 = vmatpush.bf16.msra.mxu2 %v545_v51 }
 0x1ae   :  { %v333_v60 = vmul.f32 3.8918573e-05, %v709_v55  ;;  %v718_v62 = vadd.f32 %v567_v36, %v229_v59  ;;  %v322_v10 = vmul.f32 2.1237322e-06, %v709_v55 }
 0x1af   :  { %v256_v63 = vadd.f32 0.014752088, %v255_v58  ;;  %v720_v1 = vmin.f32 %v280_v61, 16.0  ;;  %v245_v13 = vadd.f32 0.0036580483, %v244_v2 }
 0x1b0   :  { %v334_v0 = vadd.f32 0.001143296, %v333_v60  ;;  %v725_v4 = vmul.f32 0.70710677, %v718_v62  ;;  %v323_v20 = vadd.f32 0.00028619796, %v322_v10 }
 0x1b1   :  { %v257_v3 = vmul.f32 %v256_v63, %v698_v47  ;;  %v282_v6 = vmul.f32 2.1237322e-06, %v720_v1  ;;  %v293_v7 = vmul.f32 3.8918573e-05, %v720_v1  ;;  %v246_v23 = vmul.f32 %v245_v13, %v698_v47 }
 0x1b2   :  { %v335_v5 = vmul.f32 %v334_v0, %v709_v55  ;;  %v360_v9 = vmul.f32 %v725_v4, %v725_v4  ;;  %v324_v31 = vmul.f32 %v323_v20, %v709_v55 }
 0x1b3   :  { %v258_v8 = vadd.f32 0.112945676, %v257_v3  ;;  %v283_v12 = vadd.f32 0.00028619796, %v282_v6  ;;  %v294_v15 = vadd.f32 0.001143296, %v293_v7 }
 0x1b4   :  { %v336_v11 = vadd.f32 0.014752088, %v335_v5  ;;  %v736_v19 = vmin.f32 %v360_v9, 16.0  ;;  %v247_v34 = vadd.f32 0.05243302, %v246_v23  ;;  %v544_v5 = vld [vmem:[%s841_s5] sm:$0xff] }
 0x1b5   :  { %v259_v14 = vmul.f32 %v258_v8, %v698_v47  ;;  %v295_v18 = vmul.f32 %v294_v15, %v720_v1  ;;  %v284_v22 = vmul.f32 %v283_v12, %v720_v1  ;;  %v325_v36 = vadd.f32 0.0036580483, %v324_v31  ;;  %460 = vmatpush.bf16.msra.mxu1 %v544_v5  ;;  %562 = vmatpush.bf16.msra.mxu2 %v544_v5 }
 0x1b6   :  { %v337_v16 = vmul.f32 %v336_v11, %v709_v55  ;;  %v362_v30 = vmul.f32 2.1237322e-06, %v736_v19  ;;  %v373_v35 = vmul.f32 3.8918573e-05, %v736_v19  ;;  %v248_v45 = vmul.f32 %v247_v34, %v698_v47 }
 0x1b7   :  { %v260_v17 = vadd.f32 0.4994258, %v259_v14  ;;  %v296_v25 = vadd.f32 0.014752088, %v295_v18  ;;  %v285_v33 = vadd.f32 0.0036580483, %v284_v22  ;;  %v326_v59 = vmul.f32 %v325_v36, %v709_v55 }
 0x1b8   :  { %v338_v21 = vadd.f32 0.112945676, %v337_v16  ;;  %v363_v41 = vadd.f32 0.00028619796, %v362_v30  ;;  %v374_v50 = vadd.f32 0.001143296, %v373_v35 }
 0x1b9   :  { %v261_v24 = vmul.f32 %v260_v17, %v698_v47  ;;  %v297_v27 = vmul.f32 %v296_v25, %v720_v1  ;;  %v286_v44 = vmul.f32 %v285_v33, %v720_v1  ;;  %v249_v63 = vadd.f32 0.18741608, %v248_v45 }
 0x1ba   :  { %v339_v26 = vmul.f32 %v338_v21, %v709_v55  ;;  %v364_v57 = vmul.f32 %v363_v41, %v736_v19  ;;  %v375_v61 = vmul.f32 %v374_v50, %v736_v19  ;;  %v327_v10 = vadd.f32 0.05243302, %v326_v59 }
 0x1bb   :  { %v745_v29 = vadd.f32 1.0, %v261_v24  ;;  %v298_v40 = vadd.f32 0.112945676, %v297_v27  ;;  %v287_v60 = vadd.f32 0.05243302, %v286_v44  ;;  %v250_v13 = vmul.f32 %v249_v63, %v698_v47 }
 0x1bc   :  { %v340_v32 = vadd.f32 0.4994258, %v339_v26  ;;  %v376_v3 = vadd.f32 0.014752088, %v375_v61  ;;  %v365_v7 = vadd.f32 0.0036580483, %v364_v57  ;;  %v328_v21 = vmul.f32 %v327_v10, %v709_v55 }
 0x1bd   :  { %578 = vrcp.f32 %v745_v29  ;;  %v299_v49 = vmul.f32 %v298_v40, %v720_v1  ;;  %v288_v11 = vmul.f32 %v287_v60, %v720_v1  ;;  %v274_v16 = vand.u32 2147483648, %v745_v29 }
 0x1be   :  { %v341_v38 = vmul.f32 %v340_v32, %v709_v55  ;;  %v377_v12 = vmul.f32 %v376_v3, %v736_v19  ;;  %vm268_vm1 = vweird.f32 %v745_v29  ;;  %v272_v17 = vand.u32 2147483647, %v745_v29 }
 0x1bf   :  { %v300_v54 = vadd.f32 0.4994258, %v299_v49  ;;  %v366_v18 = vmul.f32 %v365_v7, %v736_v19  ;;  %v289_v47 = vadd.f32 0.18741608, %v288_v11  ;;  %v251_v22 = vadd.f32 1.1283791, %v250_v13 }
 0x1c0   :  { %v756_v37 = vadd.f32 1.0, %v341_v38  ;;  %v378_v20 = vadd.f32 0.112945676, %v377_v12  ;;  %v275_v26 = vor.u32 1.1754944e-38, %v274_v16  ;;  %vm273_vm3 = vcmp.eq.f32.partialorder %v272_v17, 8.507059e+37 }
 0x1c1   :  { %v301_v0 = vmul.f32 %v300_v54, %v720_v1  ;;  %v367_v27 = vadd.f32 0.05243302, %v366_v18  ;;  %v252_v33 = vmul.f32 %v251_v22, %v692_v43  ;;  %v329_v34 = vadd.f32 0.18741608, %v328_v21 }
 0x1c2   :  { %580 = vrcp.f32 %v756_v37  ;;  %v379_v25 = vmul.f32 %v378_v20, %v736_v19  ;;  %vm348_vm6 = vweird.f32 %v756_v37  ;;  %v354_v51 = vand.u32 2147483648, %v756_v37 }
 0x1c3   :  { %v579_v53 = vpop.eup %578  ;;  %v773_v6 = vadd.f32 1.0, %v301_v0  ;;  %v368_v36 = vmul.f32 %v367_v27, %v736_v19  ;;  %v330_v50 = vmul.f32 %v329_v34, %v709_v55  ;;  %v352_v57 = vand.u32 2147483647, %v756_v37 }
 0x1c4   :  { %v264_v58 = vmul.f32 %v579_v53, %v745_v29  ;;  %vm269_vm15 = vweird.f32 %v579_v53  ;;  %v380_v30 = vadd.f32 0.4994258, %v379_v25  ;;  %v290_v29 = vmul.f32 %v289_v47, %v720_v1 }
 0x1c5   :  { %582 = vrcp.f32 %v773_v6  ;;  %vm270_vm2 = vmor %vm268_vm1, %vm269_vm15  ;;  %v314_v41 = vand.u32 2147483648, %v773_v6  ;;  %v312_v1 = vand.u32 2147483647, %v773_v6  ;;  %vm308_vm7 = vweird.f32 %v773_v6 }
 0x1c6   :  { %v265_v2 = vsub.f32 1.0, %v264_v58  ;;  %v381_v38 = vmul.f32 %v380_v30, %v736_v19  ;;  %v291_v45 = vadd.f32 1.1283791, %v290_v29  ;;  %v369_v59 = vadd.f32 0.18741608, %v368_v36 }
 0x1c7   :  { %v315_v58 = vor.u32 1.1754944e-38, %v314_v41  ;;  %vm313_vm10 = vcmp.eq.f32.partialorder %v312_v1, 8.507059e+37  ;;  %v331_v61 = vadd.f32 1.1283791, %v330_v50  ;;  %vm353_vm12 = vcmp.eq.f32.partialorder %v352_v57, 8.507059e+37 }
 0x1c8   :  { %v775_v8 = vpop.eup %580  ;;  %v266_v9 = vmul.f32 %v579_v53, %v265_v2  ;;  %v382_v44 = vadd.f32 1.0, %v381_v38  ;;  %v292_v55 = vmul.f32 %v291_v45, %v712_v56  ;;  %v355_v2 = vor.u32 1.1754944e-38, %v354_v51 }
 0x1c9   :  { %v344_v14 = vmul.f32 %v775_v8, %v756_v37  ;;  %vm349_vm5 = vweird.f32 %v775_v8  ;;  %v232_v11 = vmul.f32 0.5, %v689_v42  ;;  %v332_v56 = vmul.f32 %v331_v61, %v701_v48 }
 0x1ca   :  { %v267_v15 = vadd.f32 %v579_v53, %v266_v9  ;;  %584 = vrcp.f32 %v382_v44  ;;  %vm350_vm9 = vmor %vm348_vm6, %vm349_vm5  ;;  %v233_v12 = vmul.f32 0.5, %v705_v52  ;;  %v394_v17 = vand.u32 2147483648, %v382_v44 }
 0x1cb   :  { %v345_v24 = vsub.f32 1.0, %v344_v14  ;;  %v583_v28 = vpop.eup %582  ;;  %v392_v21 = vand.u32 2147483647, %v382_v44  ;;  %vm388_vm15 = vweird.f32 %v382_v44  ;;  %v235_v27 = vmul.f32 0.5, %v718_v62 }
 0x1cc   :  { %v271_v23 = vsel %vm270_vm2, %v579_v53, %v267_v15  ;;  %v304_v32 = vmul.f32 %v583_v28, %v773_v6  ;;  %vm309_vm4 = vweird.f32 %v583_v28  ;;  %v370_v6 = vmul.f32 %v369_v59, %v736_v19 }
 0x1cd   :  { %v276_v31 = vsel %vm273_vm3, %v275_v26, %v271_v23  ;;  %v346_v35 = vmul.f32 %v775_v8, %v345_v24  ;;  %vm310_vm8 = vmor %vm308_vm7, %vm309_vm4  ;;  %v395_v42 = vor.u32 1.1754944e-38, %v394_v17  ;;  %vm393_vm2 = vcmp.eq.f32.partialorder %v392_v21, 8.507059e+37 }
 0x1ce   :  { %v305_v39 = vsub.f32 1.0, %v304_v32  ;;  %v277_v40 = vmul.f32 %v276_v31, %v252_v33  ;;  %v371_v16 = vadd.f32 1.1283791, %v370_v6  ;;  %v408_v33 = vld [vmem:[#allocation3] sm:$0xff] }
 0x1cf   :  { %v347_v43 = vadd.f32 %v775_v8, %v346_v35  ;;  %v409_v35 = vld [vmem:[#allocation3 + $0x8] sm:$0xff] }
 0x1d0   :  { %v306_v49 = vmul.f32 %v583_v28, %v305_v39  ;;  %v518_v54 = vclamps-f32 %v277_v40, 1.0  ;;  %v585_v5 = vpop.eup %584  ;;  %v372_v48 = vmul.f32 %v371_v16, %v725_v4 }
 0x1d1   :  { %v351_v63 = vsel %vm350_vm9, %v775_v8, %v347_v43  ;;  %v384_v10 = vmul.f32 %v585_v5, %v382_v44  ;;  %vm389_vm13 = vweird.f32 %v585_v5 }
 0x1d2   :  { %v307_v53 = vadd.f32 %v583_v28, %v306_v49  ;;  %v400_v7 = vadd.f32 1.0, %v518_v54  ;;  %v356_v37 = vsel %vm353_vm12, %v355_v2, %v351_v63  ;;  %vm390_vm1 = vmor %vm388_vm15, %vm389_vm13  ;;  %v411_v49 = vld [vmem:[#allocation3 + $0x18] sm:$0xff] }
 0x1d3   :  { %v385_v14 = vsub.f32 1.0, %v384_v10  ;;  %v357_v15 = vmul.f32 %v356_v37, %v332_v56 }
 0x1d4   :  { %v311_v60 = vsel %vm310_vm8, %v583_v28, %v307_v53  ;;  %v404_v8 = vmul.f32 %v400_v7, %v232_v11  ;;  %v234_v28 = vmul.f32 0.5, %v696_v46  ;;  %v410_v46 = vld [vmem:[#allocation3 + $0x10] sm:$0xff] }
 0x1d5   :  { %v316_v0 = vsel %vm313_vm10, %v315_v58, %v311_v60  ;;  %v386_v20 = vmul.f32 %v585_v5, %v385_v14  ;;  %v520_v22 = vclamps-f32 %v357_v15, 1.0 }
 0x1d6   :  { %v317_v3 = vmul.f32 %v316_v0, %v292_v55 }
 0x1d7   :  { %v387_v19 = vadd.f32 %v585_v5, %v386_v20  ;;  %v402_v25 = vadd.f32 1.0, %v520_v22 }
 0x1d8   :  { %v519_v9 = vclamps-f32 %v317_v3, 1.0 }
 0x1d9   :  { %v391_v52 = vsel %vm390_vm1, %v585_v5, %v387_v19  ;;  %v406_v31 = vmul.f32 %v402_v25, %v234_v28 }
 0x1da   :  { %v401_v13 = vadd.f32 1.0, %v519_v9  ;;  %v396_v23 = vsel %vm393_vm2, %v395_v42, %v391_v52 }
 0x1db   :  { %v397_v24 = vmul.f32 %v396_v23, %v372_v48 }
 0x1dc   :  { %v405_v18 = vmul.f32 %v401_v13, %v233_v12 }
 0x1dd   :  { %v521_v26 = vclamps-f32 %v397_v24, 1.0 }
 0x1de   :  { %v412_v47 = vpack.c.bf16 %v405_v18, %v404_v8 }
 0x1df   :  { %v403_v30 = vadd.f32 1.0, %v521_v26 }
 0x1e0   :  { %538 = vmatmul.msk.bf16.vlgmr.msra.gmra.mxu1 %vm446_vm14, %v412_v47 }
 0x1e1   :  { %v407_v29 = vmul.f32 %v403_v30, %v235_v27 }
 0x1e3   :  { %v413_v32 = vpack.c.bf16 %v407_v29, %v406_v31 }
 0x1e5   :  { %539 = vmatmul.msk.bf16.vlgmr.msra.gmra.mxu2 %vm446_vm14, %v413_v32 }
 0x25d   :  { %v462_v4 = vpop.f32.mrf.mxu1 }
 0x25e   :  { %v472_v34 = vadd.f32 %v462_v4, %v408_v33 }
 0x260   :  { %476 = vst.msk [vmem:[#allocation3] sm:$0xff] %vm41_vm0, %v472_v34 }
 0x265   :  { %v464_v38 = vpop.f32.mrf.mxu1 }
 0x266   :  { %v473_v39 = vadd.f32 %v464_v38, %v409_v35 }
 0x267   :  { %v483_v40 = vld [vmem:[#allocation3] sm:$0xff] }
 0x268   :  { %v487_v41 = vpack.c.bf16 %v483_v40, %v483_v40  ;;  %477 = vst.msk [vmem:[#allocation3 + $0x8] sm:$0xff] %vm41_vm0, %v473_v39  ;;  %v467_v36 = vpop.f32.mrf.mxu2 }
 0x269   :  { %v474_v45 = vadd.f32 %v467_v36, %v410_v46 }
 0x26a   :  { %492 = vst.msk [vmem:[%s842_s7] sm:$0xf] %vm155_vm11, %v487_v41 }
 0x26b   :  { %478 = vst.msk [vmem:[#allocation3 + $0x10] sm:$0xff] %vm41_vm0, %v474_v45 }
 0x26f   :  { %v484_v62 = vld [vmem:[#allocation3 + $0x8] sm:$0xff] }
 0x270   :  { %v488_v44 = vpack.c.bf16 %v484_v62, %v484_v62  ;;  %v469_v1 = vpop.f32.mrf.mxu2 }
 0x271   :  { %v475_v50 = vadd.f32 %v469_v1, %v411_v49 }
 0x272   :  { %493 = vst.msk [vmem:[%s842_s7 + $0x4] sm:$0xf] %vm155_vm11, %v488_v44  ;;  %v485_v43 = vld [vmem:[#allocation3 + $0x10] sm:$0xff] }
 0x273   :  { %479 = vst.msk [vmem:[#allocation3 + $0x18] sm:$0xff] %vm41_vm0, %v475_v50  ;;  %v489_v51 = vpack.c.bf16 %v485_v43, %v485_v43 }
 0x275   :  { %494 = vst.msk [vmem:[%s842_s7 + $0x8] sm:$0xf] %vm155_vm11, %v489_v51 }
 0x27a   :  { %v486_v53 = vld [vmem:[#allocation3 + $0x18] sm:$0xff] }
 0x27b   :  { %v490_v54 = vpack.c.bf16 %v486_v53, %v486_v53 }
 0x27d   :  { %495 = vst.msk [vmem:[%s842_s7 + $0xc] sm:$0xf] %vm155_vm11, %v490_v54 }

</bundles_post_ra>
